<compile_context>
chip_gen: v7x
topology: tpu7x:2x2x1
jax: 0.10.0
libtpu: 0.0.40
codegen_flags: <defaults>
</compile_context>

<pallas_src>
import functools

import jax
import jax.numpy as jnp
from jax.experimental import pallas as pl
from jax.experimental.pallas import tpu as pltpu

_PACK = 4           # grid points packed per row for the width=32 channel mixes
_FC0_PACK = 32      # grid points packed per row for the 3(->4)-channel fc0
_VMEM_LIMIT = 48 * 1024 * 1024   # <= v7x's 64 MiB physical; ample for our tiles


# ------------------------------------------------------------------
# small helpers
# ------------------------------------------------------------------
def _round_up(n, m):
    return ((n + m - 1) // m) * m


def _pick_row_block(nrows, target):
    """Row tile (multiple of 8) and padded row count (multiple of the tile).

    Keeps tiles large (HBM-bound kernels) but, when possible, keeps >= 2 grid
    steps so v7x's two TensorCores both get work.
    """
    n8 = _round_up(nrows, 8)
    steps = max(pl.cdiv(n8, target), 2 if n8 > 8 else 1)
    bn = _round_up(pl.cdiv(n8, steps), 8)
    return bn, _round_up(nrows, bn)


def _largest_divisor(n, target):
    for d in range(min(n, target), 0, -1):
        if n % d == 0:
            return d
    return 1


def _compiler_params_1d():
    return pltpu.CompilerParams(
        dimension_semantics=("parallel",),
        vmem_limit_bytes=_VMEM_LIMIT,
    )


def _pack_rows(x, pack, rows_padded, cin_pad):
    """(N, c) -> (rows_padded, pack*cin_pad).

    Zero-pads channels to cin_pad and rows to rows_padded*pack, then packs
    `pack` consecutive grid points into the lane axis (lane-dense loads/stores).
    """
    n, c = x.shape
    x = jnp.pad(x, ((0, rows_padded * pack - n), (0, cin_pad - c)))
    return x.reshape(rows_padded, pack * cin_pad)


# ------------------------------------------------------------------
# Pallas kernels
# ------------------------------------------------------------------
def _linear_kernel(x_ref, w_ref, b_ref, o_ref, *, relu):
    y = jnp.dot(x_ref[...], w_ref[...], preferred_element_type=jnp.float32)
    y = y + b_ref[...]
    if relu:
        y = jnp.maximum(y, 0.0)
    o_ref[...] = y.astype(o_ref.dtype)


def _linear_add_relu_kernel(x_ref, w_ref, b_ref, a_ref, o_ref):
    # o = relu(x @ w + b + a): 1x1 conv fused with the residual add + relu.
    y = jnp.dot(x_ref[...], w_ref[...], preferred_element_type=jnp.float32)
    o_ref[...] = jnp.maximum(y + b_ref[...] + a_ref[...], 0.0).astype(o_ref.dtype)


def _mlp_head_kernel(x_ref, w1_ref, b1_ref, w2_ref, b2_ref, o_ref):
    # o = relu(x @ w1 + b1) @ w2 + b2 -- fc1+fc2 fused; the hidden stays in VMEM.
    h = jnp.dot(x_ref[...], w1_ref[...], preferred_element_type=jnp.float32)
    h = jnp.maximum(h + b1_ref[...], 0.0)
    y = jnp.dot(h, w2_ref[...], preferred_element_type=jnp.float32) + b2_ref[...]
    o_ref[...] = y.astype(o_ref.dtype)


def _spectral_mix_kernel(x_ref, w_ref, o_ref, *, batch):
    # x_ref: (G, 2B, Ci) = [xr; xi] stacked on the batch axis.
    # w_ref: (G, Ci, 2Co) = [Wr | Wi] concatenated on the output axis.
    # One batched matmul per mode block; recombine the 4 partial products (VPU):
    #   out_r = xr@Wr - xi@Wi ; out_i = xr@Wi + xi@Wr
    co = w_ref.shape[2] // 2
    p = jnp.einsum('mbi,mio->mbo', x_ref[...], w_ref[...],
                   preferred_element_type=jnp.float32)
    xr_wr = p[:, :batch, :co]
    xr_wi = p[:, :batch, co:]
    xi_wr = p[:, batch:, :co]
    xi_wi = p[:, batch:, co:]
    # single 2*Co-lane store: [out_r | out_i]
    o_ref[...] = jnp.concatenate([xr_wr - xi_wi, xr_wi + xi_wr], axis=-1)


# ------------------------------------------------------------------
# Pallas wrappers (lane-dense packed matmuls)
# ------------------------------------------------------------------
def pallas_packed_linear(x, w_p, b_p, *, pack, relu=False, block_rows=2048):
    """y = x @ W + b with `pack` grid points packed into the lane axis.

    x: (N, c); w_p: (pack*cin_pad, pack*cout) block-diagonal; b_p: (pack*cout,).
    Returns (N, cout).
    """
    n = x.shape[0]
    kp, cp = w_p.shape
    cin_pad, cout = kp // pack, cp // pack
    rows = pl.cdiv(n, pack)
    bn, rows_p = _pick_row_block(rows, block_rows)
    xp = _pack_rows(x, pack, rows_p, cin_pad)
    out = pl.pallas_call(
        functools.partial(_linear_kernel, relu=relu),
        out_shape=jax.ShapeDtypeStruct((rows_p, cp), jnp.float32),
        grid_spec=pltpu.PrefetchScalarGridSpec(
            num_scalar_prefetch=0,
            grid=(rows_p // bn,),
            in_specs=[
                pl.BlockSpec((bn, kp), lambda i: (i, 0)),
                pl.BlockSpec((kp, cp), lambda i: (0, 0)),
                pl.BlockSpec((1, cp), lambda i: (0, 0)),
            ],
            out_specs=pl.BlockSpec((bn, cp), lambda i: (i, 0)),
        ),
        compiler_params=_compiler_params_1d(),
    )(xp, w_p, b_p.reshape(1, cp))
    return out.reshape(rows_p * pack, cout)[:n]


def pallas_packed_linear_add_relu(x, w_p, b_p, add, *, pack, block_rows=2048):
    """y = relu(x @ W + b + add), lane-dense packed.  add: (N, cout)."""
    n = x.shape[0]
    kp, cp = w_p.shape
    cin_pad, cout = kp // pack, cp // pack
    rows = pl.cdiv(n, pack)
    bn, rows_p = _pick_row_block(rows, block_rows)
    xp = _pack_rows(x, pack, rows_p, cin_pad)
    ap = _pack_rows(add, pack, rows_p, cout)
    out = pl.pallas_call(
        _linear_add_relu_kernel,
        out_shape=jax.ShapeDtypeStruct((rows_p, cp), jnp.float32),
        grid_spec=pltpu.PrefetchScalarGridSpec(
            num_scalar_prefetch=0,
            grid=(rows_p // bn,),
            in_specs=[
                pl.BlockSpec((bn, kp), lambda i: (i, 0)),
                pl.BlockSpec((kp, cp), lambda i: (0, 0)),
                pl.BlockSpec((1, cp), lambda i: (0, 0)),
                pl.BlockSpec((bn, cp), lambda i: (i, 0)),
            ],
            out_specs=pl.BlockSpec((bn, cp), lambda i: (i, 0)),
        ),
        compiler_params=_compiler_params_1d(),
    )(xp, w_p, b_p.reshape(1, cp), ap)
    return out.reshape(rows_p * pack, cout)[:n]


def pallas_packed_mlp_head(x, w1_p, b1_p, w2_p, b2_p, *, pack, block_rows=1024):
    """y = relu(x @ w1 + b1) @ w2 + b2 (fc1 + fc2 fused), lane-dense packed."""
    n = x.shape[0]
    kp, cp1 = w1_p.shape
    cp2 = w2_p.shape[1]
    cout = cp2 // pack
    rows = pl.cdiv(n, pack)
    bn, rows_p = _pick_row_block(rows, block_rows)
    xp = _pack_rows(x, pack, rows_p, kp // pack)
    out = pl.pallas_call(
        _mlp_head_kernel,
        out_shape=jax.ShapeDtypeStruct((rows_p, cp2), jnp.float32),
        grid_spec=pltpu.PrefetchScalarGridSpec(
            num_scalar_prefetch=0,
            grid=(rows_p // bn,),
            in_specs=[
                pl.BlockSpec((bn, kp), lambda i: (i, 0)),
                pl.BlockSpec((kp, cp1), lambda i: (0, 0)),
                pl.BlockSpec((1, cp1), lambda i: (0, 0)),
                pl.BlockSpec((cp1, cp2), lambda i: (0, 0)),
                pl.BlockSpec((1, cp2), lambda i: (0, 0)),
            ],
            # TODO(synk): the (bn, pack*1) output block is still a narrow store;
            # total bytes are tiny (N*4), so the transposed-store trick is skipped.
            out_specs=pl.BlockSpec((bn, cp2), lambda i: (i, 0)),
        ),
        compiler_params=_compiler_params_1d(),
    )(xp, w1_p, b1_p.reshape(1, cp1), w2_p, b2_p.reshape(1, cp2))
    return out.reshape(rows_p * pack, cout)[:n]


def pallas_spectral_mix(x2, w_cat, batch, *, mode_block=64):
    """Per-Fourier-mode complex channel mix, gridded over mode blocks.

    x2: (2M, 2B, Ci) real LHS = [xr; xi].  w_cat: (2M, Ci, 2Co) = [Wr | Wi].
    Returns (2M, B, 2Co) = [out_r | out_i].
    """
    mtot, two_b, ci = x2.shape
    co2 = w_cat.shape[2]
    cap = min(mode_block, max(1, mtot // 2))     # keep >= 2 steps (v7x megacore)
    g = _largest_divisor(mtot, cap)
    return pl.pallas_call(
        functools.partial(_spectral_mix_kernel, batch=batch),
        out_shape=jax.ShapeDtypeStruct((mtot, batch, co2), jnp.float32),
        grid_spec=pltpu.PrefetchScalarGridSpec(
            num_scalar_prefetch=0,
            grid=(mtot // g,),
            in_specs=[
                pl.BlockSpec((g, two_b, ci), lambda i: (i, 0, 0)),
                pl.BlockSpec((g, ci, co2), lambda i: (i, 0, 0)),
            ],
            out_specs=pl.BlockSpec((g, batch, co2), lambda i: (i, 0, 0)),
        ),
        compiler_params=_compiler_params_1d(),
    )(x2, w_cat)


# ------------------------------------------------------------------
# SpectralConv2d (FFT glue in XLA, channel mix in Pallas)
# ------------------------------------------------------------------
def spectral_conv2d(x, w_cat, modes1, modes2):
    # x: (B, H, W, C) float32; w_cat: (2*modes1*modes2, C, 2C) = [Wr | Wi].
    B, H, W, C = x.shape
    Wf = W // 2 + 1
    M = modes1 * modes2

    # TODO(synk): rfft2/irfft2 have no Pallas TPU primitive; they stay in XLA.
    x_ft = jnp.fft.rfft2(x, axes=(1, 2), norm='ortho')        # (B, H, Wf, C) c64

    xl = x_ft[:, :modes1, :modes2, :]                           # low modes
    xh = x_ft[:, -modes1:, :modes2, :]                          # high modes

    # TODO(synk): complex arrays cannot enter pallas_call, so this small
    # transpose + real/imag split stays in XLA.
    def to_mbi(a):  # (B, m1, m2, C) -> (M, B, C)
        return jnp.transpose(a, (1, 2, 0, 3)).reshape(M, B, C)

    xc = jnp.concatenate([to_mbi(xl), to_mbi(xh)], axis=0)      # (2M, B, C)
    x2 = jnp.concatenate([jnp.real(xc), jnp.imag(xc)],
                         axis=1).astype(jnp.float32)            # (2M, 2B, C)

    out = pallas_spectral_mix(x2, w_cat, B)                     # (2M, B, 2C)
    o = jax.lax.complex(out[..., :C], out[..., C:])             # (2M, B, C)

    def from_mbo(a):  # (M, B, C) -> (B, m1, m2, C)
        return jnp.transpose(a.reshape(modes1, modes2, B, C), (2, 0, 1, 3))

    # Note: if 2*modes1 > H the two writes overlap; like the PyTorch reference,
    # the high-mode write wins (same sequential-assignment semantics).
    out_ft = jnp.zeros((B, H, Wf, C), dtype=jnp.complex64)
    out_ft = out_ft.at[:, :modes1, :modes2, :].set(from_mbo(o[:M]))
    out_ft = out_ft.at[:, -modes1:, :modes2, :].set(from_mbo(o[M:]))
    return jnp.fft.irfft2(out_ft, s=(H, W), axes=(1, 2), norm='ortho')


# ------------------------------------------------------------------
# FNO2d forward
# ------------------------------------------------------------------
def fno2d_forward(x, params, *, modes1, modes2, width):
    # x: (B, size_x, size_y, 3) -- same input layout as the PyTorch module.
    B, H, W, Cin = x.shape
    N = B * H * W

    # fc0: 3 -> width, 32 grid points packed per row (lane-dense in and out).
    h = pallas_packed_linear(x.reshape(N, Cin), params['fc0_w'], params['fc0_b'],
                             pack=_FC0_PACK, relu=False, block_rows=512)

    for l in range(4):
        x1 = spectral_conv2d(h.reshape(B, H, W, width),
                             params[f'conv{l}_w'], modes1, modes2)
        # x2 = 1x1 conv(h); h = relu(x1 + x2): fused, packed 4 points per row.
        h = pallas_packed_linear_add_relu(
            h, params[f'w{l}_w'], params[f'w{l}_b'], x1.reshape(N, width),
            pack=_PACK, block_rows=2048)

    # fc1 (relu) + fc2 fused: the (rows, 4*128) hidden never round-trips HBM.
    out = pallas_packed_mlp_head(h, params['fc1_w'], params['fc1_b'],
                                 params['fc2_w'], params['fc2_b'],
                                 pack=_PACK, block_rows=1024)
    return out.reshape(B, H, W, 1)


# ------------------------------------------------------------------
# Plain-JAX reference (unpacks the block-diagonal weights) -- for testing only.
# ------------------------------------------------------------------
def fno2d_reference(x, params, *, modes1, modes2, width):
    B, H, W, _ = x.shape
    hi = jax.lax.Precision.HIGHEST

    def unpack(wp, bp, pack):
        k, c = wp.shape[0] // pack, wp.shape[1] // pack
        return wp[:k, :c], bp[:c]

    w0, b0 = unpack(params['fc0_w'], params['fc0_b'], _FC0_PACK)  # (4, width)
    h = jnp.dot(x, w0[:3], precision=hi) + b0

    M = modes1 * modes2
    Wf = W // 2 + 1

    def spectral(h, wcat):
        wc = jax.lax.complex(wcat[..., :width], wcat[..., width:])   # (2M, Ci, Co)
        x_ft = jnp.fft.rfft2(h, axes=(1, 2), norm='ortho')

        def mix(xblk, wblk):
            xm = jnp.transpose(xblk, (1, 2, 0, 3)).reshape(M, B, width)
            ym = jnp.einsum('mbi,mio->mbo', xm, wblk, precision=hi)
            return jnp.transpose(ym.reshape(modes1, modes2, B, width), (2, 0, 1, 3))

        out_ft = jnp.zeros((B, H, Wf, width), jnp.complex64)
        out_ft = out_ft.at[:, :modes1, :modes2].set(mix(x_ft[:, :modes1, :modes2], wc[:M]))
        out_ft = out_ft.at[:, -modes1:, :modes2].set(mix(x_ft[:, -modes1:, :modes2], wc[M:]))
        return jnp.fft.irfft2(out_ft, s=(H, W), axes=(1, 2), norm='ortho')

    for l in range(4):
        wl, bl = unpack(params[f'w{l}_w'], params[f'w{l}_b'], _PACK)
        h = jax.nn.relu(spectral(h, params[f'conv{l}_w'])
                        + jnp.dot(h, wl, precision=hi) + bl)

    w1, b1 = unpack(params['fc1_w'], params['fc1_b'], _PACK)
    w2, b2 = unpack(params['fc2_w'], params['fc2_b'], _PACK)
    h = jax.nn.relu(jnp.dot(h, w1, precision=hi) + b1)
    return jnp.dot(h, w2, precision=hi) + b2


# ------------------------------------------------------------------
# Deterministic parameter init (shapes from FNO2d.__init__).
# The lane-dense block-diagonal weights and the [Wr|Wi] spectral layout are
# built ONCE here, not per forward.
# ------------------------------------------------------------------
def init_params(key, modes1, modes2, width):
    keys = iter(jax.random.split(key, 32))

    def uni(shape, lo, hi):
        return jax.random.uniform(next(keys), shape, jnp.float32, lo, hi)

    def block_diag(w, p):
        # (Cin, Cout) -> (p*Cin, p*Cout): p copies of w on the diagonal.
        return jnp.kron(jnp.eye(p, dtype=w.dtype), w)

    p = {}

    # fc0 = Linear(3, width): pad input channels 3 -> 4, pack 32 grid points.
    lim0 = 1.0 / (3.0 ** 0.5)
    w = jnp.pad(uni((3, width), -lim0, lim0), ((0, 1), (0, 0)))       # (4, width)
    p['fc0_w'] = block_diag(w, _FC0_PACK)                             # (128, 32*width)
    p['fc0_b'] = jnp.tile(uni((width,), -lim0, lim0), _FC0_PACK)

    scale = 1.0 / (width * width)
    limw = 1.0 / (width ** 0.5)
    M = modes1 * modes2

    def to_mio(wc):  # (Ci, Co, m1, m2) -> (M, Ci, Co)
        return jnp.transpose(wc, (2, 3, 0, 1)).reshape(M, width, width)

    for l in range(4):
        w1r = scale * uni((width, width, modes1, modes2), 0.0, 1.0)
        w1i = scale * uni((width, width, modes1, modes2), 0.0, 1.0)
        w2r = scale * uni((width, width, modes1, modes2), 0.0, 1.0)
        w2i = scale * uni((width, width, modes1, modes2), 0.0, 1.0)
        wr = jnp.concatenate([to_mio(w1r), to_mio(w2r)], axis=0)      # (2M, Ci, Co)
        wi = jnp.concatenate([to_mio(w1i), to_mio(w2i)], axis=0)
        p[f'conv{l}_w'] = jnp.concatenate([wr, wi], axis=-1)          # (2M, Ci, 2Co)
        p[f'w{l}_w'] = block_diag(uni((width, width), -limw, limw), _PACK)   # (128,128)
        p[f'w{l}_b'] = jnp.tile(uni((width,), -limw, limw), _PACK)

    lim1 = 1.0 / (width ** 0.5)
    p['fc1_w'] = block_diag(uni((width, 128), -lim1, lim1), _PACK)    # (128, 512)
    p['fc1_b'] = jnp.tile(uni((128,), -lim1, lim1), _PACK)
    lim2 = 1.0 / (128.0 ** 0.5)
    p['fc2_w'] = block_diag(uni((128, 1), -lim2, lim2), _PACK)        # (512, 4)
    p['fc2_b'] = jnp.tile(uni((1,), -lim2, lim2), _PACK)
    return p


if __name__ == "__main__":
    B, H, W = 2, 16, 16
    modes1, modes2, width = 8, 8, 32

    key = jax.random.PRNGKey(0)
    kp, kx = jax.random.split(key)
    params = init_params(kp, modes1, modes2, width)
    x = jax.random.normal(kx, (B, H, W, 3), dtype=jnp.float32)

    fwd = jax.jit(functools.partial(
        fno2d_forward, modes1=modes1, modes2=modes2, width=width))
    out = fwd(x, params)
    jax.block_until_ready(out)

    assert out.shape == (B, H, W, 1)
    assert bool(jnp.all(jnp.isfinite(out)))

    # Numerical self-check against a plain-JAX reference of the same module.
    ref = jax.jit(functools.partial(
        fno2d_reference, modes1=modes1, modes2=modes2, width=width))(x, params)
    err = float(jnp.max(jnp.abs(out - ref)))
    assert err < 2e-3, f"max abs error vs reference: {err}"

    print("KERNEL_OK")
</pallas_src>

<mosaic_0001>
module attributes {stable_mosaic.version = 11 : i64} {
  func.func @_linear_kernel(%arg0: i32, %arg1: memref<8x128xf32, #tpu.memory_space<vmem>>, %arg2: memref<128x1024xf32, #tpu.memory_space<vmem>>, %arg3: memref<1x1024xf32, #tpu.memory_space<vmem>>, %arg4: memref<8x1024xf32, #tpu.memory_space<vmem>>) attributes {dimension_semantics = [#tpu.dimension_semantics<parallel>], iteration_bounds = array<i64: 2>, scalar_prefetch = 0 : i64, scratch_operands = 0 : i64, tpu.core_type = #tpu.core_type<tc>, window_params = [{transform_indices = @transform_0, window_bounds = array<i64: 8, 128>}, {pipeline_mode = #tpu.pipeline_mode<synchronous>, transform_indices = @transform_1, window_bounds = array<i64: 128, 1024>}, {pipeline_mode = #tpu.pipeline_mode<synchronous>, transform_indices = @transform_2, window_bounds = array<i64: 1, 1024>}, {transform_indices = @transform_3, window_bounds = array<i64: 8, 1024>}]} {
    %c0 = arith.constant 0 : index
    %c0_0 = arith.constant 0 : index
    %0 = vector.load %arg1[%c0, %c0_0] : memref<8x128xf32, #tpu.memory_space<vmem>>, vector<8x128xf32>
    %c0_1 = arith.constant 0 : index
    %c0_2 = arith.constant 0 : index
    %1 = vector.load %arg2[%c0_1, %c0_2] : memref<128x1024xf32, #tpu.memory_space<vmem>>, vector<128x1024xf32>
    %cst = arith.constant dense<0.000000e+00> : vector<8x1024xf32>
    %2 = tpu.matmul %0, %1, %cst {dimension_numbers = #tpu.dot_dimension_numbers<[1], [0], [0], [1], [0, 0, 1, 1], [], []>} : vector<8x128xf32>, vector<128x1024xf32>, vector<8x1024xf32> -> vector<8x1024xf32>
    %c0_3 = arith.constant 0 : index
    %c0_4 = arith.constant 0 : index
    %3 = vector.load %arg3[%c0_3, %c0_4] : memref<1x1024xf32, #tpu.memory_space<vmem>>, vector<1x1024xf32>
    %4 = vector.broadcast %3 : vector<1x1024xf32> to vector<8x1024xf32>
    %5 = arith.addf %2, %4 : vector<8x1024xf32>
    %c0_5 = arith.constant 0 : index
    %c0_6 = arith.constant 0 : index
    %6 = vector.load %arg4[%c0_5, %c0_6] : memref<8x1024xf32, #tpu.memory_space<vmem>>, vector<8x1024xf32>
    tpu.vector_store %arg4[%c0_5, %c0_6], %5 {strides = array<i32>} : memref<8x1024xf32, #tpu.memory_space<vmem>>, vector<8x1024xf32>,
    return
  }
  func.func @transform_0(%arg0: i32) -> (i32, i32) {
    %c0_i32 = arith.constant 0 : i32
    %c0_i32_0 = arith.constant 0 : i32
    return %arg0, %c0_i32 : i32, i32
  }
  func.func @transform_1(%arg0: i32) -> (i32, i32) {
    %c0_i32 = arith.constant 0 : i32
    %c0_i32_0 = arith.constant 0 : i32
    %c0_i32_1 = arith.constant 0 : i32
    return %c0_i32, %c0_i32_0 : i32, i32
  }
  func.func @transform_2(%arg0: i32) -> (i32, i32) {
    %c0_i32 = arith.constant 0 : i32
    %c0_i32_0 = arith.constant 0 : i32
    %c0_i32_1 = arith.constant 0 : i32
    return %c0_i32, %c0_i32_0 : i32, i32
  }
  func.func @transform_3(%arg0: i32) -> (i32, i32) {
    %c0_i32 = arith.constant 0 : i32
    %c0_i32_0 = arith.constant 0 : i32
    return %arg0, %c0_i32 : i32, i32
  }
}

module attributes {stable_mosaic.version = 11 : i64} {
  func.func @_spectral_mix_kernel(%arg0: i32, %arg1: memref<64x4x32xf32, #tpu.memory_space<vmem>>, %arg2: memref<64x32x64xf32, #tpu.memory_space<vmem>>, %arg3: memref<64x2x64xf32, #tpu.memory_space<vmem>>) attributes {dimension_semantics = [#tpu.dimension_semantics<parallel>], iteration_bounds = array<i64: 2>, scalar_prefetch = 0 : i64, scratch_operands = 0 : i64, tpu.core_type = #tpu.core_type<tc>, window_params = [{transform_indices = @transform_0, window_bounds = array<i64: 64, 4, 32>}, {transform_indices = @transform_1, window_bounds = array<i64: 64, 32, 64>}, {transform_indices = @transform_2, window_bounds = array<i64: 64, 2, 64>}]} {
    %c0 = arith.constant 0 : index
    %c0_0 = arith.constant 0 : index
    %c0_1 = arith.constant 0 : index
    %0 = vector.load %arg1[%c0, %c0_0, %c0_1] : memref<64x4x32xf32, #tpu.memory_space<vmem>>, vector<64x4x32xf32>
    %c0_2 = arith.constant 0 : index
    %c0_3 = arith.constant 0 : index
    %c0_4 = arith.constant 0 : index
    %1 = vector.load %arg2[%c0_2, %c0_3, %c0_4] : memref<64x32x64xf32, #tpu.memory_space<vmem>>, vector<64x32x64xf32>
    "tpu.trace_start"() <{level = 10 : i32, message = "mbi,mio->mbo"}> : () -> ()
    %cst = arith.constant dense<0.000000e+00> : vector<64x4x64xf32>
    %2 = tpu.matmul %0, %1, %cst {dimension_numbers = #tpu.dot_dimension_numbers<[2], [1], [1], [2], [0, 0, 0, 1, 1, 2], [0], [0]>} : vector<64x4x32xf32>, vector<64x32x64xf32>, vector<64x4x64xf32> -> vector<64x4x64xf32>
    "tpu.trace_stop"() : () -> ()
    %3 = vector.extract_strided_slice %2 {offsets = [0, 0, 0], sizes = [64, 2, 32], strides = [1, 1, 1]} : vector<64x4x64xf32> to vector<64x2x32xf32>
    %4 = vector.extract_strided_slice %2 {offsets = [0, 0, 32], sizes = [64, 2, 32], strides = [1, 1, 1]} : vector<64x4x64xf32> to vector<64x2x32xf32>
    %5 = vector.extract_strided_slice %2 {offsets = [0, 2, 0], sizes = [64, 2, 32], strides = [1, 1, 1]} : vector<64x4x64xf32> to vector<64x2x32xf32>
    %6 = vector.extract_strided_slice %2 {offsets = [0, 2, 32], sizes = [64, 2, 32], strides = [1, 1, 1]} : vector<64x4x64xf32> to vector<64x2x32xf32>
    %7 = arith.subf %3, %6 : vector<64x2x32xf32>
    %8 = arith.addf %4, %5 : vector<64x2x32xf32>
    %9 = tpu.concatenate %7, %8 in 2 : vector<64x2x32xf32>, vector<64x2x32xf32> -> vector<64x2x64xf32>
    %c0_5 = arith.constant 0 : index
    %c0_6 = arith.constant 0 : index
    %c0_7 = arith.constant 0 : index
    %10 = vector.load %arg3[%c0_5, %c0_6, %c0_7] : memref<64x2x64xf32, #tpu.memory_space<vmem>>, vector<64x2x64xf32>
    tpu.vector_store %arg3[%c0_5, %c0_6, %c0_7], %9 {strides = array<i32>} : memref<64x2x64xf32, #tpu.memory_space<vmem>>, vector<64x2x64xf32>,
    return
  }
  func.func @transform_0(%arg0: i32) -> (i32, i32, i32) {
    %c0_i32 = arith.constant 0 : i32
    %c0_i32_0 = arith.constant 0 : i32
    %c0_i32_1 = arith.constant 0 : i32
    return %arg0, %c0_i32, %c0_i32_0 : i32, i32, i32
  }
  func.func @transform_1(%arg0: i32) -> (i32, i32, i32) {
    %c0_i32 = arith.constant 0 : i32
    %c0_i32_0 = arith.constant 0 : i32
    %c0_i32_1 = arith.constant 0 : i32
    return %arg0, %c0_i32, %c0_i32_0 : i32, i32, i32
  }
  func.func @transform_2(%arg0: i32) -> (i32, i32, i32) {
    %c0_i32 = arith.constant 0 : i32
    %c0_i32_0 = arith.constant 0 : i32
    %c0_i32_1 = arith.constant 0 : i32
    return %arg0, %c0_i32, %c0_i32_0 : i32, i32, i32
  }
}

module attributes {stable_mosaic.version = 11 : i64} {
  func.func @_linear_add_relu_kernel(%arg0: i32, %arg1: memref<64x128xf32, #tpu.memory_space<vmem>>, %arg2: memref<128x128xf32, #tpu.memory_space<vmem>>, %arg3: memref<1x128xf32, #tpu.memory_space<vmem>>, %arg4: memref<64x128xf32, #tpu.memory_space<vmem>>, %arg5: memref<64x128xf32, #tpu.memory_space<vmem>>) attributes {dimension_semantics = [#tpu.dimension_semantics<parallel>], iteration_bounds = array<i64: 2>, scalar_prefetch = 0 : i64, scratch_operands = 0 : i64, tpu.core_type = #tpu.core_type<tc>, window_params = [{transform_indices = @transform_0, window_bounds = array<i64: 64, 128>}, {pipeline_mode = #tpu.pipeline_mode<synchronous>, transform_indices = @transform_1, window_bounds = array<i64: 128, 128>}, {pipeline_mode = #tpu.pipeline_mode<synchronous>, transform_indices = @transform_2, window_bounds = array<i64: 1, 128>}, {transform_indices = @transform_3, window_bounds = array<i64: 64, 128>}, {transform_indices = @transform_4, window_bounds = array<i64: 64, 128>}]} {
    %c0 = arith.constant 0 : index
    %c0_0 = arith.constant 0 : index
    %0 = vector.load %arg1[%c0, %c0_0] : memref<64x128xf32, #tpu.memory_space<vmem>>, vector<64x128xf32>
    %c0_1 = arith.constant 0 : index
    %c0_2 = arith.constant 0 : index
    %1 = vector.load %arg2[%c0_1, %c0_2] : memref<128x128xf32, #tpu.memory_space<vmem>>, vector<128x128xf32>
    %cst = arith.constant dense<0.000000e+00> : vector<64x128xf32>
    %2 = tpu.matmul %0, %1, %cst {dimension_numbers = #tpu.dot_dimension_numbers<[1], [0], [0], [1], [0, 0, 1, 1], [], []>} : vector<64x128xf32>, vector<128x128xf32>, vector<64x128xf32> -> vector<64x128xf32>
    %c0_3 = arith.constant 0 : index
    %c0_4 = arith.constant 0 : index
    %3 = vector.load %arg3[%c0_3, %c0_4] : memref<1x128xf32, #tpu.memory_space<vmem>>, vector<1x128xf32>
    %4 = vector.broadcast %3 : vector<1x128xf32> to vector<64x128xf32>
    %5 = arith.addf %2, %4 : vector<64x128xf32>
    %c0_5 = arith.constant 0 : index
    %c0_6 = arith.constant 0 : index
    %6 = vector.load %arg4[%c0_5, %c0_6] : memref<64x128xf32, #tpu.memory_space<vmem>>, vector<64x128xf32>
    %7 = arith.addf %5, %6 : vector<64x128xf32>
    %cst_7 = arith.constant 0.000000e+00 : f32
    %8 = vector.broadcast %cst_7 : f32 to vector<64x128xf32>
    %9 = arith.maximumf %7, %8 : vector<64x128xf32>
    %c0_8 = arith.constant 0 : index
    %c0_9 = arith.constant 0 : index
    %10 = vector.load %arg5[%c0_8, %c0_9] : memref<64x128xf32, #tpu.memory_space<vmem>>, vector<64x128xf32>
    tpu.vector_store %arg5[%c0_8, %c0_9], %9 {strides = array<i32>} : memref<64x128xf32, #tpu.memory_space<vmem>>, vector<64x128xf32>,
    return
  }
  func.func @transform_0(%arg0: i32) -> (i32, i32) {
    %c0_i32 = arith.constant 0 : i32
    %c0_i32_0 = arith.constant 0 : i32
    return %arg0, %c0_i32 : i32, i32
  }
  func.func @transform_1(%arg0: i32) -> (i32, i32) {
    %c0_i32 = arith.constant 0 : i32
    %c0_i32_0 = arith.constant 0 : i32
    %c0_i32_1 = arith.constant 0 : i32
    return %c0_i32, %c0_i32_0 : i32, i32
  }
  func.func @transform_2(%arg0: i32) -> (i32, i32) {
    %c0_i32 = arith.constant 0 : i32
    %c0_i32_0 = arith.constant 0 : i32
    %c0_i32_1 = arith.constant 0 : i32
    return %c0_i32, %c0_i32_0 : i32, i32
  }
  func.func @transform_3(%arg0: i32) -> (i32, i32) {
    %c0_i32 = arith.constant 0 : i32
    %c0_i32_0 = arith.constant 0 : i32
    return %arg0, %c0_i32 : i32, i32
  }
  func.func @transform_4(%arg0: i32) -> (i32, i32) {
    %c0_i32 = arith.constant 0 : i32
    %c0_i32_0 = arith.constant 0 : i32
    return %arg0, %c0_i32 : i32, i32
  }
}

module attributes {stable_mosaic.version = 11 : i64} {
  func.func @_mlp_head_kernel(%arg0: i32, %arg1: memref<64x128xf32, #tpu.memory_space<vmem>>, %arg2: memref<128x512xf32, #tpu.memory_space<vmem>>, %arg3: memref<1x512xf32, #tpu.memory_space<vmem>>, %arg4: memref<512x4xf32, #tpu.memory_space<vmem>>, %arg5: memref<1x4xf32, #tpu.memory_space<vmem>>, %arg6: memref<64x4xf32, #tpu.memory_space<vmem>>) attributes {dimension_semantics = [#tpu.dimension_semantics<parallel>], iteration_bounds = array<i64: 2>, scalar_prefetch = 0 : i64, scratch_operands = 0 : i64, tpu.core_type = #tpu.core_type<tc>, window_params = [{transform_indices = @transform_0, window_bounds = array<i64: 64, 128>}, {pipeline_mode = #tpu.pipeline_mode<synchronous>, transform_indices = @transform_1, window_bounds = array<i64: 128, 512>}, {pipeline_mode = #tpu.pipeline_mode<synchronous>, transform_indices = @transform_2, window_bounds = array<i64: 1, 512>}, {pipeline_mode = #tpu.pipeline_mode<synchronous>, transform_indices = @transform_3, window_bounds = array<i64: 512, 4>}, {pipeline_mode = #tpu.pipeline_mode<synchronous>, transform_indices = @transform_4, window_bounds = array<i64: 1, 4>}, {transform_indices = @transform_5, window_bounds = array<i64: 64, 4>}]} {
    %c0 = arith.constant 0 : index
    %c0_0 = arith.constant 0 : index
    %0 = vector.load %arg1[%c0, %c0_0] : memref<64x128xf32, #tpu.memory_space<vmem>>, vector<64x128xf32>
    %c0_1 = arith.constant 0 : index
    %c0_2 = arith.constant 0 : index
    %1 = vector.load %arg2[%c0_1, %c0_2] : memref<128x512xf32, #tpu.memory_space<vmem>>, vector<128x512xf32>
    %cst = arith.constant dense<0.000000e+00> : vector<64x512xf32>
    %2 = tpu.matmul %0, %1, %cst {dimension_numbers = #tpu.dot_dimension_numbers<[1], [0], [0], [1], [0, 0, 1, 1], [], []>} : vector<64x128xf32>, vector<128x512xf32>, vector<64x512xf32> -> vector<64x512xf32>
    %c0_3 = arith.constant 0 : index
    %c0_4 = arith.constant 0 : index
    %3 = vector.load %arg3[%c0_3, %c0_4] : memref<1x512xf32, #tpu.memory_space<vmem>>, vector<1x512xf32>
    %4 = vector.broadcast %3 : vector<1x512xf32> to vector<64x512xf32>
    %5 = arith.addf %2, %4 : vector<64x512xf32>
    %cst_5 = arith.constant 0.000000e+00 : f32
    %6 = vector.broadcast %cst_5 : f32 to vector<64x512xf32>
    %7 = arith.maximumf %5, %6 : vector<64x512xf32>
    %c0_6 = arith.constant 0 : index
    %c0_7 = arith.constant 0 : index
    %8 = vector.load %arg4[%c0_6, %c0_7] : memref<512x4xf32, #tpu.memory_space<vmem>>, vector<512x4xf32>
    %cst_8 = arith.constant dense<0.000000e+00> : vector<64x4xf32>
    %9 = tpu.matmul %7, %8, %cst_8 {dimension_numbers = #tpu.dot_dimension_numbers<[1], [0], [0], [1], [0, 0, 1, 1], [], []>} : vector<64x512xf32>, vector<512x4xf32>, vector<64x4xf32> -> vector<64x4xf32>
    %c0_9 = arith.constant 0 : index
    %c0_10 = arith.constant 0 : index
    %10 = vector.load %arg5[%c0_9, %c0_10] : memref<1x4xf32, #tpu.memory_space<vmem>>, vector<1x4xf32>
    %11 = vector.broadcast %10 : vector<1x4xf32> to vector<64x4xf32>
    %12 = arith.addf %9, %11 : vector<64x4xf32>
    %c0_11 = arith.constant 0 : index
    %c0_12 = arith.constant 0 : index
    %13 = vector.load %arg6[%c0_11, %c0_12] : memref<64x4xf32, #tpu.memory_space<vmem>>, vector<64x4xf32>
    tpu.vector_store %arg6[%c0_11, %c0_12], %12 {strides = array<i32>} : memref<64x4xf32, #tpu.memory_space<vmem>>, vector<64x4xf32>,
    return
  }
  func.func @transform_0(%arg0: i32) -> (i32, i32) {
    %c0_i32 = arith.constant 0 : i32
    %c0_i32_0 = arith.constant 0 : i32
    return %arg0, %c0_i32 : i32, i32
  }
  func.func @transform_1(%arg0: i32) -> (i32, i32) {
    %c0_i32 = arith.constant 0 : i32
    %c0_i32_0 = arith.constant 0 : i32
    %c0_i32_1 = arith.constant 0 : i32
    return %c0_i32, %c0_i32_0 : i32, i32
  }
  func.func @transform_2(%arg0: i32) -> (i32, i32) {
    %c0_i32 = arith.constant 0 : i32
    %c0_i32_0 = arith.constant 0 : i32
    %c0_i32_1 = arith.constant 0 : i32
    return %c0_i32, %c0_i32_0 : i32, i32
  }
  func.func @transform_3(%arg0: i32) -> (i32, i32) {
    %c0_i32 = arith.constant 0 : i32
    %c0_i32_0 = arith.constant 0 : i32
    %c0_i32_1 = arith.constant 0 : i32
    return %c0_i32, %c0_i32_0 : i32, i32
  }
  func.func @transform_4(%arg0: i32) -> (i32, i32) {
    %c0_i32 = arith.constant 0 : i32
    %c0_i32_0 = arith.constant 0 : i32
    %c0_i32_1 = arith.constant 0 : i32
    return %c0_i32, %c0_i32_0 : i32, i32
  }
  func.func @transform_5(%arg0: i32) -> (i32, i32) {
    %c0_i32 = arith.constant 0 : i32
    %c0_i32_0 = arith.constant 0 : i32
    return %arg0, %c0_i32 : i32, i32
  }
}

</mosaic_0001>

<bundles_post_ra>
// kernel: fno2d_forward.10
= control target key start
LH: loop header
LB: loop body
LE: loop exit
PB: predicated region body
PF: predicated region fallthrough
CT: control target
= control target key end

     0   :  { %8 = vsyncpa [#allocation3], 0  ;;  %s1127_s0 = inlined_call_operand.vmem [shape: f32[16,128], index: 0, kind: input, shape index: {}]   ;;  %s1128_s1 = inlined_call_operand.hbm [shape: f32[128,1024], index: 1, kind: input, shape index: {}]   ;;  %s1129_s2 = inlined_call_operand.hbm [shape: f32[1,1024], index: 2, kind: input, shape index: {}]   ;;  %s1130_s3 = inlined_call_operand.vmem [shape: f32[16,1024], index: 3, kind: output, shape index: {}]  }
   0x1   :  { %9 = vsyncpa [#allocation5], 0  ;;  %s1008_s12 = smov 0  }
   0x2 LB: > { %s1014_s13 = sadd.s32 4294967295, %s981_s12   ;;  %p738_p0 = scmp.ge.s32.totalorder %s981_s12, 1  ;;  %s981_s12 = sphi %s1008_s12, %s15_s12  }
   0x3   : > { %p114_p1 = scmp.lt.s32.totalorder %s981_s12, 3  ;;  %s983_s14 = smov [#allocation2]  }
   0x4   : > { %s126_s15 = sshll.u32 %s983_s14, 4  ;;  %p1131_p3 = scmp.eq.s32.totalorder %s1014_s13, 0  ;;  %s127_s15 = int_to_ptr.vmem [resolvable:$true] %s126_s15 }
   0x5   : > { %p1018_p2 = pnand %p738_p0, %p114_p1  ;;  %s984_s17 = smov [#allocation4]  }
   0x6   : > { %s140_s18 = sshll.u32 %s984_s17, 4  ;;  %s911_s22 = scalar_lea.hbm %s1128_s1, 16384  ;;  %s1031_s18 = int_to_ptr.vmem [resolvable:$true] %s140_s18 }
   0x7   : > { %s1133_s16 = scalar_select %p1018_p2, 1, 0 }
   0x8   : > { %p887_p4 = pneg %p1018_p2  ;;  %p912_p6 = scmp.ne.s32.totalorder %s1128_s1, %s911_s22 }
   0x9   : > { %p918_p10 = scmp.lt.u32.totalorder %s911_s22, %s1128_s1 }
   0xa   : > { %p1027_p5 = pnand %p1131_p3, %p887_p4 }
   0xc   : > { %p913_p7 = pneg %p1027_p5 }
   0xe   : > { %p914_p8 = pnand %p913_p7, %p912_p6 }
  0x10   : > { %p915_p9 = pneg %p914_p8 }
  0x12   : > { %p920_p11 = pnand %p918_p10, %p915_p9 }
  0x14   : > { %923 = shalt.err (!%p920_p11)
}
  0x15   : > { %s924_s27 = scalar_lea.vmem %s127_s15, 16384  ;;  %p932_p1 = scmp.lt.s32.totalorder %s127_s15, %s127_s15 }
  0x16   : > { %p925_p12 = scmp.ne.s32.totalorder %s127_s15, %s924_s27  ;;  %p933_p4 = scmp.lt.s32.totalorder %s924_s27, %s924_s27 }
  0x18   : > { %p927_p13 = pnand %p925_p12, %p913_p7  ;;  %p934_p3 = por %p933_p4, %p932_p1 }
  0x1a   : > { %p928_p0 = pneg %p927_p13 }
  0x1c   : > { %p935_p2 = pnand %p934_p3, %p928_p0 }
  0x1e   : > { %938 = shalt.err (!%p935_p2)
}
  0x1f   : > { %s985_s28 = smov 1024   ;;  %s986_s29 = smov 64  }
  0x20   : > { %890 = dma.hbm_to_vmem [thread:$0]  (!%p1027_p5), %s1128_s1, 16384, %s127_s15, [#allocation3], %s985_s28, %s985_s28, %s986_s29  }
  0x21   : > { %s939_s7 = scalar_lea.hbm %s1129_s2, 128 }
  0x22   : > { %p940_p6 = scmp.ne.s32.totalorder %s1129_s2, %s939_s7  ;;  %p946_p8 = scmp.lt.u32.totalorder %s939_s7, %s1129_s2 }
  0x24   : > { %p942_p2 = pnand %p940_p6, %p913_p7 }
  0x26   : > { %p943_p3 = pneg %p942_p2 }
  0x28   : > { %p948_p9 = pnand %p946_p8, %p943_p3 }
  0x2a   : > { %951 = shalt.err (!%p948_p9)
}
  0x2b   : > { %s952_s14 = scalar_lea.vmem %s1031_s18, 128  ;;  %p960_p13 = scmp.lt.s32.totalorder %s1031_s18, %s1031_s18 }
  0x2c   : > { %p953_p10 = scmp.ne.s32.totalorder %s1031_s18, %s952_s14  ;;  %p961_p0 = scmp.lt.s32.totalorder %s952_s14, %s952_s14 }
  0x2e   : > { %p955_p11 = pnand %p953_p10, %p913_p7  ;;  %p962_p1 = por %p961_p0, %p960_p13 }
  0x30   : > { %p956_p12 = pneg %p955_p11 }
  0x32   : > { %p963_p4 = pnand %p962_p1, %p956_p12 }
  0x34   : > { %966 = shalt.err (!%p963_p4)
}
  0x35   : > { %893 = dma.hbm_to_vmem [thread:$0]  (!%p1027_p5), %s1129_s2, 128, %s1031_s18, [#allocation5]  }
  0x36   : > { %p1135_p6 = scmp.ne.s32.totalorder %s1133_s16, 0 }
  0x37   : > { %p1136_p2 = scmp.eq.s32.totalorder (!%p1135_p6), %s1014_s13, 0 }
  0x38   : > { %160 = sbr.rel (%p1135_p6) target bundleno = 352 (0x160), region = 32 }
  0x3f   : > { %972 = dma.done.wait (%p1136_p2), [#allocation3], 16384   ;;  %p1137_p7 = pmov %p1136_p2 }
  0x40   : > { %p1138_p3 = pmov %p1136_p2 }
  0x41   : > { %974 = vsyncadd (%p1137_p7), [#allocation3], 4294950912 }
  0x42   : > { %976 = dma.done.wait (%p1138_p3), [#allocation5], 128   ;;  %p1139_p8 = pmov %p1136_p2 }
  0x43   : > { %v987_v0 = vmov 0.0   ;;  %v198_v1 = vld [vmem:[#allocation2 + $0x8] sm:$0xff]  ;;  %v200_v3 = vld [vmem:[#allocation2 + $0x18] sm:$0xff]  ;;  %v197_v6 = vld [vmem:[#allocation2] sm:$0xff]  ;;  %p187_p5 = scmp.lt.s32.totalorder %s1014_s13, 1 }
  0x44   : > { %978 = vsyncadd (%p1139_p8), [#allocation5], 4294967168  ;;  %431 = vmatprep.mubr.f32.mxu0 %v987_v0  ;;  %502 = vmatprep.mubr.f32.mxu1 %v987_v0  ;;  %v206_v2 = vld [vmem:[#allocation2 + $0x48] sm:$0xff]  ;;  %v208_v5 = vld [vmem:[#allocation2 + $0x58] sm:$0xff] }
  0x45   : > { %v751_v4 = vpack.c.bf16 %v206_v2, %v198_v1  ;;  %v205_v7 = vld [vmem:[#allocation2 + $0x40] sm:$0xff]  ;;  %v783_v8 = vpack.c.bf16 %v208_v5, %v200_v3  ;;  %v199_v10 = vld [vmem:[#allocation2 + $0x10] sm:$0xff]  ;;  %v214_v12 = vld [vmem:[#allocation2 + $0x88] sm:$0xff]  ;;  %s1141_s13 = smov (!%p187_p5, %s1014_s13), 1 }
  0x46   : > { %v753_v9 = vpack.c.bf16 %v205_v7, %v197_v6  ;;  %v207_v11 = vld [vmem:[#allocation2 + $0x50] sm:$0xff]  ;;  %v222_v14 = vld [vmem:[#allocation2 + $0xc8] sm:$0xff]  ;;  %v216_v15 = vld [vmem:[#allocation2 + $0x98] sm:$0xff]  ;;  %s745_s16 = sshll.u32 %s1141_s13, 3  ;;  %s750_s21 = sshll.u32 %s1141_s13, 6 }
  0x47   : > { %752 = vmatprep.subr.bf16.mxu0 %v751_v4  ;;  %v785_v13 = vpack.c.bf16 %v207_v11, %v199_v10  ;;  %v224_v16 = vld [vmem:[#allocation2 + $0xd8] sm:$0xff]  ;;  %784 = vmatprep.subr.bf16.mxu1 %v783_v8  ;;  %v755_v17 = vpack.c.bf16 %v222_v14, %v214_v12  ;;  %v213_v19 = vld [vmem:[#allocation2 + $0x80] sm:$0xff]  ;;  %v215_v21 = vld [vmem:[#allocation2 + $0x90] sm:$0xff]  ;;  %s190_s20 = scalar_lea.vmem %s1127_s0, %s745_s16  ;;  %s1114_s24 = scalar_lea.vmem %s1130_s3, %s750_s21 }
  0x48   : > { %754 = vmatpush1.bf16.msra.mxu0 %v753_v9  ;;  %v787_v18 = vpack.c.bf16 %v224_v16, %v216_v15  ;;  %v221_v20 = vld [vmem:[#allocation2 + $0xc0] sm:$0xff]  ;;  %v223_v23 = vld [vmem:[#allocation2 + $0xd0] sm:$0xff]  ;;  %v230_v24 = vld [vmem:[#allocation2 + $0x108] sm:$0xff] }
  0x49   : > { %786 = vmatpush1.bf16.msra.mxu1 %v785_v13  ;;  %v757_v22 = vpack.c.bf16 %v221_v20, %v213_v19  ;;  %v238_v25 = vld [vmem:[#allocation2 + $0x148] sm:$0xff]  ;;  %756 = vmatprep.subr.bf16.mxu0 %v755_v17  ;;  %v789_v26 = vpack.c.bf16 %v223_v23, %v215_v21  ;;  %v232_v28 = vld [vmem:[#allocation2 + $0x118] sm:$0xff]  ;;  %v229_v30 = vld [vmem:[#allocation2 + $0x100] sm:$0xff] }
  0x4a   : > { %788 = vmatprep.subr.bf16.mxu1 %v787_v18  ;;  %v759_v27 = vpack.c.bf16 %v238_v25, %v230_v24  ;;  %v240_v29 = vld [vmem:[#allocation2 + $0x158] sm:$0xff]  ;;  %v237_v32 = vld [vmem:[#allocation2 + $0x140] sm:$0xff]  ;;  %v231_v33 = vld [vmem:[#allocation2 + $0x110] sm:$0xff] }
  0x4b   : > { %v791_v31 = vpack.c.bf16 %v240_v29, %v232_v28  ;;  %v239_v34 = vld [vmem:[#allocation2 + $0x150] sm:$0xff]  ;;  %v761_v35 = vpack.c.bf16 %v237_v32, %v229_v30  ;;  %v246_v36 = vld [vmem:[#allocation2 + $0x188] sm:$0xff]  ;;  %v248_v38 = vld [vmem:[#allocation2 + $0x198] sm:$0xff] }
  0x4c   : > { %758 = vmatpush1.bf16.msra.mxu0 %v757_v22  ;;  %v254_v37 = vld [vmem:[#allocation2 + $0x1c8] sm:$0xff]  ;;  %v793_v39 = vpack.c.bf16 %v239_v34, %v231_v33  ;;  %v256_v41 = vld [vmem:[#allocation2 + $0x1d8] sm:$0xff]  ;;  %v245_v42 = vld [vmem:[#allocation2 + $0x180] sm:$0xff] }
  0x4d   : > { %790 = vmatpush1.bf16.msra.mxu1 %v789_v26  ;;  %760 = vmatprep.subr.bf16.mxu0 %v759_v27  ;;  %v763_v40 = vpack.c.bf16 %v254_v37, %v246_v36  ;;  %v253_v43 = vld [vmem:[#allocation2 + $0x1c0] sm:$0xff]  ;;  %v795_v44 = vpack.c.bf16 %v256_v41, %v248_v38  ;;  %v247_v45 = vld [vmem:[#allocation2 + $0x190] sm:$0xff]  ;;  %v262_v47 = vld [vmem:[#allocation2 + $0x208] sm:$0xff] }
  0x4e   : > { %792 = vmatprep.subr.bf16.mxu1 %v791_v31  ;;  %v255_v46 = vld [vmem:[#allocation2 + $0x1d0] sm:$0xff]  ;;  %v270_v48 = vld [vmem:[#allocation2 + $0x248] sm:$0xff]  ;;  %v264_v49 = vld [vmem:[#allocation2 + $0x218] sm:$0xff]  ;;  %v765_v51 = vpack.c.bf16 %v253_v43, %v245_v42 }
  0x4f   : > { %v272_v50 = vld [vmem:[#allocation2 + $0x258] sm:$0xff]  ;;  %v797_v52 = vpack.c.bf16 %v255_v46, %v247_v45  ;;  %v767_v53 = vpack.c.bf16 %v270_v48, %v262_v47  ;;  %v261_v54 = vld [vmem:[#allocation2 + $0x200] sm:$0xff]  ;;  %v263_v56 = vld [vmem:[#allocation2 + $0x210] sm:$0xff] }
  0x50   : > { %762 = vmatpush1.bf16.msra.mxu0 %v761_v35  ;;  %v269_v55 = vld [vmem:[#allocation2 + $0x240] sm:$0xff]  ;;  %v799_v57 = vpack.c.bf16 %v272_v50, %v264_v49  ;;  %v271_v58 = vld [vmem:[#allocation2 + $0x250] sm:$0xff]  ;;  %v278_v59 = vld [vmem:[#allocation2 + $0x288] sm:$0xff] }
  0x51   : > { %794 = vmatpush1.bf16.msra.mxu1 %v793_v39  ;;  %764 = vmatprep.subr.bf16.mxu0 %v763_v40  ;;  %v286_v60 = vld [vmem:[#allocation2 + $0x2c8] sm:$0xff]  ;;  %v280_v61 = vld [vmem:[#allocation2 + $0x298] sm:$0xff]  ;;  %v769_v63 = vpack.c.bf16 %v269_v55, %v261_v54  ;;  %v801_v1 = vpack.c.bf16 %v271_v58, %v263_v56  ;;  %v277_v3 = vld [vmem:[#allocation2 + $0x280] sm:$0xff] }
  0x52   : > { %796 = vmatprep.subr.bf16.mxu1 %v795_v44  ;;  %v288_v62 = vld [vmem:[#allocation2 + $0x2d8] sm:$0xff]  ;;  %v771_v2 = vpack.c.bf16 %v286_v60, %v278_v59  ;;  %v285_v4 = vld [vmem:[#allocation2 + $0x2c0] sm:$0xff]  ;;  %v279_v5 = vld [vmem:[#allocation2 + $0x290] sm:$0xff] }
  0x53   : > { %v803_v6 = vpack.c.bf16 %v288_v62, %v280_v61  ;;  %v287_v7 = vld [vmem:[#allocation2 + $0x2d0] sm:$0xff]  ;;  %v294_v8 = vld [vmem:[#allocation2 + $0x308] sm:$0xff]  ;;  %v296_v10 = vld [vmem:[#allocation2 + $0x318] sm:$0xff]  ;;  %v773_v12 = vpack.c.bf16 %v285_v4, %v277_v3 }
  0x54   : > { %766 = vmatpush1.bf16.msra.mxu0 %v765_v51  ;;  %v302_v9 = vld [vmem:[#allocation2 + $0x348] sm:$0xff]  ;;  %v304_v11 = vld [vmem:[#allocation2 + $0x358] sm:$0xff]  ;;  %v805_v13 = vpack.c.bf16 %v287_v7, %v279_v5  ;;  %v293_v15 = vld [vmem:[#allocation2 + $0x300] sm:$0xff] }
  0x55   : > { %798 = vmatpush1.bf16.msra.mxu1 %v797_v52  ;;  %768 = vmatprep.subr.bf16.mxu0 %v767_v53  ;;  %v775_v14 = vpack.c.bf16 %v302_v9, %v294_v8  ;;  %v301_v16 = vld [vmem:[#allocation2 + $0x340] sm:$0xff]  ;;  %v295_v17 = vld [vmem:[#allocation2 + $0x310] sm:$0xff]  ;;  %v807_v18 = vpack.c.bf16 %v304_v11, %v296_v10  ;;  %v310_v20 = vld [vmem:[#allocation2 + $0x388] sm:$0xff] }
  0x56   : > { %800 = vmatprep.subr.bf16.mxu1 %v799_v57  ;;  %v303_v19 = vld [vmem:[#allocation2 + $0x350] sm:$0xff]  ;;  %v318_v21 = vld [vmem:[#allocation2 + $0x3c8] sm:$0xff]  ;;  %v312_v22 = vld [vmem:[#allocation2 + $0x398] sm:$0xff]  ;;  %v777_v24 = vpack.c.bf16 %v301_v16, %v293_v15 }
  0x57   : > { %v320_v23 = vld [vmem:[#allocation2 + $0x3d8] sm:$0xff]  ;;  %v809_v25 = vpack.c.bf16 %v303_v19, %v295_v17  ;;  %v779_v26 = vpack.c.bf16 %v318_v21, %v310_v20  ;;  %v309_v27 = vld [vmem:[#allocation2 + $0x380] sm:$0xff]  ;;  %v311_v29 = vld [vmem:[#allocation2 + $0x390] sm:$0xff] }
  0x58   : > { %770 = vmatpush1.bf16.msra.mxu0 %v769_v63  ;;  %v317_v28 = vld [vmem:[#allocation2 + $0x3c0] sm:$0xff]  ;;  %v811_v30 = vpack.c.bf16 %v320_v23, %v312_v22  ;;  %v319_v31 = vld [vmem:[#allocation2 + $0x3d0] sm:$0xff]  ;;  %v202_v32 = vld [vmem:[#allocation2 + $0x28] sm:$0xff] }
  0x59   : > { %802 = vmatpush1.bf16.msra.mxu1 %v801_v1  ;;  %772 = vmatprep.subr.bf16.mxu0 %v771_v2  ;;  %v210_v33 = vld [vmem:[#allocation2 + $0x68] sm:$0xff]  ;;  %v204_v34 = vld [vmem:[#allocation2 + $0x38] sm:$0xff]  ;;  %v781_v36 = vpack.c.bf16 %v317_v28, %v309_v27  ;;  %v813_v37 = vpack.c.bf16 %v319_v31, %v311_v29  ;;  %v201_v39 = vld [vmem:[#allocation2 + $0x20] sm:$0xff] }
  0x5a   : > { %804 = vmatprep.subr.bf16.mxu1 %v803_v6  ;;  %v212_v35 = vld [vmem:[#allocation2 + $0x78] sm:$0xff]  ;;  %v815_v38 = vpack.c.bf16 %v210_v33, %v202_v32  ;;  %v209_v40 = vld [vmem:[#allocation2 + $0x60] sm:$0xff]  ;;  %v203_v41 = vld [vmem:[#allocation2 + $0x30] sm:$0xff] }
  0x5b   : > { %v847_v42 = vpack.c.bf16 %v212_v35, %v204_v34  ;;  %v211_v43 = vld [vmem:[#allocation2 + $0x70] sm:$0xff]  ;;  %v218_v44 = vld [vmem:[#allocation2 + $0xa8] sm:$0xff]  ;;  %v220_v46 = vld [vmem:[#allocation2 + $0xb8] sm:$0xff]  ;;  %v817_v49 = vpack.c.bf16 %v209_v40, %v201_v39 }
  0x5c   : > { %774 = vmatpush1.bf16.msra.mxu0 %v773_v12  ;;  %v226_v45 = vld [vmem:[#allocation2 + $0xe8] sm:$0xff]  ;;  %v228_v47 = vld [vmem:[#allocation2 + $0xf8] sm:$0xff]  ;;  %v1102_v48 = vld [vmem:[%s190_s20] sm:$0xff]  ;;  %v849_v50 = vpack.c.bf16 %v211_v43, %v203_v41 }
  0x5d   : > { %806 = vmatpush1.bf16.msra.mxu1 %v805_v13  ;;  %776 = vmatprep.subr.bf16.mxu0 %v775_v14  ;;  %v819_v51 = vpack.c.bf16 %v226_v45, %v218_v44  ;;  %v217_v52 = vld [vmem:[#allocation2 + $0xa0] sm:$0xff]  ;;  %v219_v54 = vld [vmem:[#allocation2 + $0xb0] sm:$0xff]  ;;  %v851_v55 = vpack.c.bf16 %v228_v47, %v220_v46  ;;  %v234_v57 = vld [vmem:[#allocation2 + $0x128] sm:$0xff] }
  0x5e   : > { %808 = vmatprep.subr.bf16.mxu1 %v807_v18  ;;  %v225_v53 = vld [vmem:[#allocation2 + $0xe0] sm:$0xff]  ;;  %v227_v56 = vld [vmem:[#allocation2 + $0xf0] sm:$0xff]  ;;  %v242_v58 = vld [vmem:[#allocation2 + $0x168] sm:$0xff] }
  0x5f   : > { %v236_v59 = vld [vmem:[#allocation2 + $0x138] sm:$0xff]  ;;  %v821_v61 = vpack.c.bf16 %v225_v53, %v217_v52  ;;  %v853_v62 = vpack.c.bf16 %v227_v56, %v219_v54  ;;  %v823_v63 = vpack.c.bf16 %v242_v58, %v234_v57  ;;  %v233_v1 = vld [vmem:[#allocation2 + $0x120] sm:$0xff]  ;;  %v235_v3 = vld [vmem:[#allocation2 + $0x130] sm:$0xff] }
  0x60   : > { %778 = vmatpush1.bf16.msra.mxu0 %v777_v24  ;;  %v244_v60 = vld [vmem:[#allocation2 + $0x178] sm:$0xff]  ;;  %v241_v2 = vld [vmem:[#allocation2 + $0x160] sm:$0xff]  ;;  %v243_v5 = vld [vmem:[#allocation2 + $0x170] sm:$0xff] }
  0x61   : > { %810 = vmatpush1.bf16.msra.mxu1 %v809_v25  ;;  %780 = vmatprep.subr.bf16.mxu0 %v779_v26  ;;  %v855_v4 = vpack.c.bf16 %v244_v60, %v236_v59  ;;  %v250_v6 = vld [vmem:[#allocation2 + $0x1a8] sm:$0xff]  ;;  %v252_v8 = vld [vmem:[#allocation2 + $0x1b8] sm:$0xff]  ;;  %v825_v10 = vpack.c.bf16 %v241_v2, %v233_v1  ;;  %v857_v11 = vpack.c.bf16 %v243_v5, %v235_v3  ;;  %v249_v13 = vld [vmem:[#allocation2 + $0x1a0] sm:$0xff]  ;;  %v327_v5 = vlaneseq }
  0x62   : > { %812 = vmatprep.subr.bf16.mxu1 %v811_v30  ;;  %v258_v7 = vld [vmem:[#allocation2 + $0x1e8] sm:$0xff]  ;;  %v260_v9 = vld [vmem:[#allocation2 + $0x1f8] sm:$0xff]  ;;  %v257_v14 = vld [vmem:[#allocation2 + $0x1e0] sm:$0xff] }
  0x63   : > { %v827_v12 = vpack.c.bf16 %v258_v7, %v250_v6  ;;  %v251_v15 = vld [vmem:[#allocation2 + $0x1b0] sm:$0xff]  ;;  %v859_v16 = vpack.c.bf16 %v260_v9, %v252_v8  ;;  %v266_v18 = vld [vmem:[#allocation2 + $0x228] sm:$0xff]  ;;  %v268_v20 = vld [vmem:[#allocation2 + $0x238] sm:$0xff]  ;;  %v829_v22 = vpack.c.bf16 %v257_v14, %v249_v13  ;;  %v328_v6 = vshrl.u32 %v327_v5, 7 }
  0x64   : > { %782 = vmatpush1.bf16.msra.mxu0 %v781_v36  ;;  %v259_v17 = vld [vmem:[#allocation2 + $0x1f0] sm:$0xff]  ;;  %v274_v19 = vld [vmem:[#allocation2 + $0x268] sm:$0xff]  ;;  %v276_v21 = vld [vmem:[#allocation2 + $0x278] sm:$0xff] }
  0x65   : > { %814 = vmatpush1.bf16.msra.mxu1 %v813_v37  ;;  %816 = vmatprep.subr.bf16.mxu0 %v815_v38  ;;  %v831_v23 = vpack.c.bf16 %v274_v19, %v266_v18  ;;  %v265_v24 = vld [vmem:[#allocation2 + $0x220] sm:$0xff]  ;;  %v267_v26 = vld [vmem:[#allocation2 + $0x230] sm:$0xff]  ;;  %v863_v27 = vpack.c.bf16 %v276_v21, %v268_v20  ;;  %v282_v29 = vld [vmem:[#allocation2 + $0x2a8] sm:$0xff]  ;;  %v329_v7 = vsub.s32 0, %v328_v6  ;;  %v337_v9 = vsub.s32 2, %v328_v6 }
  0x66   : > { %848 = vmatprep.subr.bf16.mxu1 %v847_v42  ;;  %v273_v25 = vld [vmem:[#allocation2 + $0x260] sm:$0xff]  ;;  %v275_v28 = vld [vmem:[#allocation2 + $0x270] sm:$0xff]  ;;  %v290_v30 = vld [vmem:[#allocation2 + $0x2e8] sm:$0xff] }
  0x67   : > { %432 = vmatmul.mubr.f32.vlgmr.msra.gmra.mrb[0].mxu0 %v1102_v48  ;;  %v284_v31 = vld [vmem:[#allocation2 + $0x2b8] sm:$0xff]  ;;  %v833_v33 = vpack.c.bf16 %v273_v25, %v265_v24  ;;  %v865_v34 = vpack.c.bf16 %v275_v28, %v267_v26  ;;  %v835_v35 = vpack.c.bf16 %v290_v30, %v282_v29  ;;  %v281_v36 = vld [vmem:[#allocation2 + $0x2a0] sm:$0xff]  ;;  %v283_v38 = vld [vmem:[#allocation2 + $0x2b0] sm:$0xff]  ;;  %v349_v24 = vsub.s32 5, %v328_v6 }
  0x68   : > { %503 = vmatmul.mubr.f32.vlgmr.msra.gmra.mrb[0].mxu1 %v1102_v48  ;;  %818 = vmatpush1.bf16.msra.mxu0 %v817_v49  ;;  %v292_v32 = vld [vmem:[#allocation2 + $0x2f8] sm:$0xff]  ;;  %v289_v37 = vld [vmem:[#allocation2 + $0x2e0] sm:$0xff]  ;;  %v291_v40 = vld [vmem:[#allocation2 + $0x2f0] sm:$0xff]  ;;  %v357_v25 = vsub.s32 7, %v328_v6 }
  0x69   : > { %850 = vmatpush1.bf16.msra.mxu1 %v849_v50  ;;  %820 = vmatprep.subr.bf16.mxu0 %v819_v51  ;;  %v867_v39 = vpack.c.bf16 %v292_v32, %v284_v31  ;;  %v298_v41 = vld [vmem:[#allocation2 + $0x328] sm:$0xff]  ;;  %v300_v43 = vld [vmem:[#allocation2 + $0x338] sm:$0xff]  ;;  %v837_v45 = vpack.c.bf16 %v289_v37, %v281_v36  ;;  %v869_v46 = vpack.c.bf16 %v291_v40, %v283_v38  ;;  %v297_v49 = vld [vmem:[#allocation2 + $0x320] sm:$0xff] }
  0x6a   : > { %852 = vmatprep.subr.bf16.mxu1 %v851_v55  ;;  %573 = vmatprep.mubr.f32.mxu0 %v987_v0  ;;  %v306_v42 = vld [vmem:[#allocation2 + $0x368] sm:$0xff]  ;;  %v308_v44 = vld [vmem:[#allocation2 + $0x378] sm:$0xff]  ;;  %v305_v50 = vld [vmem:[#allocation2 + $0x360] sm:$0xff] }
  0x6b   : > { %644 = vmatprep.mubr.f32.mxu1 %v987_v0  ;;  %v861_v0 = vpack.c.bf16 %v259_v17, %v251_v15  ;;  %v839_v47 = vpack.c.bf16 %v306_v42, %v298_v41  ;;  %v299_v51 = vld [vmem:[#allocation2 + $0x330] sm:$0xff]  ;;  %v871_v52 = vpack.c.bf16 %v308_v44, %v300_v43  ;;  %v314_v54 = vld [vmem:[#allocation2 + $0x3a8] sm:$0xff]  ;;  %v316_v56 = vld [vmem:[#allocation2 + $0x3b8] sm:$0xff]  ;;  %v841_v58 = vpack.c.bf16 %v305_v50, %v297_v49 }
  0x6c   : > { %822 = vmatpush1.bf16.msra.mxu0 %v821_v61  ;;  %v307_v53 = vld [vmem:[#allocation2 + $0x370] sm:$0xff]  ;;  %v322_v55 = vld [vmem:[#allocation2 + $0x3e8] sm:$0xff]  ;;  %v324_v57 = vld [vmem:[#allocation2 + $0x3f8] sm:$0xff] }
  0x6d   : > { %854 = vmatpush1.bf16.msra.mxu1 %v853_v62  ;;  %824 = vmatprep.subr.bf16.mxu0 %v823_v63  ;;  %v873_v59 = vpack.c.bf16 %v307_v53, %v299_v51  ;;  %v843_v60 = vpack.c.bf16 %v322_v55, %v314_v54  ;;  %v313_v61 = vld [vmem:[#allocation2 + $0x3a0] sm:$0xff]  ;;  %v875_v63 = vpack.c.bf16 %v324_v57, %v316_v56  ;;  %v315_v1 = vld [vmem:[#allocation2 + $0x3b0] sm:$0xff] }
  0x6e   : > { %856 = vmatprep.subr.bf16.mxu1 %v855_v4  ;;  %v321_v62 = vld [vmem:[#allocation2 + $0x3e0] sm:$0xff]  ;;  %v323_v2 = vld [vmem:[#allocation2 + $0x3f0] sm:$0xff] }
  0x6f   : > { %v845_v3 = vpack.c.bf16 %v321_v62, %v313_v61  ;;  %v877_v4 = vpack.c.bf16 %v323_v2, %v315_v1  ;;  %v325_v8 = vld [vmem:[#allocation4] sm:$0xff] }
  0x70   : > { %826 = vmatpush1.bf16.msra.mxu0 %v825_v10  ;;  %v333_v10 = vsub.s32 1, %v328_v6  ;;  %v338_v13 = vrot.slane %v325_v8, %v337_v9  ;;  %v350_v28 = vrot.slane %v325_v8, %v349_v24  ;;  %v358_v29 = vrot.slane %v325_v8, %v357_v25 }
  0x71   : > { %858 = vmatpush1.bf16.msra.mxu1 %v857_v11  ;;  %828 = vmatprep.subr.bf16.mxu0 %v827_v12  ;;  %v341_v11 = vsub.s32 3, %v328_v6  ;;  %v330_v12 = vrot.slane %v325_v8, %v329_v7 }
  0x72   : > { %860 = vmatprep.subr.bf16.mxu1 %v859_v16  ;;  %v334_v14 = vrot.slane %v325_v8, %v333_v10 }
  0x73   : > { %v342_v15 = vrot.slane %v325_v8, %v341_v11 }
  0x74   : > { %830 = vmatpush1.bf16.msra.mxu0 %v829_v22 }
  0x75   : > { %862 = vmatpush1.bf16.msra.mxu1 %v861_v0  ;;  %832 = vmatprep.subr.bf16.mxu0 %v831_v23  ;;  %v345_v0 = vsub.s32 4, %v328_v6  ;;  %v353_v23 = vsub.s32 6, %v328_v6 }
  0x76   : > { %864 = vmatprep.subr.bf16.mxu1 %v863_v27 }
  0x77   : > { %v346_v26 = vrot.slane %v325_v8, %v345_v0  ;;  %v354_v27 = vrot.slane %v325_v8, %v353_v23 }
  0x78   : > { %834 = vmatpush1.bf16.msra.mxu0 %v833_v33 }
  0x79   : > { %866 = vmatpush1.bf16.msra.mxu1 %v865_v34  ;;  %836 = vmatprep.subr.bf16.mxu0 %v835_v35 }
  0x7a   : > { %868 = vmatprep.subr.bf16.mxu1 %v867_v39 }
  0x7c   : > { %838 = vmatpush1.bf16.msra.mxu0 %v837_v45 }
  0x7d   : > { %870 = vmatpush1.bf16.msra.mxu1 %v869_v46  ;;  %840 = vmatprep.subr.bf16.mxu0 %v839_v47 }
  0x7e   : > { %872 = vmatprep.subr.bf16.mxu1 %v871_v52 }
  0x80   : > { %842 = vmatpush1.bf16.msra.mxu0 %v841_v58 }
  0x81   : > { %874 = vmatpush1.bf16.msra.mxu1 %v873_v59  ;;  %844 = vmatprep.subr.bf16.mxu0 %v843_v60 }
  0x82   : > { %876 = vmatprep.subr.bf16.mxu1 %v875_v63 }
  0x84   : > { %846 = vmatpush1.bf16.msra.mxu0 %v845_v3 }
  0x85   : > { %878 = vmatpush1.bf16.msra.mxu1 %v877_v4 }
  0x87   : > { %574 = vmatmul.mubr.f32.vlgmr.msra.gmra.mrb[2].mxu0 %v1102_v48 }
  0x88   : > { %645 = vmatmul.mubr.f32.vlgmr.msra.gmra.mrb[2].mxu1 %v1102_v48 }
 0x13a   : > { %v433_v48 = vpop.f32.mrb[0].mxu0 }
 0x13b   : > { %v434_v16 = vadd.f32 %v433_v48, %v330_v12  ;;  %v504_v17 = vpop.f32.mrb[0].mxu1  ;;  %v435_v18 = vpop.f32.mrb[1].mxu0 }
 0x13c   : > { %v505_v19 = vadd.f32 %v504_v17, %v338_v13  ;;  %v436_v20 = vadd.f32 %v435_v18, %v334_v14  ;;  %v506_v21 = vpop.f32.mrb[1].mxu1 }
 0x13d   : > { %651 = vst [vmem:[%s1114_s24] sm:$0xff] %v434_v16  ;;  %v507_v22 = vadd.f32 %v506_v21, %v342_v15 }
 0x13e   : > { %653 = vst [vmem:[%s1114_s24 + $0x10] sm:$0xff] %v505_v19  ;;  %652 = vst [vmem:[%s1114_s24 + $0x8] sm:$0xff] %v436_v20 }
 0x13f   : > { %654 = vst [vmem:[%s1114_s24 + $0x18] sm:$0xff] %v507_v22 }
 0x15a   : > { %v575_v30 = vpop.f32.mrb[2].mxu0 }
 0x15b   : > { %v576_v31 = vadd.f32 %v575_v30, %v346_v26  ;;  %v646_v32 = vpop.f32.mrb[2].mxu1  ;;  %v577_v33 = vpop.f32.mrb[3].mxu0 }
 0x15c   : > { %v647_v34 = vadd.f32 %v646_v32, %v354_v27  ;;  %v578_v35 = vadd.f32 %v577_v33, %v350_v28  ;;  %v648_v36 = vpop.f32.mrb[3].mxu1 }
 0x15d   : > { %655 = vst [vmem:[%s1114_s24 + $0x20] sm:$0xff] %v576_v31  ;;  %v649_v37 = vadd.f32 %v648_v36, %v358_v29 }
 0x15e   : > { %657 = vst [vmem:[%s1114_s24 + $0x30] sm:$0xff] %v647_v34  ;;  %656 = vst [vmem:[%s1114_s24 + $0x28] sm:$0xff] %v578_v35 }
 0x15f   : > { %658 = vst [vmem:[%s1114_s24 + $0x38] sm:$0xff] %v649_v37 }
 0x160 PF: > { %s15_s12 = sadd.s32 1, %s981_s12  }
 0x161   : > { %p12_p9 = scmp.ge.s32.totalorder %s15_s12, 4  }
 0x163   :  { %14 = sbr.rel (!%p12_p9) target bundleno = 2 (0x2), region = 71 }
 0x16a   :  { %680 = vsyncpa [#allocation3], 1 }
 0x16b   :  { %682 = vsyncpa [#allocation3 + $0x1], 1 }
 0x16c   :  { %683 = vsyncpa [#allocation5], 1 }

// kernel: reverse.8
= control target key start
LH: loop header
LB: loop body
LE: loop exit
PB: predicated region body
PF: predicated region fallthrough
CT: control target
= control target key end

     0   :  { %s344_s0 = inlined_call_operand.vmem [shape: f32[2,32,16,7], index: 0, kind: input, shape index: {}]   ;;  %s345_s1 = inlined_call_operand.vmem [shape: f32[2,32,16,7], index: 1, kind: output, shape index: {}]  }
   0x1   :  { %v112_v0 = vld [vmem:[%s344_s0 + $0x60] sm:$0xff]  ;;  %v113_v1 = vld [vmem:[%s344_s0 + $0xd0] sm:$0xff]  ;;  %v138_v14 = vld [vmem:[%s344_s0 + $0x68] sm:$0xff] }
   0x2   :  { %v115_v2 = vld [vmem:[%s344_s0 + $0x50] sm:$0xff]  ;;  %4 = vst [vmem:[%s345_s1] sm:$0xff] %v112_v0  ;;  %114 = vst [vmem:[%s345_s1 + $0x70] sm:$0xff] %v113_v1  ;;  %v117_v3 = vld [vmem:[%s344_s0 + $0xc0] sm:$0xff] }
   0x3   :  { %116 = vst [vmem:[%s345_s1 + $0x10] sm:$0xff] %v115_v2  ;;  %v119_v4 = vld [vmem:[%s344_s0 + $0x40] sm:$0xff]  ;;  %v121_v5 = vld [vmem:[%s344_s0 + $0xb0] sm:$0xff]  ;;  %118 = vst [vmem:[%s345_s1 + $0x80] sm:$0xff] %v117_v3 }
   0x4   :  { %120 = vst [vmem:[%s345_s1 + $0x20] sm:$0xff] %v119_v4  ;;  %122 = vst [vmem:[%s345_s1 + $0x90] sm:$0xff] %v121_v5  ;;  %v123_v6 = vld [vmem:[%s344_s0 + $0x30] sm:$0xff]  ;;  %v125_v7 = vld [vmem:[%s344_s0 + $0xa0] sm:$0xff] }
   0x5   :  { %v127_v8 = vld [vmem:[%s344_s0 + $0x20] sm:$0xff]  ;;  %124 = vst [vmem:[%s345_s1 + $0x30] sm:$0xff] %v123_v6  ;;  %126 = vst [vmem:[%s345_s1 + $0xa0] sm:$0xff] %v125_v7  ;;  %v129_v9 = vld [vmem:[%s344_s0 + $0x90] sm:$0xff] }
   0x6   :  { %128 = vst [vmem:[%s345_s1 + $0x40] sm:$0xff] %v127_v8  ;;  %v131_v10 = vld [vmem:[%s344_s0 + $0x10] sm:$0xff]  ;;  %v133_v11 = vld [vmem:[%s344_s0 + $0x80] sm:$0xff]  ;;  %130 = vst [vmem:[%s345_s1 + $0xb0] sm:$0xff] %v129_v9 }
   0x7   :  { %132 = vst [vmem:[%s345_s1 + $0x50] sm:$0xff] %v131_v10  ;;  %134 = vst [vmem:[%s345_s1 + $0xc0] sm:$0xff] %v133_v11  ;;  %v49_v12 = vld [vmem:[%s344_s0] sm:$0xff]  ;;  %v136_v13 = vld [vmem:[%s344_s0 + $0x70] sm:$0xff] }
   0x8   :  { %135 = vst [vmem:[%s345_s1 + $0x60] sm:$0xff] %v49_v12  ;;  %137 = vst [vmem:[%s345_s1 + $0xd0] sm:$0xff] %v136_v13  ;;  %v140_v15 = vld [vmem:[%s344_s0 + $0xd8] sm:$0xff]  ;;  %v144_v17 = vld [vmem:[%s344_s0 + $0xc8] sm:$0xff] }
   0x9   :  { %139 = vst [vmem:[%s345_s1 + $0x8] sm:$0xff] %v138_v14  ;;  %v142_v16 = vld [vmem:[%s344_s0 + $0x58] sm:$0xff]  ;;  %141 = vst [vmem:[%s345_s1 + $0x78] sm:$0xff] %v140_v15  ;;  %v146_v18 = vld [vmem:[%s344_s0 + $0x48] sm:$0xff] }
   0xa   :  { %143 = vst [vmem:[%s345_s1 + $0x18] sm:$0xff] %v142_v16  ;;  %145 = vst [vmem:[%s345_s1 + $0x88] sm:$0xff] %v144_v17  ;;  %v148_v19 = vld [vmem:[%s344_s0 + $0xb8] sm:$0xff]  ;;  %v152_v21 = vld [vmem:[%s344_s0 + $0xa8] sm:$0xff] }
   0xb   :  { %v150_v20 = vld [vmem:[%s344_s0 + $0x38] sm:$0xff]  ;;  %147 = vst [vmem:[%s345_s1 + $0x28] sm:$0xff] %v146_v18  ;;  %149 = vst [vmem:[%s345_s1 + $0x98] sm:$0xff] %v148_v19  ;;  %v154_v22 = vld [vmem:[%s344_s0 + $0x28] sm:$0xff] }
   0xc   :  { %151 = vst [vmem:[%s345_s1 + $0x38] sm:$0xff] %v150_v20  ;;  %v156_v23 = vld [vmem:[%s344_s0 + $0x98] sm:$0xff]  ;;  %153 = vst [vmem:[%s345_s1 + $0xa8] sm:$0xff] %v152_v21  ;;  %v160_v25 = vld [vmem:[%s344_s0 + $0x88] sm:$0xff] }
   0xd   :  { %155 = vst [vmem:[%s345_s1 + $0x48] sm:$0xff] %v154_v22  ;;  %157 = vst [vmem:[%s345_s1 + $0xb8] sm:$0xff] %v156_v23  ;;  %v158_v24 = vld [vmem:[%s344_s0 + $0x18] sm:$0xff]  ;;  %v162_v26 = vld [vmem:[%s344_s0 + $0x8] sm:$0xff] }
   0xe   :  { %159 = vst [vmem:[%s345_s1 + $0x58] sm:$0xff] %v158_v24  ;;  %161 = vst [vmem:[%s345_s1 + $0xc8] sm:$0xff] %v160_v25  ;;  %v164_v27 = vld [vmem:[%s344_s0 + $0x78] sm:$0xff] }
   0xf   :  { %163 = vst [vmem:[%s345_s1 + $0x68] sm:$0xff] %v162_v26  ;;  %165 = vst [vmem:[%s345_s1 + $0xd8] sm:$0xff] %v164_v27 }

// kernel: fno2d_forward.11
= control target key start
LH: loop header
LB: loop body
LE: loop exit
PB: predicated region body
PF: predicated region fallthrough
CT: control target
= control target key end

     0   :  { %s7530_s9 = smov 0   ;;  %s8841_s0 = inlined_call_operand.vmem [shape: f32[128,4,32], index: 0, kind: input, shape index: {}]   ;;  %s8842_s1 = inlined_call_operand.vmem [shape: f32[128,32,64], index: 1, kind: input, shape index: {}]   ;;  %s8843_s2 = inlined_call_operand.vmem [shape: f32[128,2,64], index: 2, kind: output, shape index: {}]  }
   0x1 LB: > { %s6002_s10 = sadd.s32 4294967295, %s7508_s9   ;;  %p6006_p0 = scmp.ge.s32.totalorder %s7508_s9, 1  ;;  %s7508_s9 = sphi %s7530_s9, %s12_s9  }
   0x2   : > { %p125_p1 = scmp.lt.s32.totalorder %s7508_s9, 3 }
   0x4   : > { %p126_p2 = pnand %p6006_p0, %p125_p1 }
   0x5   : > { %s6007_s11 = sshll.u32 (!%p126_p2), %s6002_s10, 6  ;;  %v7510_v0 = vmov (!%p126_p2), 0.0|0.0   ;;  %vm7511_vm0 = vmmov (!%p126_p2), 0   ;;  %v7512_v1 = vmov (!%p126_p2), 0.0   ;;  %vm492_vm1 = vcmask (!%p126_p2), 261120   ;;  %s7513_s20 = smov (!%p126_p2), 96  }
   0x6   : > { %129 = sbr.rel (%p126_p2) target bundleno = 615 (0x267), region = 28  ;;  %7105 = vmatprep.subr.bf16.mxu0 (!%p126_p2), %v7510_v0  ;;  %7111 = vmatprep.subr.bf16.mxu1 (!%p126_p2), %v7510_v0  ;;  %p154_p3 = scmp.lt.s32.totalorder (!%p126_p2), %s6007_s11, 127  ;;  %vm5869_vm2 = vcmask (!%p126_p2), 517120  }
   0x7   : > { %6409 = vmatprep.mubr.msk.f32.mxu0 (!%p126_p2), %vm7511_vm0, %v7512_v1  ;;  %6420 = vmatprep.mubr.msk.f32.mxu1 (!%p126_p2), %vm7511_vm0, %v7512_v1  ;;  %s7514_s21 = smov (!%p126_p2), 32  }
   0xd   : > { %s8845_s11 = smov (!%p154_p3, %s6007_s11), 127 }
   0xe   : > { %s6080_s12 = sshll.u32 %s8845_s11, 5  ;;  %s6008_s16 = sshll.u32 %s8845_s11, 2 }
   0xf   : > { %s7550_s15 = scalar_lea.vmem %s8842_s1, %s6080_s12  ;;  %s7565_s19 = scalar_lea.vmem %s8841_s0, %s6008_s16 }
  0x10   : > { %v236_v2 = vld [vmem:[%s7550_s15] sm:$0xff]  ;;  %v237_v3 = vld [vmem:[%s7550_s15 + $0x8] sm:$0xff]  ;;  %v238_v7 = vld [vmem:[%s7550_s15 + $0x10] sm:$0xff]  ;;  %s6013_s22 = sshll.u32 %s8845_s11, 1 }
  0x11   : > { %v240_v4 = vld [vmem:[%s7550_s15 + $0x20] sm:$0xff]  ;;  %v7106_v5 = vpack.c.bf16 %v237_v3, %v236_v2  ;;  %v241_v6 = vld [vmem:[%s7550_s15 + $0x28] sm:$0xff]  ;;  %v239_v8 = vld [vmem:[%s7550_s15 + $0x18] sm:$0xff]  ;;  %s8351_s25 = scalar_lea.vmem %s8843_s2, %s6013_s22 }
  0x12   : > { %v7112_v9 = vpack.c.bf16 %v241_v6, %v240_v4  ;;  %v242_v10 = vld [vmem:[%s7550_s15 + $0x30] sm:$0xff]  ;;  %v243_v11 = vld [vmem:[%s7550_s15 + $0x38] sm:$0xff]  ;;  %v7109_v12 = vpack.c.bf16 %v239_v8, %v238_v7  ;;  %v244_v14 = vld [vmem:[%s7550_s15 + $0x40] sm:$0xff] }
  0x13   : > { %7107 = vmatpush3.bf16.msra.mxu0 %v7106_v5  ;;  %v7115_v13 = vpack.c.bf16 %v243_v11, %v242_v10  ;;  %v245_v15 = vld [vmem:[%s7550_s15 + $0x48] sm:$0xff]  ;;  %v248_v16 = vld [vmem:[%s7550_s15 + $0x60] sm:$0xff]  ;;  %v246_v22 = vld [vmem:[%s7550_s15 + $0x50] sm:$0xff] }
  0x14   : > { %7113 = vmatpush3.bf16.msra.mxu1 %v7112_v9  ;;  %7108 = vmatprep.subr.bf16.mxu0 %v7510_v0  ;;  %v249_v17 = vld [vmem:[%s7550_s15 + $0x68] sm:$0xff]  ;;  %v172_v18 = vld [vmem:[%s7565_s19] sm:$0xf]  ;;  %v7118_v19 = vpack.c.bf16 %v245_v15, %v244_v14  ;;  %v173_v20 = vld [vmem:[%s7565_s19 + $0x4] sm:$0xf] }
  0x15   : > { %7114 = vmatprep.subr.bf16.mxu1 %v7510_v0  ;;  %v7124_v21 = vpack.c.bf16 %v249_v17, %v248_v16  ;;  %v247_v23 = vld [vmem:[%s7550_s15 + $0x58] sm:$0xff]  ;;  %v250_v24 = vld [vmem:[%s7550_s15 + $0x70] sm:$0xff]  ;;  %v252_v28 = vld [vmem:[%s7550_s15 + $0x80] sm:$0xff] }
  0x16   : > { %v251_v25 = vld [vmem:[%s7550_s15 + $0x78] sm:$0xff]  ;;  %v7121_v26 = vpack.c.bf16 %v247_v23, %v246_v22  ;;  %v253_v29 = vld [vmem:[%s7550_s15 + $0x88] sm:$0xff]  ;;  %v256_v30 = vld [vmem:[%s7550_s15 + $0xa0] sm:$0xff] }
  0x17   : > { %7110 = vmatpush3.bf16.msra.mxu0 %v7109_v12  ;;  %v7127_v27 = vpack.c.bf16 %v251_v25, %v250_v24  ;;  %v257_v31 = vld [vmem:[%s7550_s15 + $0xa8] sm:$0xff]  ;;  %v7130_v33 = vpack.c.bf16 %v253_v29, %v252_v28  ;;  %v254_v36 = vld [vmem:[%s7550_s15 + $0x90] sm:$0xff]  ;;  %v255_v37 = vld [vmem:[%s7550_s15 + $0x98] sm:$0xff] }
  0x18   : > { %7116 = vmatpush3.bf16.msra.mxu1 %v7115_v13  ;;  %7117 = vmatprep.subr.bf16.mxu0 %v7510_v0  ;;  %v174_v32 = vld [vmem:[%s7565_s19 + $0x8] sm:$0xf]  ;;  %v175_v34 = vld [vmem:[%s7565_s19 + $0xc] sm:$0xf]  ;;  %v7136_v35 = vpack.c.bf16 %v257_v31, %v256_v30  ;;  %v258_v38 = vld [vmem:[%s7550_s15 + $0xb0] sm:$0xff]  ;;  %v7133_v40 = vpack.c.bf16 %v255_v37, %v254_v36 }
  0x19   : > { %7123 = vmatprep.subr.bf16.mxu1 %v7510_v0  ;;  %v259_v39 = vld [vmem:[%s7550_s15 + $0xb8] sm:$0xff]  ;;  %v260_v42 = vld [vmem:[%s7550_s15 + $0xc0] sm:$0xff]  ;;  %v261_v43 = vld [vmem:[%s7550_s15 + $0xc8] sm:$0xff] }
  0x1a   : > { %6410 = vmatmul.mubr.msk.f32.vlgmr.msra.gmra.mrb[0].mxu0 %vm492_vm1, %v172_v18  ;;  %v7139_v41 = vpack.c.bf16 %v259_v39, %v258_v38  ;;  %v264_v44 = vld [vmem:[%s7550_s15 + $0xe0] sm:$0xff]  ;;  %v265_v45 = vld [vmem:[%s7550_s15 + $0xe8] sm:$0xff]  ;;  %v176_v46 = vld [vmem:[%s7565_s19 + $0x10] sm:$0xf]  ;;  %v7142_v47 = vpack.c.bf16 %v261_v43, %v260_v42 }
  0x1b   : > { %6421 = vmatmul.mubr.msk.f32.vlgmr.msra.gmra.mrb[0].mxu1 %vm492_vm1, %v173_v20  ;;  %7119 = vmatpush3.bf16.msra.mxu0 %v7118_v19  ;;  %v177_v48 = vld [vmem:[%s7565_s19 + $0x14] sm:$0xf]  ;;  %v7148_v49 = vpack.c.bf16 %v265_v45, %v264_v44  ;;  %v263_v51 = vld [vmem:[%s7550_s15 + $0xd8] sm:$0xff]  ;;  %v268_v56 = vld [vmem:[%s7550_s15 + $0x100] sm:$0xff] }
  0x1c   : > { %7120 = vmatprep.subr.bf16.mxu0 %v7510_v0  ;;  %7125 = vmatpush3.bf16.msra.mxu1 %v7124_v21  ;;  %v262_v50 = vld [vmem:[%s7550_s15 + $0xd0] sm:$0xff]  ;;  %v267_v53 = vld [vmem:[%s7550_s15 + $0xf8] sm:$0xff]  ;;  %v269_v57 = vld [vmem:[%s7550_s15 + $0x108] sm:$0xff] }
  0x1d   : > { %6431 = vmatprep.mubr.msk.f32.mxu0 %vm7511_vm0, %v7512_v1  ;;  %7126 = vmatprep.subr.bf16.mxu1 %v7510_v0  ;;  %v266_v52 = vld [vmem:[%s7550_s15 + $0xf0] sm:$0xff]  ;;  %v7145_v54 = vpack.c.bf16 %v263_v51, %v262_v50  ;;  %v272_v58 = vld [vmem:[%s7550_s15 + $0x120] sm:$0xff]  ;;  %v273_v59 = vld [vmem:[%s7550_s15 + $0x128] sm:$0xff]  ;;  %v7154_v61 = vpack.c.bf16 %v269_v57, %v268_v56 }
  0x1e   : > { %6442 = vmatprep.mubr.msk.f32.mxu1 %vm7511_vm0, %v7512_v1  ;;  %v7151_v55 = vpack.c.bf16 %v267_v53, %v266_v52  ;;  %v178_v60 = vld [vmem:[%s7565_s19 + $0x18] sm:$0xf]  ;;  %v179_v62 = vld [vmem:[%s7565_s19 + $0x1c] sm:$0xf]  ;;  %v7160_v63 = vpack.c.bf16 %v273_v59, %v272_v58  ;;  %v270_v2 = vld [vmem:[%s7550_s15 + $0x110] sm:$0xff] }
  0x1f   : > { %7122 = vmatpush3.bf16.msra.mxu0 %v7121_v26  ;;  %v271_v3 = vld [vmem:[%s7550_s15 + $0x118] sm:$0xff]  ;;  %v274_v4 = vld [vmem:[%s7550_s15 + $0x130] sm:$0xff]  ;;  %v276_v8 = vld [vmem:[%s7550_s15 + $0x140] sm:$0xff] }
  0x20   : > { %7128 = vmatpush3.bf16.msra.mxu1 %v7127_v27  ;;  %7129 = vmatprep.subr.bf16.mxu0 %v7510_v0  ;;  %v275_v5 = vld [vmem:[%s7550_s15 + $0x138] sm:$0xff]  ;;  %v7157_v6 = vpack.c.bf16 %v271_v3, %v270_v2  ;;  %v277_v9 = vld [vmem:[%s7550_s15 + $0x148] sm:$0xff]  ;;  %v280_v10 = vld [vmem:[%s7550_s15 + $0x160] sm:$0xff] }
  0x21   : > { %7135 = vmatprep.subr.bf16.mxu1 %v7510_v0  ;;  %v7163_v7 = vpack.c.bf16 %v275_v5, %v274_v4  ;;  %v281_v11 = vld [vmem:[%s7550_s15 + $0x168] sm:$0xff]  ;;  %v180_v12 = vld [vmem:[%s7565_s19 + $0x20] sm:$0xf]  ;;  %v7166_v13 = vpack.c.bf16 %v277_v9, %v276_v8  ;;  %v181_v14 = vld [vmem:[%s7565_s19 + $0x24] sm:$0xf] }
  0x22   : > { %6432 = vmatmul.mubr.msk.f32.vlgmr.msra.gmra.mrb[2].mxu0 %vm492_vm1, %v174_v32  ;;  %v7172_v15 = vpack.c.bf16 %v281_v11, %v280_v10  ;;  %v278_v16 = vld [vmem:[%s7550_s15 + $0x150] sm:$0xff]  ;;  %v279_v17 = vld [vmem:[%s7550_s15 + $0x158] sm:$0xff]  ;;  %v284_v22 = vld [vmem:[%s7550_s15 + $0x180] sm:$0xff] }
  0x23   : > { %7131 = vmatpush3.bf16.msra.mxu0 %v7130_v33  ;;  %6443 = vmatmul.mubr.msk.f32.vlgmr.msra.gmra.mrb[2].mxu1 %vm492_vm1, %v175_v34  ;;  %v282_v18 = vld [vmem:[%s7550_s15 + $0x170] sm:$0xff]  ;;  %v283_v19 = vld [vmem:[%s7550_s15 + $0x178] sm:$0xff]  ;;  %v7169_v20 = vpack.c.bf16 %v279_v17, %v278_v16  ;;  %v285_v23 = vld [vmem:[%s7550_s15 + $0x188] sm:$0xff] }
  0x24   : > { %7132 = vmatprep.subr.bf16.mxu0 %v7510_v0  ;;  %7137 = vmatpush3.bf16.msra.mxu1 %v7136_v35  ;;  %v7175_v21 = vpack.c.bf16 %v283_v19, %v282_v18  ;;  %v288_v24 = vld [vmem:[%s7550_s15 + $0x1a0] sm:$0xff]  ;;  %v289_v25 = vld [vmem:[%s7550_s15 + $0x1a8] sm:$0xff]  ;;  %v7178_v27 = vpack.c.bf16 %v285_v23, %v284_v22  ;;  %v286_v30 = vld [vmem:[%s7550_s15 + $0x190] sm:$0xff] }
  0x25   : > { %6453 = vmatprep.mubr.msk.f32.mxu0 %vm7511_vm0, %v7512_v1  ;;  %7138 = vmatprep.subr.bf16.mxu1 %v7510_v0  ;;  %v182_v26 = vld [vmem:[%s7565_s19 + $0x28] sm:$0xf]  ;;  %v183_v28 = vld [vmem:[%s7565_s19 + $0x2c] sm:$0xf]  ;;  %v7184_v29 = vpack.c.bf16 %v289_v25, %v288_v24  ;;  %v287_v31 = vld [vmem:[%s7550_s15 + $0x198] sm:$0xff] }
  0x26   : > { %6464 = vmatprep.mubr.msk.f32.mxu1 %vm7511_vm0, %v7512_v1  ;;  %v290_v32 = vld [vmem:[%s7550_s15 + $0x1b0] sm:$0xff]  ;;  %v291_v33 = vld [vmem:[%s7550_s15 + $0x1b8] sm:$0xff]  ;;  %v7181_v34 = vpack.c.bf16 %v287_v31, %v286_v30  ;;  %v292_v36 = vld [vmem:[%s7550_s15 + $0x1c0] sm:$0xff] }
  0x27   : > { %7134 = vmatpush3.bf16.msra.mxu0 %v7133_v40  ;;  %v7187_v35 = vpack.c.bf16 %v291_v33, %v290_v32  ;;  %v293_v37 = vld [vmem:[%s7550_s15 + $0x1c8] sm:$0xff]  ;;  %v296_v38 = vld [vmem:[%s7550_s15 + $0x1e0] sm:$0xff]  ;;  %v184_v40 = vld [vmem:[%s7565_s19 + $0x30] sm:$0xf] }
  0x28   : > { %7140 = vmatpush3.bf16.msra.mxu1 %v7139_v41  ;;  %7141 = vmatprep.subr.bf16.mxu0 %v7510_v0  ;;  %v297_v39 = vld [vmem:[%s7550_s15 + $0x1e8] sm:$0xff]  ;;  %v7190_v41 = vpack.c.bf16 %v293_v37, %v292_v36  ;;  %v185_v42 = vld [vmem:[%s7565_s19 + $0x34] sm:$0xf]  ;;  %v295_v45 = vld [vmem:[%s7550_s15 + $0x1d8] sm:$0xff] }
  0x29   : > { %7147 = vmatprep.subr.bf16.mxu1 %v7510_v0  ;;  %v7196_v43 = vpack.c.bf16 %v297_v39, %v296_v38  ;;  %v294_v44 = vld [vmem:[%s7550_s15 + $0x1d0] sm:$0xff]  ;;  %v300_v50 = vld [vmem:[%s7550_s15 + $0x200] sm:$0xff]  ;;  %v301_v51 = vld [vmem:[%s7550_s15 + $0x208] sm:$0xff] }
  0x2a   : > { %6454 = vmatmul.mubr.msk.f32.vlgmr.msra.gmra.mrb[4].mxu0 %vm492_vm1, %v176_v46  ;;  %v298_v46 = vld [vmem:[%s7550_s15 + $0x1f0] sm:$0xff]  ;;  %v304_v52 = vld [vmem:[%s7550_s15 + $0x220] sm:$0xff]  ;;  %v305_v53 = vld [vmem:[%s7550_s15 + $0x228] sm:$0xff] }
  0x2b   : > { %7143 = vmatpush3.bf16.msra.mxu0 %v7142_v47  ;;  %6465 = vmatmul.mubr.msk.f32.vlgmr.msra.gmra.mrb[4].mxu1 %vm492_vm1, %v177_v48  ;;  %v299_v47 = vld [vmem:[%s7550_s15 + $0x1f8] sm:$0xff]  ;;  %v7193_v48 = vpack.c.bf16 %v295_v45, %v294_v44  ;;  %v7208_v57 = vpack.c.bf16 %v305_v53, %v304_v52  ;;  %v302_v58 = vld [vmem:[%s7550_s15 + $0x210] sm:$0xff]  ;;  %v308_v2 = vld [vmem:[%s7550_s15 + $0x240] sm:$0xff] }
  0x2c   : > { %7144 = vmatprep.subr.bf16.mxu0 %v7510_v0  ;;  %7149 = vmatpush3.bf16.msra.mxu1 %v7148_v49  ;;  %v7199_v49 = vpack.c.bf16 %v299_v47, %v298_v46  ;;  %v187_v56 = vld [vmem:[%s7565_s19 + $0x3c] sm:$0xf]  ;;  %v309_v3 = vld [vmem:[%s7550_s15 + $0x248] sm:$0xff]  ;;  %v312_v4 = vld [vmem:[%s7550_s15 + $0x260] sm:$0xff] }
  0x2d   : > { %6475 = vmatprep.mubr.msk.f32.mxu0 %vm7511_vm0, %v7512_v1  ;;  %7150 = vmatprep.subr.bf16.mxu1 %v7510_v0  ;;  %v303_v59 = vld [vmem:[%s7550_s15 + $0x218] sm:$0xff]  ;;  %v313_v5 = vld [vmem:[%s7550_s15 + $0x268] sm:$0xff]  ;;  %v189_v8 = vld [vmem:[%s7565_s19 + $0x44] sm:$0xf] }
  0x2e   : > { %6486 = vmatprep.mubr.msk.f32.mxu1 %vm7511_vm0, %v7512_v1  ;;  %v7220_v9 = vpack.c.bf16 %v313_v5, %v312_v4  ;;  %v310_v10 = vld [vmem:[%s7550_s15 + $0x250] sm:$0xff]  ;;  %v311_v11 = vld [vmem:[%s7550_s15 + $0x258] sm:$0xff]  ;;  %v316_v16 = vld [vmem:[%s7550_s15 + $0x280] sm:$0xff] }
  0x2f   : > { %7146 = vmatpush3.bf16.msra.mxu0 %v7145_v54  ;;  %v186_v54 = vld [vmem:[%s7565_s19 + $0x38] sm:$0xf]  ;;  %v317_v17 = vld [vmem:[%s7550_s15 + $0x288] sm:$0xff]  ;;  %v320_v18 = vld [vmem:[%s7550_s15 + $0x2a0] sm:$0xff] }
  0x30   : > { %7152 = vmatpush3.bf16.msra.mxu1 %v7151_v55  ;;  %7153 = vmatprep.subr.bf16.mxu0 %v7510_v0  ;;  %v7202_v55 = vpack.c.bf16 %v301_v51, %v300_v50  ;;  %v321_v19 = vld [vmem:[%s7550_s15 + $0x2a8] sm:$0xff]  ;;  %v318_v24 = vld [vmem:[%s7550_s15 + $0x290] sm:$0xff]  ;;  %v319_v25 = vld [vmem:[%s7550_s15 + $0x298] sm:$0xff] }
  0x31   : > { %7159 = vmatprep.subr.bf16.mxu1 %v7510_v0  ;;  %v191_v22 = vld [vmem:[%s7565_s19 + $0x4c] sm:$0xf]  ;;  %v7232_v23 = vpack.c.bf16 %v321_v19, %v320_v18  ;;  %v324_v30 = vld [vmem:[%s7550_s15 + $0x2c0] sm:$0xff]  ;;  %v193_v36 = vld [vmem:[%s7565_s19 + $0x54] sm:$0xf] }
  0x32   : > { %6476 = vmatmul.mubr.msk.f32.vlgmr.msra.gmra.mrb[6].mxu0 %vm492_vm1, %v178_v60  ;;  %v306_v60 = vld [vmem:[%s7550_s15 + $0x230] sm:$0xff]  ;;  %v325_v31 = vld [vmem:[%s7550_s15 + $0x2c8] sm:$0xff]  ;;  %v328_v32 = vld [vmem:[%s7550_s15 + $0x2e0] sm:$0xff] }
  0x33   : > { %7155 = vmatpush3.bf16.msra.mxu0 %v7154_v61  ;;  %6487 = vmatmul.mubr.msk.f32.vlgmr.msra.gmra.mrb[6].mxu1 %vm492_vm1, %v179_v62  ;;  %v307_v61 = vld [vmem:[%s7550_s15 + $0x238] sm:$0xff]  ;;  %v7205_v62 = vpack.c.bf16 %v303_v59, %v302_v58  ;;  %v329_v33 = vld [vmem:[%s7550_s15 + $0x2e8] sm:$0xff]  ;;  %v326_v38 = vld [vmem:[%s7550_s15 + $0x2d0] sm:$0xff] }
  0x34   : > { %7156 = vmatprep.subr.bf16.mxu0 %v7510_v0  ;;  %7161 = vmatpush3.bf16.msra.mxu1 %v7160_v63  ;;  %v7211_v63 = vpack.c.bf16 %v307_v61, %v306_v60  ;;  %v7244_v37 = vpack.c.bf16 %v329_v33, %v328_v32  ;;  %v327_v39 = vld [vmem:[%s7550_s15 + $0x2d8] sm:$0xff]  ;;  %v332_v44 = vld [vmem:[%s7550_s15 + $0x300] sm:$0xff]  ;;  %v333_v45 = vld [vmem:[%s7550_s15 + $0x308] sm:$0xff] }
  0x35   : > { %6497 = vmatprep.mubr.msk.f32.mxu0 %vm7511_vm0, %v7512_v1  ;;  %7162 = vmatprep.subr.bf16.mxu1 %v7510_v0  ;;  %v336_v46 = vld [vmem:[%s7550_s15 + $0x320] sm:$0xff]  ;;  %v337_v47 = vld [vmem:[%s7550_s15 + $0x328] sm:$0xff]  ;;  %v195_v50 = vld [vmem:[%s7565_s19 + $0x5c] sm:$0xf] }
  0x36   : > { %6508 = vmatprep.mubr.msk.f32.mxu1 %vm7511_vm0, %v7512_v1  ;;  %v7256_v51 = vpack.c.bf16 %v337_v47, %v336_v46  ;;  %v334_v52 = vld [vmem:[%s7550_s15 + $0x310] sm:$0xff]  ;;  %v335_v53 = vld [vmem:[%s7550_s15 + $0x318] sm:$0xff]  ;;  %v340_v58 = vld [vmem:[%s7550_s15 + $0x340] sm:$0xff] }
  0x37   : > { %7158 = vmatpush3.bf16.msra.mxu0 %v7157_v6  ;;  %v188_v6 = vld [vmem:[%s7565_s19 + $0x40] sm:$0xf]  ;;  %v341_v59 = vld [vmem:[%s7550_s15 + $0x348] sm:$0xff]  ;;  %v342_v4 = vld [vmem:[%s7550_s15 + $0x350] sm:$0xff] }
  0x38   : > { %7164 = vmatpush3.bf16.msra.mxu1 %v7163_v7  ;;  %7165 = vmatprep.subr.bf16.mxu0 %v7510_v0  ;;  %v7214_v7 = vpack.c.bf16 %v309_v3, %v308_v2  ;;  %v344_v60 = vld [vmem:[%s7550_s15 + $0x360] sm:$0xff]  ;;  %v345_v61 = vld [vmem:[%s7550_s15 + $0x368] sm:$0xff]  ;;  %v343_v5 = vld [vmem:[%s7550_s15 + $0x358] sm:$0xff] }
  0x39   : > { %7171 = vmatprep.subr.bf16.mxu1 %v7510_v0  ;;  %v197_v2 = vld [vmem:[%s7565_s19 + $0x64] sm:$0xf]  ;;  %v7268_v3 = vpack.c.bf16 %v345_v61, %v344_v60  ;;  %v350_v18 = vld [vmem:[%s7550_s15 + $0x390] sm:$0xff]  ;;  %v351_v19 = vld [vmem:[%s7550_s15 + $0x398] sm:$0xff] }
  0x3a   : > { %6498 = vmatmul.mubr.msk.f32.vlgmr.msra.gmra.mrb[8].mxu0 %vm492_vm1, %v180_v12  ;;  %v314_v12 = vld [vmem:[%s7550_s15 + $0x270] sm:$0xff]  ;;  %v359_v33 = vld [vmem:[%s7550_s15 + $0x3d8] sm:$0xff] }
  0x3b   : > { %7167 = vmatpush3.bf16.msra.mxu0 %v7166_v13  ;;  %6509 = vmatmul.mubr.msk.f32.vlgmr.msra.gmra.mrb[8].mxu1 %vm492_vm1, %v181_v14  ;;  %v315_v13 = vld [vmem:[%s7550_s15 + $0x278] sm:$0xff]  ;;  %v7217_v14 = vpack.c.bf16 %v311_v11, %v310_v10  ;;  %v348_v10 = vld [vmem:[%s7550_s15 + $0x380] sm:$0xff]  ;;  %v349_v11 = vld [vmem:[%s7550_s15 + $0x388] sm:$0xff] }
  0x3c   : > { %7168 = vmatprep.subr.bf16.mxu0 %v7510_v0  ;;  %7173 = vmatpush3.bf16.msra.mxu1 %v7172_v15  ;;  %v7223_v15 = vpack.c.bf16 %v315_v13, %v314_v12  ;;  %v352_v12 = vld [vmem:[%s7550_s15 + $0x3a0] sm:$0xff]  ;;  %v353_v13 = vld [vmem:[%s7550_s15 + $0x3a8] sm:$0xff]  ;;  %v358_v32 = vld [vmem:[%s7550_s15 + $0x3d0] sm:$0xff] }
  0x3d   : > { %6519 = vmatprep.mubr.msk.f32.mxu0 %vm7511_vm0, %v7512_v1  ;;  %7174 = vmatprep.subr.bf16.mxu1 %v7510_v0  ;;  %v366_v46 = vld [vmem:[%s7550_s15 + $0x410] sm:$0xff]  ;;  %v367_v47 = vld [vmem:[%s7550_s15 + $0x418] sm:$0xff] }
  0x3e   : > { %6530 = vmatprep.mubr.msk.f32.mxu1 %vm7511_vm0, %v7512_v1  ;;  %v374_v60 = vld [vmem:[%s7550_s15 + $0x450] sm:$0xff]  ;;  %v375_v61 = vld [vmem:[%s7550_s15 + $0x458] sm:$0xff] }
  0x3f   : > { %7170 = vmatpush3.bf16.msra.mxu0 %v7169_v20  ;;  %v190_v20 = vld [vmem:[%s7565_s19 + $0x48] sm:$0xf] }
  0x40   : > { %7176 = vmatpush3.bf16.msra.mxu1 %v7175_v21  ;;  %7177 = vmatprep.subr.bf16.mxu0 %v7510_v0  ;;  %v7226_v21 = vpack.c.bf16 %v317_v17, %v316_v16  ;;  %v199_v16 = vld [vmem:[%s7565_s19 + $0x6c] sm:$0xf]  ;;  %v7280_v17 = vpack.c.bf16 %v353_v13, %v352_v12  ;;  %v382_v12 = vld [vmem:[%s7550_s15 + $0x490] sm:$0xff]  ;;  %v383_v13 = vld [vmem:[%s7550_s15 + $0x498] sm:$0xff] }
  0x41   : > { %7183 = vmatprep.subr.bf16.mxu1 %v7510_v0 }
  0x42   : > { %6520 = vmatmul.mubr.msk.f32.vlgmr.msra.gmra.mrb[10].mxu0 %vm492_vm1, %v182_v26  ;;  %v322_v26 = vld [vmem:[%s7550_s15 + $0x2b0] sm:$0xff] }
  0x43   : > { %7179 = vmatpush3.bf16.msra.mxu0 %v7178_v27  ;;  %6531 = vmatmul.mubr.msk.f32.vlgmr.msra.gmra.mrb[10].mxu1 %vm492_vm1, %v183_v28  ;;  %v323_v27 = vld [vmem:[%s7550_s15 + $0x2b8] sm:$0xff]  ;;  %v7229_v28 = vpack.c.bf16 %v319_v25, %v318_v24  ;;  %v356_v24 = vld [vmem:[%s7550_s15 + $0x3c0] sm:$0xff]  ;;  %v357_v25 = vld [vmem:[%s7550_s15 + $0x3c8] sm:$0xff] }
  0x44   : > { %7180 = vmatprep.subr.bf16.mxu0 %v7510_v0  ;;  %7185 = vmatpush3.bf16.msra.mxu1 %v7184_v29  ;;  %v7235_v29 = vpack.c.bf16 %v323_v27, %v322_v26  ;;  %v360_v26 = vld [vmem:[%s7550_s15 + $0x3e0] sm:$0xff]  ;;  %v361_v27 = vld [vmem:[%s7550_s15 + $0x3e8] sm:$0xff] }
  0x45   : > { %6541 = vmatprep.mubr.msk.f32.mxu0 %vm7511_vm0, %v7512_v1  ;;  %7186 = vmatprep.subr.bf16.mxu1 %v7510_v0 }
  0x46   : > { %6552 = vmatprep.mubr.msk.f32.mxu1 %vm7511_vm0, %v7512_v1 }
  0x47   : > { %7182 = vmatpush3.bf16.msra.mxu0 %v7181_v34  ;;  %v192_v34 = vld [vmem:[%s7565_s19 + $0x50] sm:$0xf] }
  0x48   : > { %7188 = vmatpush3.bf16.msra.mxu1 %v7187_v35  ;;  %7189 = vmatprep.subr.bf16.mxu0 %v7510_v0  ;;  %v7238_v35 = vpack.c.bf16 %v325_v31, %v324_v30  ;;  %v201_v30 = vld [vmem:[%s7565_s19 + $0x74] sm:$0xf]  ;;  %v7292_v31 = vpack.c.bf16 %v361_v27, %v360_v26  ;;  %v391_v27 = vld [vmem:[%s7550_s15 + $0x4d8] sm:$0xff] }
  0x49   : > { %7195 = vmatprep.subr.bf16.mxu1 %v7510_v0  ;;  %v390_v26 = vld [vmem:[%s7550_s15 + $0x4d0] sm:$0xff] }
  0x4a   : > { %6542 = vmatmul.mubr.msk.f32.vlgmr.msra.gmra.mrb[12].mxu0 %vm492_vm1, %v184_v40  ;;  %v330_v40 = vld [vmem:[%s7550_s15 + $0x2f0] sm:$0xff] }
  0x4b   : > { %7191 = vmatpush3.bf16.msra.mxu0 %v7190_v41  ;;  %6553 = vmatmul.mubr.msk.f32.vlgmr.msra.gmra.mrb[12].mxu1 %vm492_vm1, %v185_v42  ;;  %v331_v41 = vld [vmem:[%s7550_s15 + $0x2f8] sm:$0xff]  ;;  %v7241_v42 = vpack.c.bf16 %v327_v39, %v326_v38  ;;  %v364_v38 = vld [vmem:[%s7550_s15 + $0x400] sm:$0xff]  ;;  %v365_v39 = vld [vmem:[%s7550_s15 + $0x408] sm:$0xff] }
  0x4c   : > { %7192 = vmatprep.subr.bf16.mxu0 %v7510_v0  ;;  %7197 = vmatpush3.bf16.msra.mxu1 %v7196_v43  ;;  %v7247_v43 = vpack.c.bf16 %v331_v41, %v330_v40  ;;  %v368_v40 = vld [vmem:[%s7550_s15 + $0x420] sm:$0xff]  ;;  %v369_v41 = vld [vmem:[%s7550_s15 + $0x428] sm:$0xff] }
  0x4d   : > { %6563 = vmatprep.mubr.msk.f32.mxu0 %vm7511_vm0, %v7512_v1  ;;  %7198 = vmatprep.subr.bf16.mxu1 %v7510_v0 }
  0x4e   : > { %6574 = vmatprep.mubr.msk.f32.mxu1 %vm7511_vm0, %v7512_v1 }
  0x4f   : > { %7194 = vmatpush3.bf16.msra.mxu0 %v7193_v48  ;;  %v194_v48 = vld [vmem:[%s7565_s19 + $0x58] sm:$0xf] }
  0x50   : > { %7200 = vmatpush3.bf16.msra.mxu1 %v7199_v49  ;;  %7201 = vmatprep.subr.bf16.mxu0 %v7510_v0  ;;  %v7250_v49 = vpack.c.bf16 %v333_v45, %v332_v44  ;;  %v203_v44 = vld [vmem:[%s7565_s19 + $0x7c] sm:$0xf]  ;;  %v7304_v45 = vpack.c.bf16 %v369_v41, %v368_v40  ;;  %v398_v40 = vld [vmem:[%s7550_s15 + $0x510] sm:$0xff] }
  0x51   : > { %7207 = vmatprep.subr.bf16.mxu1 %v7510_v0  ;;  %v399_v41 = vld [vmem:[%s7550_s15 + $0x518] sm:$0xff] }
  0x52   : > { %6564 = vmatmul.mubr.msk.f32.vlgmr.msra.gmra.mrb[14].mxu0 %vm492_vm1, %v186_v54  ;;  %v338_v54 = vld [vmem:[%s7550_s15 + $0x330] sm:$0xff] }
  0x53   : > { %7203 = vmatpush3.bf16.msra.mxu0 %v7202_v55  ;;  %6575 = vmatmul.mubr.msk.f32.vlgmr.msra.gmra.mrb[14].mxu1 %vm492_vm1, %v187_v56  ;;  %v339_v55 = vld [vmem:[%s7550_s15 + $0x338] sm:$0xff]  ;;  %v7253_v56 = vpack.c.bf16 %v335_v53, %v334_v52  ;;  %v372_v52 = vld [vmem:[%s7550_s15 + $0x440] sm:$0xff]  ;;  %v373_v53 = vld [vmem:[%s7550_s15 + $0x448] sm:$0xff] }
  0x54   : > { %7204 = vmatprep.subr.bf16.mxu0 %v7510_v0  ;;  %7209 = vmatpush3.bf16.msra.mxu1 %v7208_v57  ;;  %v7259_v57 = vpack.c.bf16 %v339_v55, %v338_v54  ;;  %v376_v54 = vld [vmem:[%s7550_s15 + $0x460] sm:$0xff]  ;;  %v377_v55 = vld [vmem:[%s7550_s15 + $0x468] sm:$0xff] }
  0x55   : > { %6585 = vmatprep.mubr.msk.f32.mxu0 %vm7511_vm0, %v7512_v1  ;;  %7210 = vmatprep.subr.bf16.mxu1 %v7510_v0 }
  0x56   : > { %6596 = vmatprep.mubr.msk.f32.mxu1 %vm7511_vm0, %v7512_v1 }
  0x57   : > { %7206 = vmatpush3.bf16.msra.mxu0 %v7205_v62  ;;  %v196_v62 = vld [vmem:[%s7565_s19 + $0x60] sm:$0xf] }
  0x58   : > { %7212 = vmatpush3.bf16.msra.mxu1 %v7211_v63  ;;  %7213 = vmatprep.subr.bf16.mxu0 %v7510_v0  ;;  %v7262_v63 = vpack.c.bf16 %v341_v59, %v340_v58  ;;  %v205_v58 = vld [vmem:[%s7565_s19 + $0x84] sm:$0xf]  ;;  %v7316_v59 = vpack.c.bf16 %v377_v55, %v376_v54  ;;  %v406_v54 = vld [vmem:[%s7550_s15 + $0x550] sm:$0xff]  ;;  %v407_v55 = vld [vmem:[%s7550_s15 + $0x558] sm:$0xff] }
  0x59   : > { %7219 = vmatprep.subr.bf16.mxu1 %v7510_v0 }
  0x5a   : > { %6586 = vmatmul.mubr.msk.f32.vlgmr.msra.gmra.mrb[16].mxu0 %vm492_vm1, %v188_v6  ;;  %v346_v6 = vld [vmem:[%s7550_s15 + $0x370] sm:$0xff] }
  0x5b   : > { %7215 = vmatpush3.bf16.msra.mxu0 %v7214_v7  ;;  %6597 = vmatmul.mubr.msk.f32.vlgmr.msra.gmra.mrb[16].mxu1 %vm492_vm1, %v189_v8  ;;  %v347_v7 = vld [vmem:[%s7550_s15 + $0x378] sm:$0xff]  ;;  %v7265_v8 = vpack.c.bf16 %v343_v5, %v342_v4  ;;  %v380_v4 = vld [vmem:[%s7550_s15 + $0x480] sm:$0xff]  ;;  %v381_v5 = vld [vmem:[%s7550_s15 + $0x488] sm:$0xff] }
  0x5c   : > { %7216 = vmatprep.subr.bf16.mxu0 %v7510_v0  ;;  %7221 = vmatpush3.bf16.msra.mxu1 %v7220_v9  ;;  %v7271_v9 = vpack.c.bf16 %v347_v7, %v346_v6  ;;  %v384_v6 = vld [vmem:[%s7550_s15 + $0x4a0] sm:$0xff]  ;;  %v385_v7 = vld [vmem:[%s7550_s15 + $0x4a8] sm:$0xff] }
  0x5d   : > { %6607 = vmatprep.mubr.msk.f32.mxu0 %vm7511_vm0, %v7512_v1  ;;  %7222 = vmatprep.subr.bf16.mxu1 %v7510_v0 }
  0x5e   : > { %6618 = vmatprep.mubr.msk.f32.mxu1 %vm7511_vm0, %v7512_v1 }
  0x5f   : > { %7218 = vmatpush3.bf16.msra.mxu0 %v7217_v14  ;;  %v198_v14 = vld [vmem:[%s7565_s19 + $0x68] sm:$0xf] }
  0x60   : > { %7224 = vmatpush3.bf16.msra.mxu1 %v7223_v15  ;;  %7225 = vmatprep.subr.bf16.mxu0 %v7510_v0  ;;  %v7274_v15 = vpack.c.bf16 %v349_v11, %v348_v10  ;;  %v207_v10 = vld [vmem:[%s7565_s19 + $0x8c] sm:$0xf]  ;;  %v7328_v11 = vpack.c.bf16 %v385_v7, %v384_v6  ;;  %v414_v6 = vld [vmem:[%s7550_s15 + $0x590] sm:$0xff]  ;;  %v415_v7 = vld [vmem:[%s7550_s15 + $0x598] sm:$0xff] }
  0x61   : > { %7231 = vmatprep.subr.bf16.mxu1 %v7510_v0 }
  0x62   : > { %6608 = vmatmul.mubr.msk.f32.vlgmr.msra.gmra.mrb[18].mxu0 %vm492_vm1, %v190_v20  ;;  %v354_v20 = vld [vmem:[%s7550_s15 + $0x3b0] sm:$0xff] }
  0x63   : > { %7227 = vmatpush3.bf16.msra.mxu0 %v7226_v21  ;;  %6619 = vmatmul.mubr.msk.f32.vlgmr.msra.gmra.mrb[18].mxu1 %vm492_vm1, %v191_v22  ;;  %v355_v21 = vld [vmem:[%s7550_s15 + $0x3b8] sm:$0xff]  ;;  %v7277_v22 = vpack.c.bf16 %v351_v19, %v350_v18  ;;  %v388_v18 = vld [vmem:[%s7550_s15 + $0x4c0] sm:$0xff]  ;;  %v389_v19 = vld [vmem:[%s7550_s15 + $0x4c8] sm:$0xff] }
  0x64   : > { %7228 = vmatprep.subr.bf16.mxu0 %v7510_v0  ;;  %7233 = vmatpush3.bf16.msra.mxu1 %v7232_v23  ;;  %v7283_v23 = vpack.c.bf16 %v355_v21, %v354_v20  ;;  %v392_v20 = vld [vmem:[%s7550_s15 + $0x4e0] sm:$0xff]  ;;  %v393_v21 = vld [vmem:[%s7550_s15 + $0x4e8] sm:$0xff] }
  0x65   : > { %6629 = vmatprep.mubr.msk.f32.mxu0 %vm7511_vm0, %v7512_v1  ;;  %7234 = vmatprep.subr.bf16.mxu1 %v7510_v0 }
  0x66   : > { %6640 = vmatprep.mubr.msk.f32.mxu1 %vm7511_vm0, %v7512_v1 }
  0x67   : > { %7230 = vmatpush3.bf16.msra.mxu0 %v7229_v28  ;;  %v200_v28 = vld [vmem:[%s7565_s19 + $0x70] sm:$0xf] }
  0x68   : > { %7236 = vmatpush3.bf16.msra.mxu1 %v7235_v29  ;;  %7237 = vmatprep.subr.bf16.mxu0 %v7510_v0  ;;  %v7286_v29 = vpack.c.bf16 %v357_v25, %v356_v24  ;;  %v209_v24 = vld [vmem:[%s7565_s19 + $0x94] sm:$0xf]  ;;  %v7340_v25 = vpack.c.bf16 %v393_v21, %v392_v20  ;;  %v423_v21 = vld [vmem:[%s7550_s15 + $0x5d8] sm:$0xff] }
  0x69   : > { %7243 = vmatprep.subr.bf16.mxu1 %v7510_v0  ;;  %v422_v20 = vld [vmem:[%s7550_s15 + $0x5d0] sm:$0xff] }
  0x6a   : > { %6630 = vmatmul.mubr.msk.f32.vlgmr.msra.gmra.mrb[20].mxu0 %vm492_vm1, %v192_v34  ;;  %v362_v34 = vld [vmem:[%s7550_s15 + $0x3f0] sm:$0xff] }
  0x6b   : > { %7239 = vmatpush3.bf16.msra.mxu0 %v7238_v35  ;;  %6641 = vmatmul.mubr.msk.f32.vlgmr.msra.gmra.mrb[20].mxu1 %vm492_vm1, %v193_v36  ;;  %v363_v35 = vld [vmem:[%s7550_s15 + $0x3f8] sm:$0xff]  ;;  %v7289_v36 = vpack.c.bf16 %v359_v33, %v358_v32  ;;  %v396_v32 = vld [vmem:[%s7550_s15 + $0x500] sm:$0xff]  ;;  %v397_v33 = vld [vmem:[%s7550_s15 + $0x508] sm:$0xff] }
  0x6c   : > { %7240 = vmatprep.subr.bf16.mxu0 %v7510_v0  ;;  %7245 = vmatpush3.bf16.msra.mxu1 %v7244_v37  ;;  %v7295_v37 = vpack.c.bf16 %v363_v35, %v362_v34  ;;  %v400_v34 = vld [vmem:[%s7550_s15 + $0x520] sm:$0xff]  ;;  %v401_v35 = vld [vmem:[%s7550_s15 + $0x528] sm:$0xff] }
  0x6d   : > { %6651 = vmatprep.mubr.msk.f32.mxu0 %vm7511_vm0, %v7512_v1  ;;  %7246 = vmatprep.subr.bf16.mxu1 %v7510_v0 }
  0x6e   : > { %6662 = vmatprep.mubr.msk.f32.mxu1 %vm7511_vm0, %v7512_v1 }
  0x6f   : > { %7242 = vmatpush3.bf16.msra.mxu0 %v7241_v42  ;;  %v202_v42 = vld [vmem:[%s7565_s19 + $0x78] sm:$0xf] }
  0x70   : > { %7248 = vmatpush3.bf16.msra.mxu1 %v7247_v43  ;;  %7249 = vmatprep.subr.bf16.mxu0 %v7510_v0  ;;  %v7298_v43 = vpack.c.bf16 %v365_v39, %v364_v38  ;;  %v211_v38 = vld [vmem:[%s7565_s19 + $0x9c] sm:$0xf]  ;;  %v7352_v39 = vpack.c.bf16 %v401_v35, %v400_v34  ;;  %v430_v34 = vld [vmem:[%s7550_s15 + $0x610] sm:$0xff] }
  0x71   : > { %7255 = vmatprep.subr.bf16.mxu1 %v7510_v0  ;;  %v431_v35 = vld [vmem:[%s7550_s15 + $0x618] sm:$0xff] }
  0x72   : > { %6652 = vmatmul.mubr.msk.f32.vlgmr.msra.gmra.mrb[22].mxu0 %vm492_vm1, %v194_v48  ;;  %v370_v48 = vld [vmem:[%s7550_s15 + $0x430] sm:$0xff] }
  0x73   : > { %7251 = vmatpush3.bf16.msra.mxu0 %v7250_v49  ;;  %6663 = vmatmul.mubr.msk.f32.vlgmr.msra.gmra.mrb[22].mxu1 %vm492_vm1, %v195_v50  ;;  %v371_v49 = vld [vmem:[%s7550_s15 + $0x438] sm:$0xff]  ;;  %v7301_v50 = vpack.c.bf16 %v367_v47, %v366_v46  ;;  %v404_v46 = vld [vmem:[%s7550_s15 + $0x540] sm:$0xff]  ;;  %v405_v47 = vld [vmem:[%s7550_s15 + $0x548] sm:$0xff] }
  0x74   : > { %7252 = vmatprep.subr.bf16.mxu0 %v7510_v0  ;;  %7257 = vmatpush3.bf16.msra.mxu1 %v7256_v51  ;;  %v7307_v51 = vpack.c.bf16 %v371_v49, %v370_v48  ;;  %v408_v48 = vld [vmem:[%s7550_s15 + $0x560] sm:$0xff]  ;;  %v409_v49 = vld [vmem:[%s7550_s15 + $0x568] sm:$0xff] }
  0x75   : > { %6673 = vmatprep.mubr.msk.f32.mxu0 %vm7511_vm0, %v7512_v1  ;;  %7258 = vmatprep.subr.bf16.mxu1 %v7510_v0 }
  0x76   : > { %6684 = vmatprep.mubr.msk.f32.mxu1 %vm7511_vm0, %v7512_v1 }
  0x77   : > { %7254 = vmatpush3.bf16.msra.mxu0 %v7253_v56  ;;  %v204_v56 = vld [vmem:[%s7565_s19 + $0x80] sm:$0xf] }
  0x78   : > { %7260 = vmatpush3.bf16.msra.mxu1 %v7259_v57  ;;  %7261 = vmatprep.subr.bf16.mxu0 %v7510_v0  ;;  %v7310_v57 = vpack.c.bf16 %v373_v53, %v372_v52  ;;  %v213_v52 = vld [vmem:[%s7565_s19 + $0xa4] sm:$0xf]  ;;  %v7364_v53 = vpack.c.bf16 %v409_v49, %v408_v48  ;;  %v438_v48 = vld [vmem:[%s7550_s15 + $0x650] sm:$0xff]  ;;  %v439_v49 = vld [vmem:[%s7550_s15 + $0x658] sm:$0xff] }
  0x79   : > { %7267 = vmatprep.subr.bf16.mxu1 %v7510_v0 }
  0x7a   : > { %6674 = vmatmul.mubr.msk.f32.vlgmr.msra.gmra.mrb[24].mxu0 %vm492_vm1, %v196_v62  ;;  %v378_v62 = vld [vmem:[%s7550_s15 + $0x470] sm:$0xff] }
  0x7b   : > { %7263 = vmatpush3.bf16.msra.mxu0 %v7262_v63  ;;  %6685 = vmatmul.mubr.msk.f32.vlgmr.msra.gmra.mrb[24].mxu1 %vm492_vm1, %v197_v2  ;;  %v379_v63 = vld [vmem:[%s7550_s15 + $0x478] sm:$0xff]  ;;  %v7313_v2 = vpack.c.bf16 %v375_v61, %v374_v60  ;;  %v412_v60 = vld [vmem:[%s7550_s15 + $0x580] sm:$0xff]  ;;  %v413_v61 = vld [vmem:[%s7550_s15 + $0x588] sm:$0xff] }
  0x7c   : > { %7264 = vmatprep.subr.bf16.mxu0 %v7510_v0  ;;  %7269 = vmatpush3.bf16.msra.mxu1 %v7268_v3  ;;  %v7319_v3 = vpack.c.bf16 %v379_v63, %v378_v62  ;;  %v416_v62 = vld [vmem:[%s7550_s15 + $0x5a0] sm:$0xff]  ;;  %v417_v63 = vld [vmem:[%s7550_s15 + $0x5a8] sm:$0xff] }
  0x7d   : > { %6695 = vmatprep.mubr.msk.f32.mxu0 %vm7511_vm0, %v7512_v1  ;;  %7270 = vmatprep.subr.bf16.mxu1 %v7510_v0 }
  0x7e   : > { %6706 = vmatprep.mubr.msk.f32.mxu1 %vm7511_vm0, %v7512_v1 }
  0x7f   : > { %7266 = vmatpush3.bf16.msra.mxu0 %v7265_v8  ;;  %v206_v8 = vld [vmem:[%s7565_s19 + $0x88] sm:$0xf] }
  0x80   : > { %7272 = vmatpush3.bf16.msra.mxu1 %v7271_v9  ;;  %7273 = vmatprep.subr.bf16.mxu0 %v7510_v0  ;;  %v7322_v9 = vpack.c.bf16 %v381_v5, %v380_v4  ;;  %v215_v4 = vld [vmem:[%s7565_s19 + $0xac] sm:$0xf]  ;;  %v7376_v5 = vpack.c.bf16 %v417_v63, %v416_v62  ;;  %v446_v62 = vld [vmem:[%s7550_s15 + $0x690] sm:$0xff]  ;;  %v447_v63 = vld [vmem:[%s7550_s15 + $0x698] sm:$0xff] }
  0x81   : > { %7279 = vmatprep.subr.bf16.mxu1 %v7510_v0 }
  0x82   : > { %6696 = vmatmul.mubr.msk.f32.vlgmr.msra.gmra.mrb[26].mxu0 %vm492_vm1, %v198_v14  ;;  %v386_v14 = vld [vmem:[%s7550_s15 + $0x4b0] sm:$0xff] }
  0x83   : > { %7275 = vmatpush3.bf16.msra.mxu0 %v7274_v15  ;;  %6707 = vmatmul.mubr.msk.f32.vlgmr.msra.gmra.mrb[26].mxu1 %vm492_vm1, %v199_v16  ;;  %v387_v15 = vld [vmem:[%s7550_s15 + $0x4b8] sm:$0xff]  ;;  %v7325_v16 = vpack.c.bf16 %v383_v13, %v382_v12  ;;  %v420_v12 = vld [vmem:[%s7550_s15 + $0x5c0] sm:$0xff]  ;;  %v421_v13 = vld [vmem:[%s7550_s15 + $0x5c8] sm:$0xff] }
  0x84   : > { %7276 = vmatprep.subr.bf16.mxu0 %v7510_v0  ;;  %7281 = vmatpush3.bf16.msra.mxu1 %v7280_v17  ;;  %v7331_v17 = vpack.c.bf16 %v387_v15, %v386_v14  ;;  %v424_v14 = vld [vmem:[%s7550_s15 + $0x5e0] sm:$0xff]  ;;  %v425_v15 = vld [vmem:[%s7550_s15 + $0x5e8] sm:$0xff] }
  0x85   : > { %6717 = vmatprep.mubr.msk.f32.mxu0 %vm7511_vm0, %v7512_v1  ;;  %7282 = vmatprep.subr.bf16.mxu1 %v7510_v0 }
  0x86   : > { %6728 = vmatprep.mubr.msk.f32.mxu1 %vm7511_vm0, %v7512_v1 }
  0x87   : > { %7278 = vmatpush3.bf16.msra.mxu0 %v7277_v22  ;;  %v208_v22 = vld [vmem:[%s7565_s19 + $0x90] sm:$0xf] }
  0x88   : > { %7284 = vmatpush3.bf16.msra.mxu1 %v7283_v23  ;;  %7285 = vmatprep.subr.bf16.mxu0 %v7510_v0  ;;  %v7334_v23 = vpack.c.bf16 %v389_v19, %v388_v18  ;;  %v217_v18 = vld [vmem:[%s7565_s19 + $0xb4] sm:$0xf]  ;;  %v7388_v19 = vpack.c.bf16 %v425_v15, %v424_v14  ;;  %v455_v15 = vld [vmem:[%s7550_s15 + $0x6d8] sm:$0xff] }
  0x89   : > { %7291 = vmatprep.subr.bf16.mxu1 %v7510_v0  ;;  %v454_v14 = vld [vmem:[%s7550_s15 + $0x6d0] sm:$0xff] }
  0x8a   : > { %6718 = vmatmul.mubr.msk.f32.vlgmr.msra.gmra.mrb[28].mxu0 %vm492_vm1, %v200_v28  ;;  %v394_v28 = vld [vmem:[%s7550_s15 + $0x4f0] sm:$0xff] }
  0x8b   : > { %7287 = vmatpush3.bf16.msra.mxu0 %v7286_v29  ;;  %6729 = vmatmul.mubr.msk.f32.vlgmr.msra.gmra.mrb[28].mxu1 %vm492_vm1, %v201_v30  ;;  %v395_v29 = vld [vmem:[%s7550_s15 + $0x4f8] sm:$0xff]  ;;  %v7337_v30 = vpack.c.bf16 %v391_v27, %v390_v26  ;;  %v428_v26 = vld [vmem:[%s7550_s15 + $0x600] sm:$0xff]  ;;  %v429_v27 = vld [vmem:[%s7550_s15 + $0x608] sm:$0xff] }
  0x8c   : > { %7288 = vmatprep.subr.bf16.mxu0 %v7510_v0  ;;  %7293 = vmatpush3.bf16.msra.mxu1 %v7292_v31  ;;  %v7343_v31 = vpack.c.bf16 %v395_v29, %v394_v28  ;;  %v432_v28 = vld [vmem:[%s7550_s15 + $0x620] sm:$0xff]  ;;  %v433_v29 = vld [vmem:[%s7550_s15 + $0x628] sm:$0xff] }
  0x8d   : > { %6739 = vmatprep.mubr.msk.f32.mxu0 %vm7511_vm0, %v7512_v1  ;;  %7294 = vmatprep.subr.bf16.mxu1 %v7510_v0 }
  0x8e   : > { %6750 = vmatprep.mubr.msk.f32.mxu1 %vm7511_vm0, %v7512_v1 }
  0x8f   : > { %7290 = vmatpush3.bf16.msra.mxu0 %v7289_v36  ;;  %v210_v36 = vld [vmem:[%s7565_s19 + $0x98] sm:$0xf] }
  0x90   : > { %7296 = vmatpush3.bf16.msra.mxu1 %v7295_v37  ;;  %7297 = vmatprep.subr.bf16.mxu0 %v7510_v0  ;;  %v7346_v37 = vpack.c.bf16 %v397_v33, %v396_v32  ;;  %v219_v32 = vld [vmem:[%s7565_s19 + $0xbc] sm:$0xf]  ;;  %v7400_v33 = vpack.c.bf16 %v433_v29, %v432_v28 }
  0x91   : > { %7303 = vmatprep.subr.bf16.mxu1 %v7510_v0 }
  0x92   : > { %6740 = vmatmul.mubr.msk.f32.vlgmr.msra.gmra.mrb[30].mxu0 %vm492_vm1, %v202_v42  ;;  %v402_v42 = vld [vmem:[%s7550_s15 + $0x530] sm:$0xff] }
  0x93   : > { %7299 = vmatpush3.bf16.msra.mxu0 %v7298_v43  ;;  %6751 = vmatmul.mubr.msk.f32.vlgmr.msra.gmra.mrb[30].mxu1 %vm492_vm1, %v203_v44  ;;  %v403_v43 = vld [vmem:[%s7550_s15 + $0x538] sm:$0xff]  ;;  %v7349_v44 = vpack.c.bf16 %v399_v41, %v398_v40  ;;  %v436_v40 = vld [vmem:[%s7550_s15 + $0x640] sm:$0xff]  ;;  %v437_v41 = vld [vmem:[%s7550_s15 + $0x648] sm:$0xff] }
  0x94   : > { %7300 = vmatprep.subr.bf16.mxu0 %v7510_v0  ;;  %7305 = vmatpush3.bf16.msra.mxu1 %v7304_v45  ;;  %v7355_v45 = vpack.c.bf16 %v403_v43, %v402_v42  ;;  %v440_v42 = vld [vmem:[%s7550_s15 + $0x660] sm:$0xff]  ;;  %v441_v43 = vld [vmem:[%s7550_s15 + $0x668] sm:$0xff] }
  0x95   : > { %6761 = vmatprep.mubr.msk.f32.mxu0 %vm7511_vm0, %v7512_v1  ;;  %7306 = vmatprep.subr.bf16.mxu1 %v7510_v0 }
  0x96   : > { %6772 = vmatprep.mubr.msk.f32.mxu1 %vm7511_vm0, %v7512_v1 }
  0x97   : > { %7302 = vmatpush3.bf16.msra.mxu0 %v7301_v50  ;;  %v212_v50 = vld [vmem:[%s7565_s19 + $0xa0] sm:$0xf] }
  0x98   : > { %7308 = vmatpush3.bf16.msra.mxu1 %v7307_v51  ;;  %7309 = vmatprep.subr.bf16.mxu0 %v7510_v0  ;;  %v7358_v51 = vpack.c.bf16 %v405_v47, %v404_v46  ;;  %v221_v46 = vld [vmem:[%s7565_s19 + $0xc4] sm:$0xf]  ;;  %v7412_v47 = vpack.c.bf16 %v441_v43, %v440_v42 }
  0x99   : > { %7315 = vmatprep.subr.bf16.mxu1 %v7510_v0 }
  0x9a   : > { %6762 = vmatmul.mubr.msk.f32.vlgmr.msra.gmra.mrb[32].mxu0 %vm492_vm1, %v204_v56  ;;  %v410_v56 = vld [vmem:[%s7550_s15 + $0x570] sm:$0xff] }
  0x9b   : > { %7311 = vmatpush3.bf16.msra.mxu0 %v7310_v57  ;;  %6773 = vmatmul.mubr.msk.f32.vlgmr.msra.gmra.mrb[32].mxu1 %vm492_vm1, %v205_v58  ;;  %v411_v57 = vld [vmem:[%s7550_s15 + $0x578] sm:$0xff]  ;;  %v7361_v58 = vpack.c.bf16 %v407_v55, %v406_v54  ;;  %v444_v54 = vld [vmem:[%s7550_s15 + $0x680] sm:$0xff]  ;;  %v445_v55 = vld [vmem:[%s7550_s15 + $0x688] sm:$0xff] }
  0x9c   : > { %7312 = vmatprep.subr.bf16.mxu0 %v7510_v0  ;;  %7317 = vmatpush3.bf16.msra.mxu1 %v7316_v59  ;;  %v7367_v59 = vpack.c.bf16 %v411_v57, %v410_v56  ;;  %v448_v56 = vld [vmem:[%s7550_s15 + $0x6a0] sm:$0xff]  ;;  %v449_v57 = vld [vmem:[%s7550_s15 + $0x6a8] sm:$0xff] }
  0x9d   : > { %6783 = vmatprep.mubr.msk.f32.mxu0 %vm7511_vm0, %v7512_v1  ;;  %7318 = vmatprep.subr.bf16.mxu1 %v7510_v0 }
  0x9e   : > { %6794 = vmatprep.mubr.msk.f32.mxu1 %vm7511_vm0, %v7512_v1 }
  0x9f   : > { %7314 = vmatpush3.bf16.msra.mxu0 %v7313_v2  ;;  %v214_v2 = vld [vmem:[%s7565_s19 + $0xa8] sm:$0xf] }
  0xa0   : > { %7320 = vmatpush3.bf16.msra.mxu1 %v7319_v3  ;;  %7321 = vmatprep.subr.bf16.mxu0 %v7510_v0  ;;  %v7370_v3 = vpack.c.bf16 %v413_v61, %v412_v60  ;;  %v223_v60 = vld [vmem:[%s7565_s19 + $0xcc] sm:$0xf]  ;;  %v7424_v61 = vpack.c.bf16 %v449_v57, %v448_v56  ;;  %v474_v57 = vld [vmem:[%s7550_s15 + $0x770] sm:$0xff] }
  0xa1   : > { %7327 = vmatprep.subr.bf16.mxu1 %v7510_v0 }
  0xa2   : > { %6784 = vmatmul.mubr.msk.f32.vlgmr.msra.gmra.mrb[34].mxu0 %vm492_vm1, %v206_v8  ;;  %v418_v8 = vld [vmem:[%s7550_s15 + $0x5b0] sm:$0xff] }
  0xa3   : > { %7323 = vmatpush3.bf16.msra.mxu0 %v7322_v9  ;;  %6795 = vmatmul.mubr.msk.f32.vlgmr.msra.gmra.mrb[34].mxu1 %vm492_vm1, %v207_v10  ;;  %v419_v9 = vld [vmem:[%s7550_s15 + $0x5b8] sm:$0xff]  ;;  %v7373_v10 = vpack.c.bf16 %v415_v7, %v414_v6  ;;  %v452_v6 = vld [vmem:[%s7550_s15 + $0x6c0] sm:$0xff]  ;;  %v453_v7 = vld [vmem:[%s7550_s15 + $0x6c8] sm:$0xff] }
  0xa4   : > { %7324 = vmatprep.subr.bf16.mxu0 %v7510_v0  ;;  %7329 = vmatpush3.bf16.msra.mxu1 %v7328_v11  ;;  %v7379_v11 = vpack.c.bf16 %v419_v9, %v418_v8  ;;  %v456_v8 = vld [vmem:[%s7550_s15 + $0x6e0] sm:$0xff]  ;;  %v457_v9 = vld [vmem:[%s7550_s15 + $0x6e8] sm:$0xff] }
  0xa5   : > { %6805 = vmatprep.mubr.msk.f32.mxu0 %vm7511_vm0, %v7512_v1  ;;  %7330 = vmatprep.subr.bf16.mxu1 %v7510_v0 }
  0xa6   : > { %6816 = vmatprep.mubr.msk.f32.mxu1 %vm7511_vm0, %v7512_v1 }
  0xa7   : > { %7326 = vmatpush3.bf16.msra.mxu0 %v7325_v16  ;;  %v216_v16 = vld [vmem:[%s7565_s19 + $0xb0] sm:$0xf] }
  0xa8   : > { %7332 = vmatpush3.bf16.msra.mxu1 %v7331_v17  ;;  %7333 = vmatprep.subr.bf16.mxu0 %v7510_v0  ;;  %v7382_v17 = vpack.c.bf16 %v421_v13, %v420_v12  ;;  %v225_v12 = vld [vmem:[%s7565_s19 + $0xd4] sm:$0xf]  ;;  %v7436_v13 = vpack.c.bf16 %v457_v9, %v456_v8  ;;  %v481_v8 = vld [vmem:[%s7550_s15 + $0x7a8] sm:$0xff] }
  0xa9   : > { %7339 = vmatprep.subr.bf16.mxu1 %v7510_v0 }
  0xaa   : > { %6806 = vmatmul.mubr.msk.f32.vlgmr.msra.gmra.mrb[36].mxu0 %vm492_vm1, %v208_v22  ;;  %v426_v22 = vld [vmem:[%s7550_s15 + $0x5f0] sm:$0xff] }
  0xab   : > { %7335 = vmatpush3.bf16.msra.mxu0 %v7334_v23  ;;  %6817 = vmatmul.mubr.msk.f32.vlgmr.msra.gmra.mrb[36].mxu1 %vm492_vm1, %v209_v24  ;;  %v427_v23 = vld [vmem:[%s7550_s15 + $0x5f8] sm:$0xff]  ;;  %v7385_v24 = vpack.c.bf16 %v423_v21, %v422_v20  ;;  %v460_v20 = vld [vmem:[%s7550_s15 + $0x700] sm:$0xff]  ;;  %v461_v21 = vld [vmem:[%s7550_s15 + $0x708] sm:$0xff] }
  0xac   : > { %7336 = vmatprep.subr.bf16.mxu0 %v7510_v0  ;;  %7341 = vmatpush3.bf16.msra.mxu1 %v7340_v25  ;;  %v7391_v25 = vpack.c.bf16 %v427_v23, %v426_v22 }
  0xad   : > { %6827 = vmatprep.mubr.msk.f32.mxu0 %vm7511_vm0, %v7512_v1  ;;  %7342 = vmatprep.subr.bf16.mxu1 %v7510_v0 }
  0xae   : > { %6838 = vmatprep.mubr.msk.f32.mxu1 %vm7511_vm0, %v7512_v1 }
  0xaf   : > { %7338 = vmatpush3.bf16.msra.mxu0 %v7337_v30  ;;  %v218_v30 = vld [vmem:[%s7565_s19 + $0xb8] sm:$0xf] }
  0xb0   : > { %7344 = vmatpush3.bf16.msra.mxu1 %v7343_v31  ;;  %7345 = vmatprep.subr.bf16.mxu0 %v7510_v0  ;;  %v7394_v31 = vpack.c.bf16 %v429_v27, %v428_v26  ;;  %v464_v26 = vld [vmem:[%s7550_s15 + $0x720] sm:$0xff]  ;;  %v465_v27 = vld [vmem:[%s7550_s15 + $0x728] sm:$0xff] }
  0xb1   : > { %7351 = vmatprep.subr.bf16.mxu1 %v7510_v0 }
  0xb2   : > { %6828 = vmatmul.mubr.msk.f32.vlgmr.msra.gmra.mrb[38].mxu0 %vm492_vm1, %v210_v36  ;;  %v434_v36 = vld [vmem:[%s7550_s15 + $0x630] sm:$0xff] }
  0xb3   : > { %7347 = vmatpush3.bf16.msra.mxu0 %v7346_v37  ;;  %6839 = vmatmul.mubr.msk.f32.vlgmr.msra.gmra.mrb[38].mxu1 %vm492_vm1, %v211_v38  ;;  %v435_v37 = vld [vmem:[%s7550_s15 + $0x638] sm:$0xff]  ;;  %v7397_v38 = vpack.c.bf16 %v431_v35, %v430_v34  ;;  %v7448_v35 = vpack.c.bf16 %v465_v27, %v464_v26  ;;  %v232_v27 = vld [vmem:[%s7565_s19 + $0xf0] sm:$0xf] }
  0xb4   : > { %7348 = vmatprep.subr.bf16.mxu0 %v7510_v0  ;;  %7353 = vmatpush3.bf16.msra.mxu1 %v7352_v39  ;;  %v7403_v39 = vpack.c.bf16 %v435_v37, %v434_v36  ;;  %v463_v34 = vld [vmem:[%s7550_s15 + $0x718] sm:$0xff]  ;;  %v466_v36 = vld [vmem:[%s7550_s15 + $0x730] sm:$0xff] }
  0xb5   : > { %6849 = vmatprep.mubr.msk.f32.mxu0 %vm7511_vm0, %v7512_v1  ;;  %7354 = vmatprep.subr.bf16.mxu1 %v7510_v0  ;;  %v467_v37 = vld [vmem:[%s7550_s15 + $0x738] sm:$0xff] }
  0xb6   : > { %6860 = vmatprep.mubr.msk.f32.mxu1 %vm7511_vm0, %v7512_v1  ;;  %v7451_v42 = vpack.c.bf16 %v467_v37, %v466_v36  ;;  %v490_v37 = vld [vmem:[%s7550_s15 + $0x7f0] sm:$0xff] }
  0xb7   : > { %7350 = vmatpush3.bf16.msra.mxu0 %v7349_v44  ;;  %v220_v44 = vld [vmem:[%s7565_s19 + $0xc0] sm:$0xf] }
  0xb8   : > { %7356 = vmatpush3.bf16.msra.mxu1 %v7355_v45  ;;  %7357 = vmatprep.subr.bf16.mxu0 %v7510_v0  ;;  %v7406_v45 = vpack.c.bf16 %v437_v41, %v436_v40  ;;  %v469_v40 = vld [vmem:[%s7550_s15 + $0x748] sm:$0xff] }
  0xb9   : > { %7363 = vmatprep.subr.bf16.mxu1 %v7510_v0 }
  0xba   : > { %6850 = vmatmul.mubr.msk.f32.vlgmr.msra.gmra.mrb[40].mxu0 %vm492_vm1, %v212_v50  ;;  %v442_v50 = vld [vmem:[%s7550_s15 + $0x670] sm:$0xff] }
  0xbb   : > { %7359 = vmatpush3.bf16.msra.mxu0 %v7358_v51  ;;  %6861 = vmatmul.mubr.msk.f32.vlgmr.msra.gmra.mrb[40].mxu1 %vm492_vm1, %v213_v52  ;;  %v443_v51 = vld [vmem:[%s7550_s15 + $0x678] sm:$0xff]  ;;  %v7409_v52 = vpack.c.bf16 %v439_v49, %v438_v48  ;;  %v472_v49 = vld [vmem:[%s7550_s15 + $0x760] sm:$0xff] }
  0xbc   : > { %7360 = vmatprep.subr.bf16.mxu0 %v7510_v0  ;;  %7365 = vmatpush3.bf16.msra.mxu1 %v7364_v53  ;;  %v7415_v53 = vpack.c.bf16 %v443_v51, %v442_v50  ;;  %v473_v50 = vld [vmem:[%s7550_s15 + $0x768] sm:$0xff] }
  0xbd   : > { %6871 = vmatprep.mubr.msk.f32.mxu0 %vm7511_vm0, %v7512_v1  ;;  %7366 = vmatprep.subr.bf16.mxu1 %v7510_v0 }
  0xbe   : > { %6882 = vmatprep.mubr.msk.f32.mxu1 %vm7511_vm0, %v7512_v1 }
  0xbf   : > { %7362 = vmatpush3.bf16.msra.mxu0 %v7361_v58  ;;  %v222_v58 = vld [vmem:[%s7565_s19 + $0xc8] sm:$0xf] }
  0xc0   : > { %7368 = vmatpush3.bf16.msra.mxu1 %v7367_v59  ;;  %7369 = vmatprep.subr.bf16.mxu0 %v7510_v0  ;;  %v7418_v59 = vpack.c.bf16 %v445_v55, %v444_v54  ;;  %v229_v54 = vld [vmem:[%s7565_s19 + $0xe4] sm:$0xf]  ;;  %v7460_v55 = vpack.c.bf16 %v473_v50, %v472_v49  ;;  %v235_v49 = vld [vmem:[%s7565_s19 + $0xfc] sm:$0xf] }
  0xc1   : > { %7375 = vmatprep.subr.bf16.mxu1 %v7510_v0 }
  0xc2   : > { %6872 = vmatmul.mubr.msk.f32.vlgmr.msra.gmra.mrb[42].mxu0 %vm492_vm1, %v214_v2  ;;  %v450_v2 = vld [vmem:[%s7550_s15 + $0x6b0] sm:$0xff] }
  0xc3   : > { %7371 = vmatpush3.bf16.msra.mxu0 %v7370_v3  ;;  %6883 = vmatmul.mubr.msk.f32.vlgmr.msra.gmra.mrb[42].mxu1 %vm492_vm1, %v215_v4  ;;  %v451_v3 = vld [vmem:[%s7550_s15 + $0x6b8] sm:$0xff]  ;;  %v7421_v4 = vpack.c.bf16 %v447_v63, %v446_v62 }
  0xc4   : > { %7372 = vmatprep.subr.bf16.mxu0 %v7510_v0  ;;  %7377 = vmatpush3.bf16.msra.mxu1 %v7376_v5  ;;  %v7427_v5 = vpack.c.bf16 %v451_v3, %v450_v2 }
  0xc5   : > { %6893 = vmatprep.mubr.msk.f32.mxu0 %vm7511_vm0, %v7512_v1  ;;  %7378 = vmatprep.subr.bf16.mxu1 %v7510_v0 }
  0xc6   : > { %6904 = vmatprep.mubr.msk.f32.mxu1 %vm7511_vm0, %v7512_v1 }
  0xc7   : > { %7374 = vmatpush3.bf16.msra.mxu0 %v7373_v10  ;;  %v224_v10 = vld [vmem:[%s7565_s19 + $0xd0] sm:$0xf] }
  0xc8   : > { %7380 = vmatpush3.bf16.msra.mxu1 %v7379_v11  ;;  %7381 = vmatprep.subr.bf16.mxu0 %v7510_v0  ;;  %v7430_v11 = vpack.c.bf16 %v453_v7, %v452_v6  ;;  %v480_v7 = vld [vmem:[%s7550_s15 + $0x7a0] sm:$0xff] }
  0xc9   : > { %7387 = vmatprep.subr.bf16.mxu1 %v7510_v0 }
  0xca   : > { %6894 = vmatmul.mubr.msk.f32.vlgmr.msra.gmra.mrb[44].mxu0 %vm492_vm1, %v216_v16  ;;  %v458_v16 = vld [vmem:[%s7550_s15 + $0x6f0] sm:$0xff] }
  0xcb   : > { %7383 = vmatpush3.bf16.msra.mxu0 %v7382_v17  ;;  %6905 = vmatmul.mubr.msk.f32.vlgmr.msra.gmra.mrb[44].mxu1 %vm492_vm1, %v217_v18  ;;  %v459_v17 = vld [vmem:[%s7550_s15 + $0x6f8] sm:$0xff]  ;;  %v7433_v18 = vpack.c.bf16 %v455_v15, %v454_v14  ;;  %v482_v15 = vld [vmem:[%s7550_s15 + $0x7b0] sm:$0xff] }
  0xcc   : > { %7384 = vmatprep.subr.bf16.mxu0 %v7510_v0  ;;  %7389 = vmatpush3.bf16.msra.mxu1 %v7388_v19  ;;  %v7439_v19 = vpack.c.bf16 %v459_v17, %v458_v16  ;;  %v483_v16 = vld [vmem:[%s7550_s15 + $0x7b8] sm:$0xff]  ;;  %v484_v17 = vld [vmem:[%s7550_s15 + $0x7c0] sm:$0xff] }
  0xcd   : > { %6915 = vmatprep.mubr.msk.f32.mxu0 %vm7511_vm0, %v7512_v1  ;;  %7390 = vmatprep.subr.bf16.mxu1 %v7510_v0 }
  0xce   : > { %6926 = vmatprep.mubr.msk.f32.mxu1 %vm7511_vm0, %v7512_v1 }
  0xcf   : > { %7386 = vmatpush3.bf16.msra.mxu0 %v7385_v24 }
  0xd0   : > { %7392 = vmatpush3.bf16.msra.mxu1 %v7391_v25  ;;  %7393 = vmatprep.subr.bf16.mxu0 %v7510_v0 }
  0xd1   : > { %7399 = vmatprep.subr.bf16.mxu1 %v7510_v0 }
  0xd2   : > { %6916 = vmatmul.mubr.msk.f32.vlgmr.msra.gmra.mrb[46].mxu0 %vm492_vm1, %v218_v30  ;;  %v226_v30 = vld [vmem:[%s7565_s19 + $0xd8] sm:$0xf] }
  0xd3   : > { %7395 = vmatpush3.bf16.msra.mxu0 %v7394_v31  ;;  %6927 = vmatmul.mubr.msk.f32.vlgmr.msra.gmra.mrb[46].mxu1 %vm492_vm1, %v219_v32  ;;  %v7442_v31 = vpack.c.bf16 %v461_v21, %v460_v20  ;;  %v227_v32 = vld [vmem:[%s7565_s19 + $0xdc] sm:$0xf] }
  0xd4   : > { %7396 = vmatprep.subr.bf16.mxu0 %v7510_v0  ;;  %7401 = vmatpush3.bf16.msra.mxu1 %v7400_v33  ;;  %v462_v33 = vld [vmem:[%s7550_s15 + $0x710] sm:$0xff] }
  0xd5   : > { %6937 = vmatprep.mubr.msk.f32.mxu0 %vm7511_vm0, %v7512_v1  ;;  %7402 = vmatprep.subr.bf16.mxu1 %v7510_v0 }
  0xd6   : > { %6948 = vmatprep.mubr.msk.f32.mxu1 %vm7511_vm0, %v7512_v1 }
  0xd7   : > { %7398 = vmatpush3.bf16.msra.mxu0 %v7397_v38  ;;  %v7445_v38 = vpack.c.bf16 %v463_v34, %v462_v33  ;;  %v487_v33 = vld [vmem:[%s7550_s15 + $0x7d8] sm:$0xff]  ;;  %v233_v34 = vld [vmem:[%s7565_s19 + $0xf4] sm:$0xf] }
  0xd8   : > { %7404 = vmatpush3.bf16.msra.mxu1 %v7403_v39  ;;  %7405 = vmatprep.subr.bf16.mxu0 %v7510_v0  ;;  %v468_v39 = vld [vmem:[%s7550_s15 + $0x740] sm:$0xff] }
  0xd9   : > { %7411 = vmatprep.subr.bf16.mxu1 %v7510_v0  ;;  %v7454_v48 = vpack.c.bf16 %v469_v40, %v468_v39 }
  0xda   : > { %6938 = vmatmul.mubr.msk.f32.vlgmr.msra.gmra.mrb[48].mxu0 %vm492_vm1, %v220_v44 }
  0xdb   : > { %7407 = vmatpush3.bf16.msra.mxu0 %v7406_v45  ;;  %6949 = vmatmul.mubr.msk.f32.vlgmr.msra.gmra.mrb[48].mxu1 %vm492_vm1, %v221_v46 }
  0xdc   : > { %7408 = vmatprep.subr.bf16.mxu0 %v7510_v0  ;;  %7413 = vmatpush3.bf16.msra.mxu1 %v7412_v47  ;;  %v228_v47 = vld [vmem:[%s7565_s19 + $0xe0] sm:$0xf] }
  0xdd   : > { %6959 = vmatprep.mubr.msk.f32.mxu0 %vm7511_vm0, %v7512_v1  ;;  %7414 = vmatprep.subr.bf16.mxu1 %v7510_v0 }
  0xde   : > { %6970 = vmatprep.mubr.msk.f32.mxu1 %vm7511_vm0, %v7512_v1 }
  0xdf   : > { %7410 = vmatpush3.bf16.msra.mxu0 %v7409_v52  ;;  %v470_v52 = vld [vmem:[%s7550_s15 + $0x750] sm:$0xff] }
  0xe0   : > { %7416 = vmatpush3.bf16.msra.mxu1 %v7415_v53  ;;  %7417 = vmatprep.subr.bf16.mxu0 %v7510_v0  ;;  %v471_v53 = vld [vmem:[%s7550_s15 + $0x758] sm:$0xff] }
  0xe1   : > { %7423 = vmatprep.subr.bf16.mxu1 %v7510_v0  ;;  %v7457_v56 = vpack.c.bf16 %v471_v53, %v470_v52 }
  0xe2   : > { %6960 = vmatmul.mubr.msk.f32.vlgmr.msra.gmra.mrb[50].mxu0 %vm492_vm1, %v222_v58  ;;  %v475_v58 = vld [vmem:[%s7550_s15 + $0x778] sm:$0xff] }
  0xe3   : > { %7419 = vmatpush3.bf16.msra.mxu0 %v7418_v59  ;;  %6971 = vmatmul.mubr.msk.f32.vlgmr.msra.gmra.mrb[50].mxu1 %vm492_vm1, %v223_v60  ;;  %v476_v59 = vld [vmem:[%s7550_s15 + $0x780] sm:$0xff]  ;;  %v477_v60 = vld [vmem:[%s7550_s15 + $0x788] sm:$0xff]  ;;  %v7463_v3 = vpack.c.bf16 %v475_v58, %v474_v57 }
  0xe4   : > { %7420 = vmatprep.subr.bf16.mxu0 %v7510_v0  ;;  %7425 = vmatpush3.bf16.msra.mxu1 %v7424_v61  ;;  %v7466_v6 = vpack.c.bf16 %v477_v60, %v476_v59 }
  0xe5   : > { %6981 = vmatprep.mubr.msk.f32.mxu0 %vm7511_vm0, %v7512_v1  ;;  %7426 = vmatprep.subr.bf16.mxu1 %v7510_v0 }
  0xe6   : > { %6992 = vmatprep.mubr.msk.f32.mxu1 %vm7511_vm0, %v7512_v1 }
  0xe7   : > { %7422 = vmatpush3.bf16.msra.mxu0 %v7421_v4 }
  0xe8   : > { %7428 = vmatpush3.bf16.msra.mxu1 %v7427_v5  ;;  %7429 = vmatprep.subr.bf16.mxu0 %v7510_v0  ;;  %v230_v5 = vld [vmem:[%s7565_s19 + $0xe8] sm:$0xf] }
  0xe9   : > { %7435 = vmatprep.subr.bf16.mxu1 %v7510_v0 }
  0xea   : > { %6982 = vmatmul.mubr.msk.f32.vlgmr.msra.gmra.mrb[52].mxu0 %vm492_vm1, %v224_v10  ;;  %v478_v10 = vld [vmem:[%s7550_s15 + $0x790] sm:$0xff] }
  0xeb   : > { %7431 = vmatpush3.bf16.msra.mxu0 %v7430_v11  ;;  %6993 = vmatmul.mubr.msk.f32.vlgmr.msra.gmra.mrb[52].mxu1 %vm492_vm1, %v225_v12  ;;  %v479_v11 = vld [vmem:[%s7550_s15 + $0x798] sm:$0xff]  ;;  %v231_v12 = vld [vmem:[%s7565_s19 + $0xec] sm:$0xf] }
  0xec   : > { %7432 = vmatprep.subr.bf16.mxu0 %v7510_v0  ;;  %7437 = vmatpush3.bf16.msra.mxu1 %v7436_v13  ;;  %v7472_v13 = vpack.c.bf16 %v481_v8, %v480_v7  ;;  %v7469_v14 = vpack.c.bf16 %v479_v11, %v478_v10 }
  0xed   : > { %v8105_v22 = vpop.f32.mrb[0].mxu0  ;;  %7003 = vmatprep.mubr.msk.f32.mxu0 %vm7511_vm0, %v7512_v1  ;;  %7438 = vmatprep.subr.bf16.mxu1 %v7510_v0 }
  0xee   : > { %v8110_v23 = vpop.f32.mrb[0].mxu1  ;;  %v6411_v24 = vpop.f32.mrb[1].mxu0  ;;  %v5229_v25 = vrot.slane %v8105_v22, 2  ;;  %7014 = vmatprep.mubr.msk.f32.mxu1 %vm7511_vm0, %v7512_v1 }
  0xef   : > { %7434 = vmatpush3.bf16.msra.mxu0 %v7433_v18  ;;  %v5230_v28 = vrot.slane %v8110_v23, 2  ;;  %v6422_v29 = vpop.f32.mrb[1].mxu1  ;;  %v485_v18 = vld [vmem:[%s7550_s15 + $0x7c8] sm:$0xff] }
  0xf0   : > { %5293 = vrot.lane.b32.xlu0 %v5229_v25, %s7513_s20  ;;  %7440 = vmatpush3.bf16.msra.mxu1 %v7439_v19  ;;  %v488_v29 = vld [vmem:[%s7550_s15 + $0x7e0] sm:$0xff] }
  0xf1   : > { %5551 = vrot.lane.b32.xlu1 %v5230_v28, %s7514_s21  ;;  %7441 = vmatprep.subr.bf16.mxu0 %v7510_v0 }
  0xf2   : > { %7004 = vmatmul.mubr.msk.f32.vlgmr.msra.gmra.mrb[54].mxu0 %vm492_vm1, %v226_v30  ;;  %7447 = vmatprep.subr.bf16.mxu1 %v7510_v0  ;;  %v489_v30 = vld [vmem:[%s7550_s15 + $0x7e8] sm:$0xff] }
  0xf3   : > { %7443 = vmatpush3.bf16.msra.mxu0 %v7442_v31  ;;  %7015 = vmatmul.mubr.msk.f32.vlgmr.msra.gmra.mrb[54].mxu1 %vm492_vm1, %v227_v32  ;;  %v486_v32 = vld [vmem:[%s7550_s15 + $0x7d0] sm:$0xff] }
  0xf4   : > { %5295 = vrot.lane.b32.xlu0 %v5230_v28, %s7513_s20  ;;  %7444 = vmatprep.subr.bf16.mxu0 %v7510_v0  ;;  %v7478_v28 = vpack.c.bf16 %v485_v18, %v484_v17  ;;  %v7481_v36 = vpack.c.bf16 %v487_v33, %v486_v32 }
  0xf5   : > { %v8134_v41 = vpop.f32.mrb[2].mxu0  ;;  %7449 = vmatpush3.bf16.msra.mxu1 %v7448_v35  ;;  %7025 = vmatprep.mubr.msk.f32.mxu0 %vm7511_vm0, %v7512_v1  ;;  %v7484_v35 = vpack.c.bf16 %v489_v30, %v488_v29 }
  0xf6   : > { %v5231_v43 = vrot.slane %v8134_v41, 2  ;;  %v6433_v44 = vpop.f32.mrb[3].mxu0  ;;  %v8139_v45 = vpop.f32.mrb[2].mxu1  ;;  %7450 = vmatprep.subr.bf16.mxu1 %v7510_v0  ;;  %7036 = vmatprep.mubr.msk.f32.mxu1 %vm7511_vm0, %v7512_v1 }
  0xf7   : > { %7446 = vmatpush3.bf16.msra.mxu0 %v7445_v38  ;;  %v6444_v46 = vpop.f32.mrb[3].mxu1  ;;  %v5232_v51 = vrot.slane %v8139_v45, 2  ;;  %v491_v38 = vld [vmem:[%s7550_s15 + $0x7f8] sm:$0xff] }
  0xf8   : > { %5549 = vrot.lane.b32.xlu0 %v5229_v25, %s7514_s21  ;;  %5297 = vrot.lane.b32.xlu1 %v5231_v43, %s7513_s20  ;;  %v7475_v25 = vpack.c.bf16 %v483_v16, %v482_v15  ;;  %v7487_v44 = vpack.c.bf16 %v491_v38, %v490_v37 }
  0xf9   : > { %7452 = vmatpush3.bf16.msra.mxu1 %v7451_v42  ;;  %7453 = vmatprep.subr.bf16.mxu0 %v7510_v0 }
  0xfa   : > { %7026 = vmatmul.mubr.msk.f32.vlgmr.msra.gmra.mrb[56].mxu0 %vm492_vm1, %v228_v47  ;;  %7459 = vmatprep.subr.bf16.mxu1 %v7510_v0  ;;  %v234_v47 = vld [vmem:[%s7565_s19 + $0xf8] sm:$0xf] }
  0xfb   : > { %7455 = vmatpush3.bf16.msra.mxu0 %v7454_v48  ;;  %7047 = vmatprep.mubr.msk.f32.mxu0 %vm7511_vm0, %v7512_v1 }
  0xfc   : > { %5553 = vrot.lane.b32.xlu0 %v5231_v43, %s7514_s21  ;;  %5299 = vrot.lane.b32.xlu1 %v5232_v51, %s7513_s20 }
  0xfd   : > { %v8164_v61 = vpop.f32.mrb[4].mxu0  ;;  %7037 = vmatmul.mubr.msk.f32.vlgmr.msra.gmra.mrb[56].mxu1 %vm492_vm1, %v229_v54  ;;  %7456 = vmatprep.subr.bf16.mxu0 %v7510_v0 }
  0xfe   : > { %v5233_v62 = vrot.slane %v8164_v61, 2  ;;  %7461 = vmatpush3.bf16.msra.mxu1 %v7460_v55  ;;  %v8169_v63 = vpop.f32.mrb[4].mxu1  ;;  %v6455_v2 = vpop.f32.mrb[5].mxu0  ;;  %7058 = vmatprep.mubr.msk.f32.mxu1 %vm7511_vm0, %v7512_v1 }
  0xff   : > { %7458 = vmatpush3.bf16.msra.mxu0 %v7457_v56  ;;  %v6466_v4 = vpop.f32.mrb[5].mxu1  ;;  %7462 = vmatprep.subr.bf16.mxu1 %v7510_v0  ;;  %v5234_v9 = vrot.slane %v8169_v63, 2 }
 0x100   : > { %5555 = vrot.lane.b32.xlu1 %v5232_v51, %s7514_s21  ;;  %5301 = vrot.lane.b32.xlu0 %v5233_v62, %s7513_s20 }
 0x101   : > { %7465 = vmatprep.subr.bf16.mxu0 %v7510_v0 }
 0x102   : > { %7048 = vmatmul.mubr.msk.f32.vlgmr.msra.gmra.mrb[58].mxu0 %vm492_vm1, %v230_v5  ;;  %7464 = vmatpush3.bf16.msra.mxu1 %v7463_v3 }
 0x103   : > { %7467 = vmatpush3.bf16.msra.mxu0 %v7466_v6  ;;  %7471 = vmatprep.subr.bf16.mxu1 %v7510_v0 }
 0x104   : > { %5303 = vrot.lane.b32.xlu1 %v5234_v9, %s7513_s20  ;;  %5557 = vrot.lane.b32.xlu0 %v5233_v62, %s7514_s21 }
 0x105   : > { %v8192_v19 = vpop.f32.mrb[6].mxu0  ;;  %7059 = vmatmul.mubr.msk.f32.vlgmr.msra.gmra.mrb[58].mxu1 %vm492_vm1, %v231_v12  ;;  %7468 = vmatprep.subr.bf16.mxu0 %v7510_v0 }
 0x106   : > { %v5235_v20 = vrot.slane %v8192_v19, 2  ;;  %7473 = vmatpush3.bf16.msra.mxu1 %v7472_v13  ;;  %v8197_v21 = vpop.f32.mrb[6].mxu1  ;;  %v6477_v24 = vpop.f32.mrb[7].mxu0  ;;  %7069 = vmatprep.mubr.msk.f32.mxu0 %vm7511_vm0, %v7512_v1 }
 0x107   : > { %7470 = vmatpush3.bf16.msra.mxu0 %v7469_v14  ;;  %v6488_v26 = vpop.f32.mrb[7].mxu1  ;;  %7474 = vmatprep.subr.bf16.mxu1 %v7510_v0  ;;  %v5236_v31 = vrot.slane %v8197_v21, 2 }
 0x108   : > { %5559 = vrot.lane.b32.xlu1 %v5234_v9, %s7514_s21  ;;  %5305 = vrot.lane.b32.xlu0 %v5235_v20, %s7513_s20 }
 0x109   : > { %7477 = vmatprep.subr.bf16.mxu0 %v7510_v0  ;;  %7080 = vmatprep.mubr.msk.f32.mxu1 %vm7511_vm0, %v7512_v1 }
 0x10a   : > { %7070 = vmatmul.mubr.msk.f32.vlgmr.msra.gmra.mrb[60].mxu0 %vm492_vm1, %v232_v27  ;;  %7476 = vmatpush3.bf16.msra.mxu1 %v7475_v25 }
 0x10b   : > { %7479 = vmatpush3.bf16.msra.mxu0 %v7478_v28  ;;  %7483 = vmatprep.subr.bf16.mxu1 %v7510_v0 }
 0x10c   : > { %5307 = vrot.lane.b32.xlu1 %v5236_v31, %s7513_s20  ;;  %5561 = vrot.lane.b32.xlu0 %v5235_v20, %s7514_s21 }
 0x10d   : > { %v8220_v39 = vpop.f32.mrb[8].mxu0  ;;  %7081 = vmatmul.mubr.msk.f32.vlgmr.msra.gmra.mrb[60].mxu1 %vm492_vm1, %v233_v34  ;;  %7480 = vmatprep.subr.bf16.mxu0 %v7510_v0 }
 0x10e   : > { %v5237_v40 = vrot.slane %v8220_v39, 2  ;;  %7485 = vmatpush3.bf16.msra.mxu1 %v7484_v35  ;;  %v8225_v42 = vpop.f32.mrb[8].mxu1  ;;  %v6499_v43 = vpop.f32.mrb[9].mxu0  ;;  %7091 = vmatprep.mubr.msk.f32.mxu0 %vm7511_vm0, %v7512_v1 }
 0x10f   : > { %7482 = vmatpush3.bf16.msra.mxu0 %v7481_v36  ;;  %v6510_v46 = vpop.f32.mrb[9].mxu1  ;;  %7486 = vmatprep.subr.bf16.mxu1 %v7510_v0  ;;  %v5238_v48 = vrot.slane %v8225_v42, 2 }
 0x110   : > { %5563 = vrot.lane.b32.xlu1 %v5236_v31, %s7514_s21  ;;  %5309 = vrot.lane.b32.xlu0 %v5237_v40, %s7513_s20 }
 0x111   : > { %7102 = vmatprep.mubr.msk.f32.mxu1 %vm7511_vm0, %v7512_v1 }
 0x112   : > { %7092 = vmatmul.mubr.msk.f32.vlgmr.msra.gmra.mrb[62].mxu0 %vm492_vm1, %v234_v47  ;;  %7488 = vmatpush3.bf16.msra.mxu1 %v7487_v44 }
 0x114   : > { %5311 = vrot.lane.b32.xlu1 %v5238_v48, %s7513_s20  ;;  %5565 = vrot.lane.b32.xlu0 %v5237_v40, %s7514_s21 }
 0x115   : > { %v8240_v50 = vpop.f32.mrb[10].mxu0  ;;  %7103 = vmatmul.mubr.msk.f32.vlgmr.msra.gmra.mrb[62].mxu1 %vm492_vm1, %v235_v49 }
 0x116   : > { %v5239_v0 = vrot.slane %v8240_v50, 2  ;;  %v8244_v51 = vpop.f32.mrb[10].mxu1  ;;  %v6521_v52 = vpop.f32.mrb[11].mxu0 }
 0x117   : > { %v6532_v53 = vpop.f32.mrb[11].mxu1  ;;  %v5240_v1 = vrot.slane %v8244_v51, 2 }
 0x118   : > { %5567 = vrot.lane.b32.xlu1 %v5238_v48, %s7514_s21  ;;  %5313 = vrot.lane.b32.xlu0 %v5239_v0, %s7513_s20 }
 0x11c   : > { %5315 = vrot.lane.b32.xlu1 %v5240_v1, %s7513_s20  ;;  %5569 = vrot.lane.b32.xlu0 %v5239_v0, %s7514_s21 }
 0x11d   : > { %v8251_v54 = vpop.f32.mrb[12].mxu0 }
 0x11e   : > { %v5241_v55 = vrot.slane %v8251_v54, 2  ;;  %v8254_v56 = vpop.f32.mrb[12].mxu1  ;;  %v6543_v57 = vpop.f32.mrb[13].mxu0 }
 0x11f   : > { %v6554_v58 = vpop.f32.mrb[13].mxu1  ;;  %v5242_v59 = vrot.slane %v8254_v56, 2 }
 0x120   : > { %5571 = vrot.lane.b32.xlu1 %v5240_v1, %s7514_s21  ;;  %5317 = vrot.lane.b32.xlu0 %v5241_v55, %s7513_s20 }
 0x124   : > { %5319 = vrot.lane.b32.xlu1 %v5242_v59, %s7513_s20  ;;  %5573 = vrot.lane.b32.xlu0 %v5241_v55, %s7514_s21 }
 0x125   : > { %v8261_v60 = vpop.f32.mrb[14].mxu0 }
 0x126   : > { %v5243_v62 = vrot.slane %v8261_v60, 2  ;;  %v8264_v2 = vpop.f32.mrb[14].mxu1  ;;  %v6565_v3 = vpop.f32.mrb[15].mxu0 }
 0x127   : > { %v6576_v4 = vpop.f32.mrb[15].mxu1  ;;  %v5244_v5 = vrot.slane %v8264_v2, 2 }
 0x128   : > { %5575 = vrot.lane.b32.xlu1 %v5242_v59, %s7514_s21  ;;  %5321 = vrot.lane.b32.xlu0 %v5243_v62, %s7513_s20 }
 0x12c   : > { %5323 = vrot.lane.b32.xlu1 %v5244_v5, %s7513_s20  ;;  %5577 = vrot.lane.b32.xlu0 %v5243_v62, %s7514_s21 }
 0x12d   : > { %v8271_v6 = vpop.f32.mrb[16].mxu0 }
 0x12e   : > { %v5245_v7 = vrot.slane %v8271_v6, 2  ;;  %v8274_v8 = vpop.f32.mrb[16].mxu1  ;;  %v6587_v9 = vpop.f32.mrb[17].mxu0 }
 0x12f   : > { %v6598_v10 = vpop.f32.mrb[17].mxu1  ;;  %v5246_v11 = vrot.slane %v8274_v8, 2 }
 0x130   : > { %5579 = vrot.lane.b32.xlu1 %v5244_v5, %s7514_s21  ;;  %5325 = vrot.lane.b32.xlu0 %v5245_v7, %s7513_s20 }
 0x134   : > { %5327 = vrot.lane.b32.xlu1 %v5246_v11, %s7513_s20  ;;  %5581 = vrot.lane.b32.xlu0 %v5245_v7, %s7514_s21 }
 0x135   : > { %v8281_v12 = vpop.f32.mrb[18].mxu0 }
 0x136   : > { %v5247_v13 = vrot.slane %v8281_v12, 2  ;;  %v8284_v14 = vpop.f32.mrb[18].mxu1  ;;  %v6609_v15 = vpop.f32.mrb[19].mxu0 }
 0x137   : > { %v6620_v16 = vpop.f32.mrb[19].mxu1  ;;  %v5248_v17 = vrot.slane %v8284_v14, 2 }
 0x138   : > { %5583 = vrot.lane.b32.xlu1 %v5246_v11, %s7514_s21  ;;  %5329 = vrot.lane.b32.xlu0 %v5247_v13, %s7513_s20 }
 0x13c   : > { %5331 = vrot.lane.b32.xlu1 %v5248_v17, %s7513_s20  ;;  %5585 = vrot.lane.b32.xlu0 %v5247_v13, %s7514_s21 }
 0x13d   : > { %v8291_v18 = vpop.f32.mrb[20].mxu0 }
 0x13e   : > { %v5249_v20 = vrot.slane %v8291_v18, 2  ;;  %v8294_v24 = vpop.f32.mrb[20].mxu1  ;;  %v6631_v25 = vpop.f32.mrb[21].mxu0 }
 0x13f   : > { %v6642_v26 = vpop.f32.mrb[21].mxu1  ;;  %v5250_v27 = vrot.slane %v8294_v24, 2 }
 0x140   : > { %5587 = vrot.lane.b32.xlu1 %v5248_v17, %s7514_s21  ;;  %5333 = vrot.lane.b32.xlu0 %v5249_v20, %s7513_s20 }
 0x144   : > { %5335 = vrot.lane.b32.xlu1 %v5250_v27, %s7513_s20  ;;  %5589 = vrot.lane.b32.xlu0 %v5249_v20, %s7514_s21 }
 0x145   : > { %v8301_v28 = vpop.f32.mrb[22].mxu0 }
 0x146   : > { %v5251_v29 = vrot.slane %v8301_v28, 2  ;;  %v8304_v30 = vpop.f32.mrb[22].mxu1  ;;  %v6653_v31 = vpop.f32.mrb[23].mxu0 }
 0x147   : > { %v6664_v32 = vpop.f32.mrb[23].mxu1  ;;  %v5252_v33 = vrot.slane %v8304_v30, 2 }
 0x148   : > { %5591 = vrot.lane.b32.xlu1 %v5250_v27, %s7514_s21  ;;  %5337 = vrot.lane.b32.xlu0 %v5251_v29, %s7513_s20 }
 0x14c   : > { %5339 = vrot.lane.b32.xlu1 %v5252_v33, %s7513_s20  ;;  %5593 = vrot.lane.b32.xlu0 %v5251_v29, %s7514_s21 }
 0x14d   : > { %v8311_v34 = vpop.f32.mrb[24].mxu0 }
 0x14e   : > { %v5253_v35 = vrot.slane %v8311_v34, 2  ;;  %v8314_v36 = vpop.f32.mrb[24].mxu1  ;;  %v6675_v37 = vpop.f32.mrb[25].mxu0 }
 0x14f   : > { %v6686_v38 = vpop.f32.mrb[25].mxu1  ;;  %v5254_v40 = vrot.slane %v8314_v36, 2 }
 0x150   : > { %5595 = vrot.lane.b32.xlu1 %v5252_v33, %s7514_s21  ;;  %5341 = vrot.lane.b32.xlu0 %v5253_v35, %s7513_s20 }
 0x154   : > { %5343 = vrot.lane.b32.xlu1 %v5254_v40, %s7513_s20  ;;  %5597 = vrot.lane.b32.xlu0 %v5253_v35, %s7514_s21 }
 0x155   : > { %v8321_v43 = vpop.f32.mrb[26].mxu0 }
 0x156   : > { %v5255_v44 = vrot.slane %v8321_v43, 2  ;;  %v8324_v46 = vpop.f32.mrb[26].mxu1  ;;  %v6697_v47 = vpop.f32.mrb[27].mxu0 }
 0x157   : > { %v6708_v48 = vpop.f32.mrb[27].mxu1  ;;  %v5256_v49 = vrot.slane %v8324_v46, 2 }
 0x158   : > { %5599 = vrot.lane.b32.xlu1 %v5254_v40, %s7514_s21  ;;  %5345 = vrot.lane.b32.xlu0 %v5255_v44, %s7513_s20 }
 0x15c   : > { %5347 = vrot.lane.b32.xlu1 %v5256_v49, %s7513_s20  ;;  %5601 = vrot.lane.b32.xlu0 %v5255_v44, %s7514_s21 }
 0x15d   : > { %v8331_v0 = vpop.f32.mrb[28].mxu0 }
 0x15e   : > { %v5257_v52 = vrot.slane %v8331_v0, 2  ;;  %v8334_v53 = vpop.f32.mrb[28].mxu1  ;;  %v6719_v1 = vpop.f32.mrb[29].mxu0 }
 0x15f   : > { %v6730_v55 = vpop.f32.mrb[29].mxu1  ;;  %v5258_v57 = vrot.slane %v8334_v53, 2 }
 0x160   : > { %5603 = vrot.lane.b32.xlu1 %v5256_v49, %s7514_s21  ;;  %5349 = vrot.lane.b32.xlu0 %v5257_v52, %s7513_s20 }
 0x162   : > { %v5294_v58 = vpop.permute.xlu0 %5293 }
 0x163   : > { %v5552_v59 = vpop.permute.xlu1 %5551  ;;  %v5485_v20 = vsub.f32 %v8105_v22, %v5294_v58 }
 0x164   : > { %5351 = vrot.lane.b32.xlu1 %v5258_v57, %s7513_s20  ;;  %5605 = vrot.lane.b32.xlu0 %v5257_v52, %s7514_s21  ;;  %v5742_v7 = vadd.f32 %v5552_v59, %v8110_v23 }
 0x165   : > { %v8342_v62 = vpop.f32.mrb[30].mxu0 }
 0x166   : > { %v5259_v3 = vrot.slane %v8342_v62, 2  ;;  %v5296_v4 = vpop.permute.xlu0 %5295  ;;  %v8345_v5 = vpop.f32.mrb[30].mxu1 }
 0x167   : > { %v5486_v9 = vsub.f32 %v8110_v23, %v5296_v4  ;;  %v6741_v10 = vpop.f32.mrb[31].mxu0  ;;  %v6752_v11 = vpop.f32.mrb[31].mxu1  ;;  %v5260_v13 = vrot.slane %v8345_v5, 2 }
 0x168   : > { %5607 = vrot.lane.b32.xlu1 %v5258_v57, %s7514_s21  ;;  %5353 = vrot.lane.b32.xlu0 %v5259_v3, %s7513_s20 }
 0x169   : > { %v5806_v15 = vsel %vm492_vm1, %v5486_v9, %v5742_v7 }
 0x16a   : > { %5871 = vst.msk [vmem:[%s8351_s25 + $0x2] sm:$0x3] %vm5869_vm2, %v5806_v15  ;;  %v5550_v16 = vpop.permute.xlu0 %5549  ;;  %v5298_v17 = vpop.permute.xlu1 %5297 }
 0x16b   : > { %v5741_v25 = vadd.f32 %v5550_v16, %v8105_v22  ;;  %v5487_v32 = vsub.f32 %v8134_v41, %v5298_v17 }
 0x16c   : > { %5355 = vrot.lane.b32.xlu1 %v5260_v13, %s7513_s20  ;;  %5609 = vrot.lane.b32.xlu0 %v5259_v3, %s7514_s21 }
 0x16d   : > { %v5805_v23 = vsel %vm492_vm1, %v5485_v20, %v5741_v25  ;;  %v8365_v26 = vpop.f32.mrb[32].mxu0 }
 0x16e   : > { %5870 = vst.msk [vmem:[%s8351_s25] sm:$0x3] %vm5869_vm2, %v5805_v23  ;;  %v5261_v27 = vrot.slane %v8365_v26, 2  ;;  %v5554_v29 = vpop.permute.xlu0 %5553  ;;  %v5300_v31 = vpop.permute.xlu1 %5299 }
 0x16f   : > { %v5743_v33 = vadd.f32 %v5554_v29, %v8134_v41  ;;  %v8372_v22 = vpop.f32.mrb[32].mxu1  ;;  %v6763_v35 = vpop.f32.mrb[33].mxu0  ;;  %v5488_v48 = vsub.f32 %v8139_v45, %v5300_v31 }
 0x170   : > { %v5262_v37 = vrot.slane %v8372_v22, 2  ;;  %5611 = vrot.lane.b32.xlu1 %v5260_v13, %s7514_s21  ;;  %5357 = vrot.lane.b32.xlu0 %v5261_v27, %s7513_s20  ;;  %v6774_v38 = vpop.f32.mrb[33].mxu1 }
 0x171   : > { %v5807_v40 = vsel %vm492_vm1, %v5487_v32, %v5743_v33 }
 0x172   : > { %5872 = vst.msk [vmem:[%s8351_s25 + $0x4] sm:$0x3] %vm5869_vm2, %v5807_v40  ;;  %v5556_v44 = vpop.permute.xlu1 %5555  ;;  %v5302_v47 = vpop.permute.xlu0 %5301 }
 0x173   : > { %v5744_v41 = vadd.f32 %v5556_v44, %v8139_v45  ;;  %v5489_v58 = vsub.f32 %v8164_v61, %v5302_v47 }
 0x174   : > { %5359 = vrot.lane.b32.xlu1 %v5262_v37, %s7513_s20  ;;  %5613 = vrot.lane.b32.xlu0 %v5261_v27, %s7514_s21 }
 0x175   : > { %v5808_v49 = vsel %vm492_vm1, %v5488_v48, %v5744_v41  ;;  %v8385_v52 = vpop.f32.mrb[34].mxu0 }
 0x176   : > { %5873 = vst.msk [vmem:[%s8351_s25 + $0x6] sm:$0x3] %vm5869_vm2, %v5808_v49  ;;  %v5263_v1 = vrot.slane %v8385_v52, 2  ;;  %v5304_v55 = vpop.permute.xlu1 %5303  ;;  %v5558_v57 = vpop.permute.xlu0 %5557 }
 0x177   : > { %v5745_v59 = vadd.f32 %v5558_v57, %v8164_v61  ;;  %v8392_v45 = vpop.f32.mrb[34].mxu1  ;;  %v6785_v3 = vpop.f32.mrb[35].mxu0  ;;  %v5490_v13 = vsub.f32 %v8169_v63, %v5304_v55 }
 0x178   : > { %v5264_v4 = vrot.slane %v8392_v45, 2  ;;  %5615 = vrot.lane.b32.xlu1 %v5262_v37, %s7514_s21  ;;  %5361 = vrot.lane.b32.xlu0 %v5263_v1, %s7513_s20  ;;  %v6796_v7 = vpop.f32.mrb[35].mxu1 }
 0x179   : > { %v5809_v9 = vsel %vm492_vm1, %v5489_v58, %v5745_v59 }
 0x17a   : > { %5874 = vst.msk [vmem:[%s8351_s25 + $0x8] sm:$0x3] %vm5869_vm2, %v5809_v9  ;;  %v5560_v10 = vpop.permute.xlu1 %5559  ;;  %v5306_v11 = vpop.permute.xlu0 %5305 }
 0x17b   : > { %v5746_v61 = vadd.f32 %v5560_v10, %v8169_v63  ;;  %v5491_v23 = vsub.f32 %v8192_v19, %v5306_v11 }
 0x17c   : > { %5363 = vrot.lane.b32.xlu1 %v5264_v4, %s7513_s20  ;;  %5617 = vrot.lane.b32.xlu0 %v5263_v1, %s7514_s21 }
 0x17d   : > { %v5810_v15 = vsel %vm492_vm1, %v5490_v13, %v5746_v61  ;;  %v8405_v16 = vpop.f32.mrb[36].mxu0 }
 0x17e   : > { %5875 = vst.msk [vmem:[%s8351_s25 + $0xa] sm:$0x3] %vm5869_vm2, %v5810_v15  ;;  %v5265_v17 = vrot.slane %v8405_v16, 2  ;;  %v5308_v20 = vpop.permute.xlu1 %5307  ;;  %v5562_v25 = vpop.permute.xlu0 %5561 }
 0x17f   : > { %v5747_v27 = vadd.f32 %v5562_v25, %v8192_v19  ;;  %v8412_v63 = vpop.f32.mrb[36].mxu1  ;;  %v6807_v29 = vpop.f32.mrb[37].mxu0  ;;  %v5492_v38 = vsub.f32 %v8197_v21, %v5308_v20 }
 0x180   : > { %v5266_v31 = vrot.slane %v8412_v63, 2  ;;  %5619 = vrot.lane.b32.xlu1 %v5264_v4, %s7514_s21  ;;  %5365 = vrot.lane.b32.xlu0 %v5265_v17, %s7513_s20  ;;  %v6818_v32 = vpop.f32.mrb[37].mxu1 }
 0x181   : > { %v5811_v33 = vsel %vm492_vm1, %v5491_v23, %v5747_v27 }
 0x182   : > { %5876 = vst.msk [vmem:[%s8351_s25 + $0xc] sm:$0x3] %vm5869_vm2, %v5811_v33  ;;  %v5564_v35 = vpop.permute.xlu1 %5563  ;;  %v5310_v37 = vpop.permute.xlu0 %5309 }
 0x183   : > { %v5748_v19 = vadd.f32 %v5564_v35, %v8197_v21  ;;  %v5493_v49 = vsub.f32 %v8220_v39, %v5310_v37 }
 0x184   : > { %5367 = vrot.lane.b32.xlu1 %v5266_v31, %s7513_s20  ;;  %5621 = vrot.lane.b32.xlu0 %v5265_v17, %s7514_s21 }
 0x185   : > { %v5812_v40 = vsel %vm492_vm1, %v5492_v38, %v5748_v19  ;;  %v8425_v44 = vpop.f32.mrb[38].mxu0 }
 0x186   : > { %5877 = vst.msk [vmem:[%s8351_s25 + $0xe] sm:$0x3] %vm5869_vm2, %v5812_v40  ;;  %v5267_v47 = vrot.slane %v8425_v44, 2  ;;  %v5312_v48 = vpop.permute.xlu1 %5311  ;;  %v5566_v41 = vpop.permute.xlu0 %5565 }
 0x187   : > { %v5749_v1 = vadd.f32 %v5566_v41, %v8220_v39  ;;  %v8432_v21 = vpop.f32.mrb[38].mxu1  ;;  %v6829_v55 = vpop.f32.mrb[39].mxu0  ;;  %v5494_v7 = vsub.f32 %v8225_v42, %v5312_v48 }
 0x188   : > { %v5268_v57 = vrot.slane %v8432_v21, 2  ;;  %5623 = vrot.lane.b32.xlu1 %v5266_v31, %s7514_s21  ;;  %5369 = vrot.lane.b32.xlu0 %v5267_v47, %s7513_s20  ;;  %v6840_v58 = vpop.f32.mrb[39].mxu1 }
 0x189   : > { %v5813_v59 = vsel %vm492_vm1, %v5493_v49, %v5749_v1 }
 0x18a   : > { %5878 = vst.msk [vmem:[%s8351_s25 + $0x10] sm:$0x3] %vm5869_vm2, %v5813_v59  ;;  %v5568_v3 = vpop.permute.xlu1 %5567  ;;  %v5314_v4 = vpop.permute.xlu0 %5313 }
 0x18b   : > { %v5750_v39 = vadd.f32 %v5568_v3, %v8225_v42  ;;  %v5495_v15 = vsub.f32 %v8240_v50, %v5314_v4 }
 0x18c   : > { %5371 = vrot.lane.b32.xlu1 %v5268_v57, %s7513_s20  ;;  %5625 = vrot.lane.b32.xlu0 %v5267_v47, %s7514_s21 }
 0x18d   : > { %v5814_v9 = vsel %vm492_vm1, %v5494_v7, %v5750_v39  ;;  %v8445_v10 = vpop.f32.mrb[40].mxu0 }
 0x18e   : > { %5879 = vst.msk [vmem:[%s8351_s25 + $0x12] sm:$0x3] %vm5869_vm2, %v5814_v9  ;;  %v5269_v11 = vrot.slane %v8445_v10, 2  ;;  %v5316_v13 = vpop.permute.xlu1 %5315  ;;  %v5570_v61 = vpop.permute.xlu0 %5569 }
 0x18f   : > { %v5751_v17 = vadd.f32 %v5570_v61, %v8240_v50  ;;  %v8452_v42 = vpop.f32.mrb[40].mxu1  ;;  %v6851_v20 = vpop.f32.mrb[41].mxu0  ;;  %v5496_v32 = vsub.f32 %v8244_v51, %v5316_v13 }
 0x190   : > { %v5270_v25 = vrot.slane %v8452_v42, 2  ;;  %5627 = vrot.lane.b32.xlu1 %v5268_v57, %s7514_s21  ;;  %5373 = vrot.lane.b32.xlu0 %v5269_v11, %s7513_s20  ;;  %v6862_v23 = vpop.f32.mrb[41].mxu1 }
 0x191   : > { %v5815_v27 = vsel %vm492_vm1, %v5495_v15, %v5751_v17 }
 0x192   : > { %5880 = vst.msk [vmem:[%s8351_s25 + $0x14] sm:$0x3] %vm5869_vm2, %v5815_v27  ;;  %v5572_v29 = vpop.permute.xlu1 %5571  ;;  %v5318_v31 = vpop.permute.xlu0 %5317 }
 0x193   : > { %v5752_v50 = vadd.f32 %v5572_v29, %v8244_v51  ;;  %v5497_v40 = vsub.f32 %v8251_v54, %v5318_v31 }
 0x194   : > { %5375 = vrot.lane.b32.xlu1 %v5270_v25, %s7513_s20  ;;  %5629 = vrot.lane.b32.xlu0 %v5269_v11, %s7514_s21 }
 0x195   : > { %v5816_v33 = vsel %vm492_vm1, %v5496_v32, %v5752_v50  ;;  %v8465_v35 = vpop.f32.mrb[42].mxu0 }
 0x196   : > { %5881 = vst.msk [vmem:[%s8351_s25 + $0x16] sm:$0x3] %vm5869_vm2, %v5816_v33  ;;  %v5271_v37 = vrot.slane %v8465_v35, 2  ;;  %v5320_v38 = vpop.permute.xlu1 %5319  ;;  %v5574_v19 = vpop.permute.xlu0 %5573 }
 0x197   : > { %v5753_v47 = vadd.f32 %v5574_v19, %v8251_v54  ;;  %v8472_v51 = vpop.f32.mrb[42].mxu1  ;;  %v6873_v48 = vpop.f32.mrb[43].mxu0  ;;  %v5498_v58 = vsub.f32 %v8254_v56, %v5320_v38 }
 0x198   : > { %v5272_v41 = vrot.slane %v8472_v51, 2  ;;  %5631 = vrot.lane.b32.xlu1 %v5270_v25, %s7514_s21  ;;  %5377 = vrot.lane.b32.xlu0 %v5271_v37, %s7513_s20  ;;  %v6884_v49 = vpop.f32.mrb[43].mxu1 }
 0x199   : > { %v5817_v1 = vsel %vm492_vm1, %v5497_v40, %v5753_v47 }
 0x19a   : > { %5882 = vst.msk [vmem:[%s8351_s25 + $0x18] sm:$0x3] %vm5869_vm2, %v5817_v1  ;;  %v5576_v55 = vpop.permute.xlu1 %5575  ;;  %v5322_v57 = vpop.permute.xlu0 %5321 }
 0x19b   : > { %v5754_v54 = vadd.f32 %v5576_v55, %v8254_v56  ;;  %v5499_v9 = vsub.f32 %v8261_v60, %v5322_v57 }
 0x19c   : > { %5379 = vrot.lane.b32.xlu1 %v5272_v41, %s7513_s20  ;;  %5633 = vrot.lane.b32.xlu0 %v5271_v37, %s7514_s21 }
 0x19d   : > { %v5818_v59 = vsel %vm492_vm1, %v5498_v58, %v5754_v54  ;;  %v8485_v3 = vpop.f32.mrb[44].mxu0 }
 0x19e   : > { %5883 = vst.msk [vmem:[%s8351_s25 + $0x1a] sm:$0x3] %vm5869_vm2, %v5818_v59  ;;  %v5273_v4 = vrot.slane %v8485_v3, 2  ;;  %v5324_v7 = vpop.permute.xlu1 %5323  ;;  %v5578_v39 = vpop.permute.xlu0 %5577 }
 0x19f   : > { %v5755_v11 = vadd.f32 %v5578_v39, %v8261_v60  ;;  %v8492_v56 = vpop.f32.mrb[44].mxu1  ;;  %v6895_v13 = vpop.f32.mrb[45].mxu0  ;;  %v5500_v23 = vsub.f32 %v8264_v2, %v5324_v7 }
 0x1a0   : > { %v5274_v61 = vrot.slane %v8492_v56, 2  ;;  %5635 = vrot.lane.b32.xlu1 %v5272_v41, %s7514_s21  ;;  %5381 = vrot.lane.b32.xlu0 %v5273_v4, %s7513_s20  ;;  %v6906_v15 = vpop.f32.mrb[45].mxu1 }
 0x1a1   : > { %v5819_v17 = vsel %vm492_vm1, %v5499_v9, %v5755_v11 }
 0x1a2   : > { %5884 = vst.msk [vmem:[%s8351_s25 + $0x1c] sm:$0x3] %vm5869_vm2, %v5819_v17  ;;  %v5580_v20 = vpop.permute.xlu1 %5579  ;;  %v5326_v25 = vpop.permute.xlu0 %5325 }
 0x1a3   : > { %v5756_v60 = vadd.f32 %v5580_v20, %v8264_v2  ;;  %v5501_v33 = vsub.f32 %v8271_v6, %v5326_v25 }
 0x1a4   : > { %5383 = vrot.lane.b32.xlu1 %v5274_v61, %s7513_s20  ;;  %5637 = vrot.lane.b32.xlu0 %v5273_v4, %s7514_s21 }
 0x1a5   : > { %v5820_v27 = vsel %vm492_vm1, %v5500_v23, %v5756_v60  ;;  %v8505_v29 = vpop.f32.mrb[46].mxu0 }
 0x1a6   : > { %5885 = vst.msk [vmem:[%s8351_s25 + $0x1e] sm:$0x3] %vm5869_vm2, %v5820_v27  ;;  %v5275_v31 = vrot.slane %v8505_v29, 2  ;;  %v5328_v32 = vpop.permute.xlu1 %5327  ;;  %v5582_v50 = vpop.permute.xlu0 %5581 }
 0x1a7   : > { %v5757_v37 = vadd.f32 %v5582_v50, %v8271_v6  ;;  %v8512_v2 = vpop.f32.mrb[46].mxu1  ;;  %v6917_v38 = vpop.f32.mrb[47].mxu0  ;;  %v5502_v49 = vsub.f32 %v8274_v8, %v5328_v32 }
 0x1a8   : > { %v5276_v19 = vrot.slane %v8512_v2, 2  ;;  %5639 = vrot.lane.b32.xlu1 %v5274_v61, %s7514_s21  ;;  %5385 = vrot.lane.b32.xlu0 %v5275_v31, %s7513_s20  ;;  %v6928_v40 = vpop.f32.mrb[47].mxu1 }
 0x1a9   : > { %v5821_v47 = vsel %vm492_vm1, %v5501_v33, %v5757_v37 }
 0x1aa   : > { %5886 = vst.msk [vmem:[%s8351_s25 + $0x20] sm:$0x3] %vm5869_vm2, %v5821_v47  ;;  %v5584_v48 = vpop.permute.xlu1 %5583  ;;  %v5330_v41 = vpop.permute.xlu0 %5329 }
 0x1ab   : > { %v5758_v6 = vadd.f32 %v5584_v48, %v8274_v8  ;;  %v5503_v59 = vsub.f32 %v8281_v12, %v5330_v41 }
 0x1ac   : > { %5387 = vrot.lane.b32.xlu1 %v5276_v19, %s7513_s20  ;;  %5641 = vrot.lane.b32.xlu0 %v5275_v31, %s7514_s21 }
 0x1ad   : > { %v5822_v1 = vsel %vm492_vm1, %v5502_v49, %v5758_v6  ;;  %v8525_v55 = vpop.f32.mrb[48].mxu0 }
 0x1ae   : > { %5887 = vst.msk [vmem:[%s8351_s25 + $0x22] sm:$0x3] %vm5869_vm2, %v5822_v1  ;;  %v5277_v57 = vrot.slane %v8525_v55, 2  ;;  %v5332_v58 = vpop.permute.xlu1 %5331  ;;  %v5586_v54 = vpop.permute.xlu0 %5585 }
 0x1af   : > { %v5759_v4 = vadd.f32 %v5586_v54, %v8281_v12  ;;  %v8532_v8 = vpop.f32.mrb[48].mxu1  ;;  %v6939_v7 = vpop.f32.mrb[49].mxu0  ;;  %v5504_v15 = vsub.f32 %v8284_v14, %v5332_v58 }
 0x1b0   : > { %v5278_v39 = vrot.slane %v8532_v8, 2  ;;  %5643 = vrot.lane.b32.xlu1 %v5276_v19, %s7514_s21  ;;  %5389 = vrot.lane.b32.xlu0 %v5277_v57, %s7513_s20  ;;  %v6950_v9 = vpop.f32.mrb[49].mxu1 }
 0x1b1   : > { %v5823_v11 = vsel %vm492_vm1, %v5503_v59, %v5759_v4 }
 0x1b2   : > { %5888 = vst.msk [vmem:[%s8351_s25 + $0x24] sm:$0x3] %vm5869_vm2, %v5823_v11  ;;  %v5588_v13 = vpop.permute.xlu1 %5587  ;;  %v5334_v61 = vpop.permute.xlu0 %5333 }
 0x1b3   : > { %v5760_v12 = vadd.f32 %v5588_v13, %v8284_v14  ;;  %v5505_v27 = vsub.f32 %v8291_v18, %v5334_v61 }
 0x1b4   : > { %5391 = vrot.lane.b32.xlu1 %v5278_v39, %s7513_s20  ;;  %5645 = vrot.lane.b32.xlu0 %v5277_v57, %s7514_s21 }
 0x1b5   : > { %v5824_v17 = vsel %vm492_vm1, %v5504_v15, %v5760_v12  ;;  %v8545_v20 = vpop.f32.mrb[50].mxu0 }
 0x1b6   : > { %5889 = vst.msk [vmem:[%s8351_s25 + $0x26] sm:$0x3] %vm5869_vm2, %v5824_v17  ;;  %v5279_v25 = vrot.slane %v8545_v20, 2  ;;  %v5336_v23 = vpop.permute.xlu1 %5335  ;;  %v5590_v60 = vpop.permute.xlu0 %5589 }
 0x1b7   : > { %v5761_v31 = vadd.f32 %v5590_v60, %v8291_v18  ;;  %v8552_v14 = vpop.f32.mrb[50].mxu1  ;;  %v6961_v32 = vpop.f32.mrb[51].mxu0  ;;  %v5506_v40 = vsub.f32 %v8294_v24, %v5336_v23 }
 0x1b8   : > { %v5280_v50 = vrot.slane %v8552_v14, 2  ;;  %5647 = vrot.lane.b32.xlu1 %v5278_v39, %s7514_s21  ;;  %5393 = vrot.lane.b32.xlu0 %v5279_v25, %s7513_s20  ;;  %v6972_v33 = vpop.f32.mrb[51].mxu1 }
 0x1b9   : > { %v5825_v37 = vsel %vm492_vm1, %v5505_v27, %v5761_v31 }
 0x1ba   : > { %5890 = vst.msk [vmem:[%s8351_s25 + $0x28] sm:$0x3] %vm5869_vm2, %v5825_v37  ;;  %v5592_v38 = vpop.permute.xlu1 %5591  ;;  %v5338_v19 = vpop.permute.xlu0 %5337 }
 0x1bb   : > { %v5762_v18 = vadd.f32 %v5592_v38, %v8294_v24  ;;  %v5507_v1 = vsub.f32 %v8301_v28, %v5338_v19 }
 0x1bc   : > { %5395 = vrot.lane.b32.xlu1 %v5280_v50, %s7513_s20  ;;  %5649 = vrot.lane.b32.xlu0 %v5279_v25, %s7514_s21 }
 0x1bd   : > { %v5826_v47 = vsel %vm492_vm1, %v5506_v40, %v5762_v18  ;;  %v8565_v48 = vpop.f32.mrb[52].mxu0 }
 0x1be   : > { %5891 = vst.msk [vmem:[%s8351_s25 + $0x2a] sm:$0x3] %vm5869_vm2, %v5826_v47  ;;  %v5281_v41 = vrot.slane %v8565_v48, 2  ;;  %v5340_v49 = vpop.permute.xlu1 %5339  ;;  %v5594_v6 = vpop.permute.xlu0 %5593 }
 0x1bf   : > { %v5763_v57 = vadd.f32 %v5594_v6, %v8301_v28  ;;  %v8572_v24 = vpop.f32.mrb[52].mxu1  ;;  %v6983_v58 = vpop.f32.mrb[53].mxu0  ;;  %v5508_v9 = vsub.f32 %v8304_v30, %v5340_v49 }
 0x1c0   : > { %v5282_v54 = vrot.slane %v8572_v24, 2  ;;  %5651 = vrot.lane.b32.xlu1 %v5280_v50, %s7514_s21  ;;  %5397 = vrot.lane.b32.xlu0 %v5281_v41, %s7513_s20  ;;  %v6994_v59 = vpop.f32.mrb[53].mxu1 }
 0x1c1   : > { %v5827_v4 = vsel %vm492_vm1, %v5507_v1, %v5763_v57 }
 0x1c2   : > { %5892 = vst.msk [vmem:[%s8351_s25 + $0x2c] sm:$0x3] %vm5869_vm2, %v5827_v4  ;;  %v5596_v7 = vpop.permute.xlu1 %5595  ;;  %v5342_v39 = vpop.permute.xlu0 %5341 }
 0x1c3   : > { %v5764_v28 = vadd.f32 %v5596_v7, %v8304_v30  ;;  %v5509_v17 = vsub.f32 %v8311_v34, %v5342_v39 }
 0x1c4   : > { %5399 = vrot.lane.b32.xlu1 %v5282_v54, %s7513_s20  ;;  %5653 = vrot.lane.b32.xlu0 %v5281_v41, %s7514_s21 }
 0x1c5   : > { %v5828_v11 = vsel %vm492_vm1, %v5508_v9, %v5764_v28  ;;  %v8585_v13 = vpop.f32.mrb[54].mxu0 }
 0x1c6   : > { %5893 = vst.msk [vmem:[%s8351_s25 + $0x2e] sm:$0x3] %vm5869_vm2, %v5828_v11  ;;  %v5283_v61 = vrot.slane %v8585_v13, 2  ;;  %v5344_v15 = vpop.permute.xlu1 %5343  ;;  %v5598_v12 = vpop.permute.xlu0 %5597 }
 0x1c7   : > { %v5765_v25 = vadd.f32 %v5598_v12, %v8311_v34  ;;  %v8592_v30 = vpop.f32.mrb[54].mxu1  ;;  %v7005_v23 = vpop.f32.mrb[55].mxu0  ;;  %v5510_v33 = vsub.f32 %v8314_v36, %v5344_v15 }
 0x1c8   : > { %v5284_v60 = vrot.slane %v8592_v30, 2  ;;  %5655 = vrot.lane.b32.xlu1 %v5282_v54, %s7514_s21  ;;  %5401 = vrot.lane.b32.xlu0 %v5283_v61, %s7513_s20  ;;  %v7016_v27 = vpop.f32.mrb[55].mxu1 }
 0x1c9   : > { %v5829_v31 = vsel %vm492_vm1, %v5509_v17, %v5765_v25 }
 0x1ca   : > { %5894 = vst.msk [vmem:[%s8351_s25 + $0x30] sm:$0x3] %vm5869_vm2, %v5829_v31  ;;  %v5600_v32 = vpop.permute.xlu1 %5599  ;;  %v5346_v50 = vpop.permute.xlu0 %5345 }
 0x1cb   : > { %v5766_v34 = vadd.f32 %v5600_v32, %v8314_v36  ;;  %v5511_v47 = vsub.f32 %v8321_v43, %v5346_v50 }
 0x1cc   : > { %5403 = vrot.lane.b32.xlu1 %v5284_v60, %s7513_s20  ;;  %5657 = vrot.lane.b32.xlu0 %v5283_v61, %s7514_s21 }
 0x1cd   : > { %v5830_v37 = vsel %vm492_vm1, %v5510_v33, %v5766_v34  ;;  %v8605_v38 = vpop.f32.mrb[56].mxu0 }
 0x1ce   : > { %5895 = vst.msk [vmem:[%s8351_s25 + $0x32] sm:$0x3] %vm5869_vm2, %v5830_v37  ;;  %v5285_v19 = vrot.slane %v8605_v38, 2  ;;  %v5348_v40 = vpop.permute.xlu1 %5347  ;;  %v5602_v18 = vpop.permute.xlu0 %5601 }
 0x1cf   : > { %v5767_v41 = vadd.f32 %v5602_v18, %v8321_v43  ;;  %v7027_v36 = vpop.f32.mrb[57].mxu0  ;;  %v5512_v59 = vsub.f32 %v8324_v46, %v5348_v40 }
 0x1d0   : > { %v8612_v49 = vpop.f32.mrb[56].mxu1  ;;  %5659 = vrot.lane.b32.xlu1 %v5284_v60, %s7514_s21  ;;  %5405 = vrot.lane.b32.xlu0 %v5285_v19, %s7513_s20 }
 0x1d1   : > { %v5831_v6 = vsel %vm492_vm1, %v5511_v47, %v5767_v41  ;;  %v5286_v1 = vrot.slane %v8612_v49, 2  ;;  %v7038_v57 = vpop.f32.mrb[57].mxu1 }
 0x1d2   : > { %5896 = vst.msk [vmem:[%s8351_s25 + $0x34] sm:$0x3] %vm5869_vm2, %v5831_v6  ;;  %v5604_v58 = vpop.permute.xlu1 %5603  ;;  %v5350_v54 = vpop.permute.xlu0 %5349 }
 0x1d3   : > { %v5768_v43 = vadd.f32 %v5604_v58, %v8324_v46  ;;  %v5513_v11 = vsub.f32 %v8331_v0, %v5350_v54 }
 0x1d4   : > { %5407 = vrot.lane.b32.xlu1 %v5286_v1, %s7513_s20  ;;  %5661 = vrot.lane.b32.xlu0 %v5285_v19, %s7514_s21 }
 0x1d5   : > { %v5832_v4 = vsel %vm492_vm1, %v5512_v59, %v5768_v43  ;;  %v8625_v7 = vpop.f32.mrb[58].mxu0 }
 0x1d6   : > { %5897 = vst.msk [vmem:[%s8351_s25 + $0x36] sm:$0x3] %vm5869_vm2, %v5832_v4  ;;  %v5287_v39 = vrot.slane %v8625_v7, 2  ;;  %v5352_v9 = vpop.permute.xlu1 %5351  ;;  %v5606_v28 = vpop.permute.xlu0 %5605 }
 0x1d7   : > { %v5769_v61 = vadd.f32 %v5606_v28, %v8331_v0  ;;  %v7049_v46 = vpop.f32.mrb[59].mxu0  ;;  %v5514_v27 = vsub.f32 %v8334_v53, %v5352_v9 }
 0x1d8   : > { %v8632_v15 = vpop.f32.mrb[58].mxu1  ;;  %5663 = vrot.lane.b32.xlu1 %v5286_v1, %s7514_s21  ;;  %5409 = vrot.lane.b32.xlu0 %v5287_v39, %s7513_s20 }
 0x1d9   : > { %v5833_v12 = vsel %vm492_vm1, %v5513_v11, %v5769_v61  ;;  %v5288_v17 = vrot.slane %v8632_v15, 2  ;;  %v7060_v25 = vpop.f32.mrb[59].mxu1 }
 0x1da   : > { %5898 = vst.msk [vmem:[%s8351_s25 + $0x38] sm:$0x3] %vm5869_vm2, %v5833_v12  ;;  %v5608_v23 = vpop.permute.xlu1 %5607  ;;  %v5354_v60 = vpop.permute.xlu0 %5353 }
 0x1db   : > { %v5770_v0 = vadd.f32 %v5608_v23, %v8334_v53  ;;  %v5515_v37 = vsub.f32 %v8342_v62, %v5354_v60 }
 0x1dc   : > { %5411 = vrot.lane.b32.xlu1 %v5288_v17, %s7513_s20  ;;  %5665 = vrot.lane.b32.xlu0 %v5287_v39, %s7514_s21 }
 0x1dd   : > { %v5834_v31 = vsel %vm492_vm1, %v5514_v27, %v5770_v0  ;;  %v8645_v32 = vpop.f32.mrb[60].mxu0 }
 0x1de   : > { %5899 = vst.msk [vmem:[%s8351_s25 + $0x3a] sm:$0x3] %vm5869_vm2, %v5834_v31  ;;  %v5289_v50 = vrot.slane %v8645_v32, 2  ;;  %v5356_v33 = vpop.permute.xlu1 %5355  ;;  %v5610_v34 = vpop.permute.xlu0 %5609 }
 0x1df   : > { %v5771_v19 = vadd.f32 %v5610_v34, %v8342_v62  ;;  %v7071_v53 = vpop.f32.mrb[61].mxu0  ;;  %v5516_v1 = vsub.f32 %v8345_v5, %v5356_v33 }
 0x1e0   : > { %v8652_v40 = vpop.f32.mrb[60].mxu1  ;;  %5667 = vrot.lane.b32.xlu1 %v5288_v17, %s7514_s21  ;;  %5413 = vrot.lane.b32.xlu0 %v5289_v50, %s7513_s20 }
 0x1e1   : > { %v5835_v18 = vsel %vm492_vm1, %v5515_v37, %v5771_v19  ;;  %v5290_v47 = vrot.slane %v8652_v40, 2  ;;  %v7082_v41 = vpop.f32.mrb[61].mxu1 }
 0x1e2   : > { %5900 = vst.msk [vmem:[%s8351_s25 + $0x3c] sm:$0x3] %vm5869_vm2, %v5835_v18  ;;  %v5612_v36 = vpop.permute.xlu1 %5611  ;;  %v5358_v6 = vpop.permute.xlu0 %5357 }
 0x1e3   : > { %v5772_v62 = vadd.f32 %v5612_v36, %v8345_v5  ;;  %v5517_v4 = vsub.f32 %v8365_v26, %v5358_v6 }
 0x1e4   : > { %5415 = vrot.lane.b32.xlu1 %v5290_v47, %s7513_s20  ;;  %5669 = vrot.lane.b32.xlu0 %v5289_v50, %s7514_s21 }
 0x1e5   : > { %v5836_v57 = vsel %vm492_vm1, %v5516_v1, %v5772_v62  ;;  %v8665_v58 = vpop.f32.mrb[62].mxu0 }
 0x1e6   : > { %5901 = vst.msk [vmem:[%s8351_s25 + $0x3e] sm:$0x3] %vm5869_vm2, %v5836_v57  ;;  %v5291_v54 = vrot.slane %v8665_v58, 2  ;;  %v5360_v59 = vpop.permute.xlu1 %5359  ;;  %v5614_v43 = vpop.permute.xlu0 %5613 }
 0x1e7   : > { %v5773_v39 = vadd.f32 %v5614_v43, %v8365_v26  ;;  %v7093_v5 = vpop.f32.mrb[63].mxu0  ;;  %v5518_v26 = vsub.f32 %v8372_v22, %v5360_v59 }
 0x1e8   : > { %v8672_v9 = vpop.f32.mrb[62].mxu1  ;;  %5671 = vrot.lane.b32.xlu1 %v5290_v47, %s7514_s21  ;;  %5417 = vrot.lane.b32.xlu0 %v5291_v54, %s7513_s20 }
 0x1e9   : > { %v5837_v28 = vsel %vm492_vm1, %v5517_v4, %v5773_v39  ;;  %v5292_v11 = vrot.slane %v8672_v9, 2  ;;  %v7104_v61 = vpop.f32.mrb[63].mxu1 }
 0x1ea   : > { %5902 = vst.msk [vmem:[%s8351_s25 + $0x40] sm:$0x3] %vm5869_vm2, %v5837_v28  ;;  %v5616_v46 = vpop.permute.xlu1 %5615  ;;  %v5362_v12 = vpop.permute.xlu0 %5361 }
 0x1eb   : > { %v5774_v17 = vadd.f32 %v5616_v46, %v8372_v22  ;;  %v5519_v27 = vsub.f32 %v8385_v52, %v5362_v12 }
 0x1ec   : > { %5419 = vrot.lane.b32.xlu1 %v5292_v11, %s7513_s20  ;;  %5673 = vrot.lane.b32.xlu0 %v5291_v54, %s7514_s21 }
 0x1ed   : > { %v5838_v25 = vsel %vm492_vm1, %v5518_v26, %v5774_v17 }
 0x1ee   : > { %5903 = vst.msk [vmem:[%s8351_s25 + $0x42] sm:$0x3] %vm5869_vm2, %v5838_v25  ;;  %v5364_v23 = vpop.permute.xlu1 %5363  ;;  %v5618_v60 = vpop.permute.xlu0 %5617 }
 0x1ef   : > { %v5775_v0 = vadd.f32 %v5618_v60, %v8385_v52  ;;  %v5520_v33 = vsub.f32 %v8392_v45, %v5364_v23 }
 0x1f0   : > { %5675 = vrot.lane.b32.xlu1 %v5292_v11, %s7514_s21 }
 0x1f1   : > { %v5839_v22 = vsel %vm492_vm1, %v5519_v27, %v5775_v0 }
 0x1f2   : > { %5904 = vst.msk [vmem:[%s8351_s25 + $0x44] sm:$0x3] %vm5869_vm2, %v5839_v22  ;;  %v5620_v31 = vpop.permute.xlu1 %5619  ;;  %v5366_v50 = vpop.permute.xlu0 %5365 }
 0x1f3   : > { %v5776_v34 = vadd.f32 %v5620_v31, %v8392_v45  ;;  %v5521_v52 = vsub.f32 %v8405_v16, %v5366_v50 }
 0x1f5   : > { %v5840_v37 = vsel %vm492_vm1, %v5520_v33, %v5776_v34 }
 0x1f6   : > { %5905 = vst.msk [vmem:[%s8351_s25 + $0x46] sm:$0x3] %vm5869_vm2, %v5840_v37  ;;  %v5368_v19 = vpop.permute.xlu1 %5367  ;;  %v5622_v53 = vpop.permute.xlu0 %5621 }
 0x1f7   : > { %v5777_v18 = vadd.f32 %v5622_v53, %v8405_v16  ;;  %v5522_v45 = vsub.f32 %v8412_v63, %v5368_v19 }
 0x1f9   : > { %v5841_v47 = vsel %vm492_vm1, %v5521_v52, %v5777_v18 }
 0x1fa   : > { %5906 = vst.msk [vmem:[%s8351_s25 + $0x48] sm:$0x3] %vm5869_vm2, %v5841_v47  ;;  %v5624_v41 = vpop.permute.xlu1 %5623  ;;  %v5370_v36 = vpop.permute.xlu0 %5369 }
 0x1fb   : > { %v5778_v6 = vadd.f32 %v5624_v41, %v8412_v63  ;;  %v5523_v16 = vsub.f32 %v8425_v44, %v5370_v36 }
 0x1fd   : > { %v5842_v1 = vsel %vm492_vm1, %v5522_v45, %v5778_v6 }
 0x1fe   : > { %5907 = vst.msk [vmem:[%s8351_s25 + $0x4a] sm:$0x3] %vm5869_vm2, %v5842_v1  ;;  %v5372_v62 = vpop.permute.xlu1 %5371  ;;  %v5626_v57 = vpop.permute.xlu0 %5625 }
 0x1ff   : > { %v5779_v54 = vadd.f32 %v5626_v57, %v8425_v44  ;;  %v5524_v63 = vsub.f32 %v8432_v21, %v5372_v62 }
 0x201   : > { %v5843_v59 = vsel %vm492_vm1, %v5523_v16, %v5779_v54 }
 0x202   : > { %5908 = vst.msk [vmem:[%s8351_s25 + $0x4c] sm:$0x3] %vm5869_vm2, %v5843_v59  ;;  %v5628_v43 = vpop.permute.xlu1 %5627  ;;  %v5374_v4 = vpop.permute.xlu0 %5373 }
 0x203   : > { %v5780_v39 = vadd.f32 %v5628_v43, %v8432_v21  ;;  %v5525_v44 = vsub.f32 %v8445_v10, %v5374_v4 }
 0x205   : > { %v5844_v5 = vsel %vm492_vm1, %v5524_v63, %v5780_v39 }
 0x206   : > { %5909 = vst.msk [vmem:[%s8351_s25 + $0x4e] sm:$0x3] %vm5869_vm2, %v5844_v5  ;;  %v5376_v28 = vpop.permute.xlu1 %5375  ;;  %v5630_v11 = vpop.permute.xlu0 %5629 }
 0x207   : > { %v5781_v61 = vadd.f32 %v5630_v11, %v8445_v10  ;;  %v5526_v21 = vsub.f32 %v8452_v42, %v5376_v28 }
 0x209   : > { %v5845_v46 = vsel %vm492_vm1, %v5525_v44, %v5781_v61 }
 0x20a   : > { %5910 = vst.msk [vmem:[%s8351_s25 + $0x50] sm:$0x3] %vm5869_vm2, %v5845_v46  ;;  %v5632_v12 = vpop.permute.xlu1 %5631  ;;  %v5378_v26 = vpop.permute.xlu0 %5377 }
 0x20b   : > { %v5782_v17 = vadd.f32 %v5632_v12, %v8452_v42  ;;  %v5527_v10 = vsub.f32 %v8465_v35, %v5378_v26 }
 0x20d   : > { %v5846_v25 = vsel %vm492_vm1, %v5526_v21, %v5782_v17 }
 0x20e   : > { %5911 = vst.msk [vmem:[%s8351_s25 + $0x52] sm:$0x3] %vm5869_vm2, %v5846_v25  ;;  %v5380_v23 = vpop.permute.xlu1 %5379  ;;  %v5634_v60 = vpop.permute.xlu0 %5633 }
 0x20f   : > { %v5783_v27 = vadd.f32 %v5634_v60, %v8465_v35  ;;  %v5528_v42 = vsub.f32 %v8472_v51, %v5380_v23 }
 0x211   : > { %v5847_v0 = vsel %vm492_vm1, %v5527_v10, %v5783_v27 }
 0x212   : > { %5912 = vst.msk [vmem:[%s8351_s25 + $0x54] sm:$0x3] %vm5869_vm2, %v5847_v0  ;;  %v5636_v22 = vpop.permute.xlu1 %5635  ;;  %v5382_v31 = vpop.permute.xlu0 %5381 }
 0x213   : > { %v5784_v50 = vadd.f32 %v5636_v22, %v8472_v51  ;;  %v5529_v35 = vsub.f32 %v8485_v3, %v5382_v31 }
 0x215   : > { %v5848_v33 = vsel %vm492_vm1, %v5528_v42, %v5784_v50 }
 0x216   : > { %5913 = vst.msk [vmem:[%s8351_s25 + $0x56] sm:$0x3] %vm5869_vm2, %v5848_v33  ;;  %v5384_v34 = vpop.permute.xlu1 %5383  ;;  %v5638_v37 = vpop.permute.xlu0 %5637 }
 0x217   : > { %v5785_v19 = vadd.f32 %v5638_v37, %v8485_v3  ;;  %v5530_v51 = vsub.f32 %v8492_v56, %v5384_v34 }
 0x219   : > { %v5849_v53 = vsel %vm492_vm1, %v5529_v35, %v5785_v19 }
 0x21a   : > { %5914 = vst.msk [vmem:[%s8351_s25 + $0x58] sm:$0x3] %vm5869_vm2, %v5849_v53  ;;  %v5640_v52 = vpop.permute.xlu1 %5639  ;;  %v5386_v18 = vpop.permute.xlu0 %5385 }
 0x21b   : > { %v5786_v47 = vadd.f32 %v5640_v52, %v8492_v56  ;;  %v5531_v3 = vsub.f32 %v8505_v29, %v5386_v18 }
 0x21d   : > { %v5850_v41 = vsel %vm492_vm1, %v5530_v51, %v5786_v47 }
 0x21e   : > { %5915 = vst.msk [vmem:[%s8351_s25 + $0x5a] sm:$0x3] %vm5869_vm2, %v5850_v41  ;;  %v5388_v36 = vpop.permute.xlu1 %5387  ;;  %v5642_v45 = vpop.permute.xlu0 %5641 }
 0x21f   : > { %v5787_v6 = vadd.f32 %v5642_v45, %v8505_v29  ;;  %v5532_v56 = vsub.f32 %v8512_v2, %v5388_v36 }
 0x221   : > { %v5851_v1 = vsel %vm492_vm1, %v5531_v3, %v5787_v6 }
 0x222   : > { %5916 = vst.msk [vmem:[%s8351_s25 + $0x5c] sm:$0x3] %vm5869_vm2, %v5851_v1  ;;  %v5644_v62 = vpop.permute.xlu1 %5643  ;;  %v5390_v57 = vpop.permute.xlu0 %5389 }
 0x223   : > { %v5788_v16 = vadd.f32 %v5644_v62, %v8512_v2  ;;  %v5533_v29 = vsub.f32 %v8525_v55, %v5390_v57 }
 0x225   : > { %v5852_v54 = vsel %vm492_vm1, %v5532_v56, %v5788_v16 }
 0x226   : > { %5917 = vst.msk [vmem:[%s8351_s25 + $0x5e] sm:$0x3] %vm5869_vm2, %v5852_v54  ;;  %v5392_v59 = vpop.permute.xlu1 %5391  ;;  %v5646_v43 = vpop.permute.xlu0 %5645 }
 0x227   : > { %v5789_v4 = vadd.f32 %v5646_v43, %v8525_v55  ;;  %v5534_v2 = vsub.f32 %v8532_v8, %v5392_v59 }
 0x229   : > { %v5853_v63 = vsel %vm492_vm1, %v5533_v29, %v5789_v4 }
 0x22a   : > { %5918 = vst.msk [vmem:[%s8351_s25 + $0x60] sm:$0x3] %vm5869_vm2, %v5853_v63  ;;  %v5648_v39 = vpop.permute.xlu1 %5647  ;;  %v5394_v5 = vpop.permute.xlu0 %5393 }
 0x22b   : > { %v5790_v28 = vadd.f32 %v5648_v39, %v8532_v8  ;;  %v5535_v55 = vsub.f32 %v8545_v20, %v5394_v5 }
 0x22d   : > { %v5854_v11 = vsel %vm492_vm1, %v5534_v2, %v5790_v28 }
 0x22e   : > { %5919 = vst.msk [vmem:[%s8351_s25 + $0x62] sm:$0x3] %vm5869_vm2, %v5854_v11  ;;  %v5396_v44 = vpop.permute.xlu1 %5395  ;;  %v5650_v61 = vpop.permute.xlu0 %5649 }
 0x22f   : > { %v5791_v46 = vadd.f32 %v5650_v61, %v8545_v20  ;;  %v5536_v8 = vsub.f32 %v8552_v14, %v5396_v44 }
 0x231   : > { %v5855_v12 = vsel %vm492_vm1, %v5535_v55, %v5791_v46 }
 0x232   : > { %5920 = vst.msk [vmem:[%s8351_s25 + $0x64] sm:$0x3] %vm5869_vm2, %v5855_v12  ;;  %v5652_v26 = vpop.permute.xlu1 %5651  ;;  %v5398_v21 = vpop.permute.xlu0 %5397 }
 0x233   : > { %v5792_v17 = vadd.f32 %v5652_v26, %v8552_v14  ;;  %v5537_v20 = vsub.f32 %v8565_v48, %v5398_v21 }
 0x235   : > { %v5856_v25 = vsel %vm492_vm1, %v5536_v8, %v5792_v17 }
 0x236   : > { %5921 = vst.msk [vmem:[%s8351_s25 + $0x66] sm:$0x3] %vm5869_vm2, %v5856_v25  ;;  %v5400_v23 = vpop.permute.xlu1 %5399  ;;  %v5654_v60 = vpop.permute.xlu0 %5653 }
 0x237   : > { %v5793_v10 = vadd.f32 %v5654_v60, %v8565_v48  ;;  %v5538_v14 = vsub.f32 %v8572_v24, %v5400_v23 }
 0x239   : > { %v5857_v27 = vsel %vm492_vm1, %v5537_v20, %v5793_v10 }
 0x23a   : > { %5922 = vst.msk [vmem:[%s8351_s25 + $0x68] sm:$0x3] %vm5869_vm2, %v5857_v27  ;;  %v5656_v0 = vpop.permute.xlu1 %5655  ;;  %v5402_v22 = vpop.permute.xlu0 %5401 }
 0x23b   : > { %v5794_v31 = vadd.f32 %v5656_v0, %v8572_v24  ;;  %v5539_v48 = vsub.f32 %v8585_v13, %v5402_v22 }
 0x23d   : > { %v5858_v42 = vsel %vm492_vm1, %v5538_v14, %v5794_v31 }
 0x23e   : > { %5923 = vst.msk [vmem:[%s8351_s25 + $0x6a] sm:$0x3] %vm5869_vm2, %v5858_v42  ;;  %v5404_v50 = vpop.permute.xlu1 %5403  ;;  %v5658_v33 = vpop.permute.xlu0 %5657 }
 0x23f   : > { %v5795_v34 = vadd.f32 %v5658_v33, %v8585_v13  ;;  %v5540_v24 = vsub.f32 %v8592_v30, %v5404_v50 }
 0x241   : > { %v5859_v37 = vsel %vm492_vm1, %v5539_v48, %v5795_v34 }
 0x242   : > { %5924 = vst.msk [vmem:[%s8351_s25 + $0x6c] sm:$0x3] %vm5869_vm2, %v5859_v37  ;;  %v5660_v35 = vpop.permute.xlu1 %5659  ;;  %v5406_v19 = vpop.permute.xlu0 %5405 }
 0x243   : > { %v5796_v53 = vadd.f32 %v5660_v35, %v8592_v30  ;;  %v5541_v13 = vsub.f32 %v8605_v38, %v5406_v19 }
 0x245   : > { %v5860_v52 = vsel %vm492_vm1, %v5540_v24, %v5796_v53 }
 0x246   : > { %5925 = vst.msk [vmem:[%s8351_s25 + $0x6e] sm:$0x3] %vm5869_vm2, %v5860_v52  ;;  %v5408_v18 = vpop.permute.xlu1 %5407  ;;  %v5662_v51 = vpop.permute.xlu0 %5661 }
 0x247   : > { %v5797_v47 = vadd.f32 %v5662_v51, %v8605_v38  ;;  %v5542_v30 = vsub.f32 %v8612_v49, %v5408_v18 }
 0x249   : > { %v5861_v41 = vsel %vm492_vm1, %v5541_v13, %v5797_v47 }
 0x24a   : > { %5926 = vst.msk [vmem:[%s8351_s25 + $0x70] sm:$0x3] %vm5869_vm2, %v5861_v41  ;;  %v5664_v36 = vpop.permute.xlu1 %5663  ;;  %v5410_v45 = vpop.permute.xlu0 %5409 }
 0x24b   : > { %v5798_v3 = vadd.f32 %v5664_v36, %v8612_v49  ;;  %v5543_v38 = vsub.f32 %v8625_v7, %v5410_v45 }
 0x24d   : > { %v5862_v6 = vsel %vm492_vm1, %v5542_v30, %v5798_v3 }
 0x24e   : > { %5927 = vst.msk [vmem:[%s8351_s25 + $0x72] sm:$0x3] %vm5869_vm2, %v5862_v6  ;;  %v5412_v1 = vpop.permute.xlu1 %5411  ;;  %v5666_v62 = vpop.permute.xlu0 %5665 }
 0x24f   : > { %v5799_v57 = vadd.f32 %v5666_v62, %v8625_v7  ;;  %v5544_v49 = vsub.f32 %v8632_v15, %v5412_v1 }
 0x251   : > { %v5863_v56 = vsel %vm492_vm1, %v5543_v38, %v5799_v57 }
 0x252   : > { %5928 = vst.msk [vmem:[%s8351_s25 + $0x74] sm:$0x3] %vm5869_vm2, %v5863_v56  ;;  %v5668_v16 = vpop.permute.xlu1 %5667  ;;  %v5414_v54 = vpop.permute.xlu0 %5413 }
 0x253   : > { %v5800_v59 = vadd.f32 %v5668_v16, %v8632_v15  ;;  %v5545_v7 = vsub.f32 %v8645_v32, %v5414_v54 }
 0x255   : > { %v5864_v43 = vsel %vm492_vm1, %v5544_v49, %v5800_v59 }
 0x256   : > { %5929 = vst.msk [vmem:[%s8351_s25 + $0x76] sm:$0x3] %vm5869_vm2, %v5864_v43  ;;  %v5416_v29 = vpop.permute.xlu1 %5415  ;;  %v5670_v4 = vpop.permute.xlu0 %5669 }
 0x257   : > { %v5801_v63 = vadd.f32 %v5670_v4, %v8645_v32  ;;  %v5546_v15 = vsub.f32 %v8652_v40, %v5416_v29 }
 0x259   : > { %v5865_v39 = vsel %vm492_vm1, %v5545_v7, %v5801_v63 }
 0x25a   : > { %5930 = vst.msk [vmem:[%s8351_s25 + $0x78] sm:$0x3] %vm5869_vm2, %v5865_v39  ;;  %v5672_v5 = vpop.permute.xlu1 %5671  ;;  %v5418_v2 = vpop.permute.xlu0 %5417 }
 0x25b   : > { %v5802_v28 = vadd.f32 %v5672_v5, %v8652_v40  ;;  %v5547_v55 = vsub.f32 %v8665_v58, %v5418_v2 }
 0x25d   : > { %v5866_v11 = vsel %vm492_vm1, %v5546_v15, %v5802_v28 }
 0x25e   : > { %5931 = vst.msk [vmem:[%s8351_s25 + $0x7a] sm:$0x3] %vm5869_vm2, %v5866_v11  ;;  %v5420_v44 = vpop.permute.xlu1 %5419  ;;  %v5674_v61 = vpop.permute.xlu0 %5673 }
 0x25f   : > { %v5803_v32 = vadd.f32 %v5674_v61, %v8665_v58  ;;  %v5548_v26 = vsub.f32 %v8672_v9, %v5420_v44 }
 0x261   : > { %v5867_v46 = vsel %vm492_vm1, %v5547_v55, %v5803_v32 }
 0x262   : > { %5932 = vst.msk [vmem:[%s8351_s25 + $0x7c] sm:$0x3] %vm5869_vm2, %v5867_v46  ;;  %v5676_v12 = vpop.permute.xlu1 %5675 }
 0x263   : > { %v5804_v21 = vadd.f32 %v5676_v12, %v8672_v9 }
 0x265   : > { %v5868_v40 = vsel %vm492_vm1, %v5548_v26, %v5804_v21 }
 0x266   : > { %5933 = vst.msk [vmem:[%s8351_s25 + $0x7e] sm:$0x3] %vm5869_vm2, %v5868_v40 }
 0x267 PF: > { %s12_s9 = sadd.s32 1, %s7508_s9  }
 0x268   : > { %p9_p4 = scmp.ge.s32.totalorder %s12_s9, 4  }
 0x26a   :  { %11 = sbr.rel (!%p9_p4) target bundleno = 1 (0x1), region = 61 }

// kernel: fno2d_forward.12
= control target key start
LH: loop header
LB: loop body
LE: loop exit
PB: predicated region body
PF: predicated region fallthrough
CT: control target
= control target key end

     0   :  { %s630_s15 = smov 0   ;;  %s726_s0 = inlined_call_operand.vmem [shape: f32[128,128], index: 0, kind: input, shape index: {}]   ;;  %s727_s1 = inlined_call_operand.vmem [shape: f32[128,128], index: 1, kind: input, shape index: {}]   ;;  %s728_s2 = inlined_call_operand.vmem [shape: f32[1,128], index: 2, kind: input, shape index: {}]   ;;  %s729_s3 = inlined_call_operand.vmem [shape: f32[128,128], index: 3, kind: input, shape index: {}]   ;;  %s730_s4 = inlined_call_operand.vmem [shape: f32[128,128], index: 4, kind: output, shape index: {}]  }
   0x1 LB: > { %s459_s16 = sadd.s32 4294967295, %s603_s15   ;;  %p463_p0 = scmp.ge.s32.totalorder %s603_s15, 1  ;;  %s603_s15 = sphi %s630_s15, %s14_s15  }
   0x2   : > { %p174_p1 = scmp.lt.s32.totalorder %s603_s15, 3 }
   0x4   : > { %p175_p2 = pnand %p463_p0, %p174_p1 }
   0x5   : > { %v231_v0 = vld [vmem:[%s727_s1] sm:$0xff] (!%p175_p2)  ;;  %v232_v1 = vld [vmem:[%s727_s1 + $0x8] sm:$0xff] (!%p175_p2)  ;;  %v233_v2 = vld [vmem:[%s727_s1 + $0x10] sm:$0xff] (!%p175_p2)  ;;  %s464_s23 = sshll.u32 (!%p175_p2), %s459_s16, 3 }
   0x6   : > { %178 = sbr.rel (%p175_p2) target bundleno = 265 (0x109), region = 36  ;;  %v541_v3 = vpack.c.bf16 (!%p175_p2), %v232_v1, %v231_v0  ;;  %v234_v4 = vld [vmem:[%s727_s1 + $0x18] sm:$0xff] (!%p175_p2)  ;;  %p206_p3 = scmp.lt.s32.totalorder (!%p175_p2), %s464_s23, 15  ;;  %v235_v6 = vld [vmem:[%s727_s1 + $0x20] sm:$0xff] (!%p175_p2)  ;;  %v236_v7 = vld [vmem:[%s727_s1 + $0x28] sm:$0xff] (!%p175_p2) }
   0x7   : > { %v545_v5 = vpack.c.bf16 (!%p175_p2), %v234_v4, %v233_v2  ;;  %v549_v8 = vpack.c.bf16 (!%p175_p2), %v236_v7, %v235_v6  ;;  %v237_v9 = vld [vmem:[%s727_s1 + $0x30] sm:$0xff] (!%p175_p2)  ;;  %v238_v10 = vld [vmem:[%s727_s1 + $0x38] sm:$0xff] (!%p175_p2)  ;;  %v239_v14 = vld [vmem:[%s727_s1 + $0x40] sm:$0xff] (!%p175_p2) }
   0x8   : > { %542 = vmatprep.subr.bf16.mxu0 (!%p175_p2), %v541_v3  ;;  %573 = vmatprep.subr.bf16.mxu1 (!%p175_p2), %v541_v3  ;;  %v553_v13 = vpack.c.bf16 (!%p175_p2), %v238_v10, %v237_v9  ;;  %v240_v15 = vld [vmem:[%s727_s1 + $0x48] sm:$0xff] (!%p175_p2)  ;;  %v241_v17 = vld [vmem:[%s727_s1 + $0x50] sm:$0xff] (!%p175_p2)  ;;  %v242_v18 = vld [vmem:[%s727_s1 + $0x58] sm:$0xff] (!%p175_p2) }
   0x9   : > { %544 = vmatpush3.bf16.msra.mxu0 (!%p175_p2), %v541_v3  ;;  %581 = vmatpush3.bf16.msra.mxu1 (!%p175_p2), %v541_v3  ;;  %v557_v16 = vpack.c.bf16 (!%p175_p2), %v240_v15, %v239_v14  ;;  %v561_v19 = vpack.c.bf16 (!%p175_p2), %v242_v18, %v241_v17  ;;  %v243_v20 = vld [vmem:[%s727_s1 + $0x60] sm:$0xff] (!%p175_p2)  ;;  %v244_v21 = vld [vmem:[%s727_s1 + $0x68] sm:$0xff] (!%p175_p2)  ;;  %v245_v23 = vld [vmem:[%s727_s1 + $0x70] sm:$0xff] (!%p175_p2) }
   0xa   : > { %546 = vmatprep.subr.bf16.mxu0 (!%p175_p2), %v545_v5  ;;  %574 = vmatprep.subr.bf16.mxu1 (!%p175_p2), %v545_v5  ;;  %v565_v22 = vpack.c.bf16 (!%p175_p2), %v244_v21, %v243_v20  ;;  %v246_v24 = vld [vmem:[%s727_s1 + $0x78] sm:$0xff] (!%p175_p2)  ;;  %v470_v32 = vld [vmem:[%s728_s2] ss:$0 sm:$0xff] (!%p175_p2) }
   0xb   : > { %v569_v25 = vpack.c.bf16 (!%p175_p2), %v246_v24, %v245_v23 }
   0xd   : > { %s732_s23 = smov (!%p206_p3, %s464_s23), 15  ;;  %548 = vmatpush3.bf16.msra.mxu0 %v545_v5  ;;  %582 = vmatpush3.bf16.msra.mxu1 %v545_v5 }
   0xe   : > { %s656_s30 = sshll.u32 %s732_s23, 3  ;;  %550 = vmatprep.subr.bf16.mxu0 %v549_v8  ;;  %575 = vmatprep.subr.bf16.mxu1 %v549_v8 }
   0xf   : > { %s668_s11 = scalar_lea.vmem %s726_s0, %s656_s30  ;;  %s215_s6 = scalar_lea.vmem %s729_s3, %s656_s30 }
  0x10   : > { %v223_v11 = vld [vmem:[%s668_s11] sm:$0xff]  ;;  %v224_v26 = vld [vmem:[%s668_s11 + $0x8] sm:$0xff]  ;;  %v225_v28 = vld [vmem:[%s668_s11 + $0x10] sm:$0xff] }
  0x11   : > { %v227_v12 = vld [vmem:[%s668_s11 + $0x20] sm:$0xff]  ;;  %529 = vmatprep.mubr.f32.mxu0 %v223_v11  ;;  %552 = vmatpush3.bf16.msra.mxu0 %v549_v8  ;;  %v228_v27 = vld [vmem:[%s668_s11 + $0x28] sm:$0xff]  ;;  %v229_v29 = vld [vmem:[%s668_s11 + $0x30] sm:$0xff] }
  0x12   : > { %535 = vmatprep.mubr.f32.mxu1 %v227_v12  ;;  %583 = vmatpush3.bf16.msra.mxu1 %v549_v8  ;;  %v226_v30 = vld [vmem:[%s668_s11 + $0x18] sm:$0xff]  ;;  %v360_v34 = vld [vmem:[%s215_s6 + $0x8] sm:$0xff]  ;;  %v359_v40 = vld [vmem:[%s215_s6] sm:$0xff] }
  0x13   : > { %554 = vmatprep.subr.bf16.mxu0 %v553_v13  ;;  %576 = vmatprep.subr.bf16.mxu1 %v553_v13  ;;  %v230_v31 = vld [vmem:[%s668_s11 + $0x38] sm:$0xff]  ;;  %v364_v36 = vld [vmem:[%s215_s6 + $0x28] sm:$0xff]  ;;  %v363_v42 = vld [vmem:[%s215_s6 + $0x20] sm:$0xff]  ;;  %s713_s11 = scalar_lea.vmem %s730_s4, %s656_s30 }
  0x14   : > { %v362_v50 = vld [vmem:[%s215_s6 + $0x18] sm:$0xff]  ;;  %v361_v58 = vld [vmem:[%s215_s6 + $0x10] sm:$0xff] }
  0x15   : > { %556 = vmatpush3.bf16.msra.mxu0 %v553_v13  ;;  %v366_v52 = vld [vmem:[%s215_s6 + $0x38] sm:$0xff]  ;;  %v365_v60 = vld [vmem:[%s215_s6 + $0x30] sm:$0xff] }
  0x16   : > { %584 = vmatpush3.bf16.msra.mxu1 %v553_v13  ;;  %558 = vmatprep.subr.bf16.mxu0 %v557_v16 }
  0x17   : > { %577 = vmatprep.subr.bf16.mxu1 %v557_v16 }
  0x19   : > { %560 = vmatpush3.bf16.msra.mxu0 %v557_v16 }
  0x1a   : > { %585 = vmatpush3.bf16.msra.mxu1 %v557_v16  ;;  %562 = vmatprep.subr.bf16.mxu0 %v561_v19 }
  0x1b   : > { %578 = vmatprep.subr.bf16.mxu1 %v561_v19 }
  0x1d   : > { %564 = vmatpush3.bf16.msra.mxu0 %v561_v19 }
  0x1e   : > { %586 = vmatpush3.bf16.msra.mxu1 %v561_v19  ;;  %566 = vmatprep.subr.bf16.mxu0 %v565_v22 }
  0x1f   : > { %579 = vmatprep.subr.bf16.mxu1 %v565_v22 }
  0x21   : > { %568 = vmatpush3.bf16.msra.mxu0 %v565_v22 }
  0x22   : > { %587 = vmatpush3.bf16.msra.mxu1 %v565_v22  ;;  %570 = vmatprep.subr.bf16.mxu0 %v569_v25 }
  0x23   : > { %580 = vmatprep.subr.bf16.mxu1 %v569_v25 }
  0x25   : > { %572 = vmatpush3.bf16.msra.mxu0 %v569_v25 }
  0x26   : > { %588 = vmatpush3.bf16.msra.mxu1 %v569_v25 }
  0x28   : > { %530 = vmatmul.mubr.f32.vlgmr.msra.gmra.mrb[0].mxu0 %v224_v26 }
  0x29   : > { %536 = vmatmul.mubr.f32.vlgmr.msra.gmra.mrb[0].mxu1 %v228_v27  ;;  %532 = vmatprep.mubr.f32.mxu0 %v225_v28 }
  0x2a   : > { %538 = vmatprep.mubr.f32.mxu1 %v229_v29 }
  0x2c   : > { %533 = vmatmul.mubr.f32.gmra.mrb[2].mxu0 %v226_v30 }
  0x2d   : > { %539 = vmatmul.mubr.f32.gmra.mrb[2].mxu1 %v230_v31 }
  0xfb   : > { %v531_v33 = vpop.f32.mrb[0].mxu0 }
  0xfc   : > { %v537_v35 = vpop.f32.mrb[0].mxu1  ;;  %v326_v37 = vadd.f32 %v531_v33, %v470_v32  ;;  %v320_v39 = vpop.f32.mrb[1].mxu0 }
  0xfd   : > { %v346_v38 = vadd.f32 %v537_v35, %v470_v32  ;;  %v340_v41 = vpop.f32.mrb[1].mxu1  ;;  %v321_v43 = vadd.f32 %v470_v32, %v320_v39 }
  0xfe   : > { %v341_v44 = vadd.f32 %v470_v32, %v340_v41  ;;  %v368_v45 = vadd.f32 %v360_v34, %v326_v37 }
  0xff   : > { %v372_v46 = vadd.f32 %v364_v36, %v346_v38  ;;  %v367_v47 = vadd.f32 %v359_v40, %v321_v43  ;;  %v534_v49 = vpop.f32.mrb[2].mxu0 }
 0x100   : > { %v371_v48 = vadd.f32 %v363_v42, %v341_v44  ;;  %v540_v51 = vpop.f32.mrb[2].mxu1  ;;  %v376_v53 = vmax.f32 %v368_v45, 0.0  ;;  %v336_v55 = vadd.f32 %v534_v49, %v470_v32  ;;  %v330_v57 = vpop.f32.mrb[3].mxu0 }
 0x101   : > { %v380_v54 = vmax.f32 %v372_v46, 0.0  ;;  %v356_v56 = vadd.f32 %v540_v51, %v470_v32  ;;  %v350_v59 = vpop.f32.mrb[3].mxu1  ;;  %v375_v61 = vmax.f32 %v367_v47, 0.0  ;;  %v331_v63 = vadd.f32 %v470_v32, %v330_v57 }
 0x102   : > { %v379_v62 = vmax.f32 %v371_v48, 0.0  ;;  %v351_v0 = vadd.f32 %v470_v32, %v350_v59  ;;  %384 = vst [vmem:[%s713_s11 + $0x8] sm:$0xff] %v376_v53  ;;  %v370_v1 = vadd.f32 %v362_v50, %v336_v55 }
 0x103   : > { %388 = vst [vmem:[%s713_s11 + $0x28] sm:$0xff] %v380_v54  ;;  %v374_v2 = vadd.f32 %v366_v52, %v356_v56  ;;  %383 = vst [vmem:[%s713_s11] sm:$0xff] %v375_v61  ;;  %v369_v3 = vadd.f32 %v361_v58, %v331_v63 }
 0x104   : > { %387 = vst [vmem:[%s713_s11 + $0x20] sm:$0xff] %v379_v62  ;;  %v373_v4 = vadd.f32 %v365_v60, %v351_v0  ;;  %v378_v5 = vmax.f32 %v370_v1, 0.0 }
 0x105   : > { %v382_v6 = vmax.f32 %v374_v2, 0.0  ;;  %v377_v7 = vmax.f32 %v369_v3, 0.0 }
 0x106   : > { %v381_v8 = vmax.f32 %v373_v4, 0.0  ;;  %386 = vst [vmem:[%s713_s11 + $0x18] sm:$0xff] %v378_v5 }
 0x107   : > { %390 = vst [vmem:[%s713_s11 + $0x38] sm:$0xff] %v382_v6  ;;  %385 = vst [vmem:[%s713_s11 + $0x10] sm:$0xff] %v377_v7 }
 0x108   : > { %389 = vst [vmem:[%s713_s11 + $0x30] sm:$0xff] %v381_v8 }
 0x109 PF: > { %s14_s15 = sadd.s32 1, %s603_s15  }
 0x10a   : > { %p11_p4 = scmp.ge.s32.totalorder %s14_s15, 4  }
 0x10c   :  { %13 = sbr.rel (!%p11_p4) target bundleno = 1 (0x1), region = 69 }

// kernel: fno2d_forward.19
= control target key start
LH: loop header
LB: loop body
LE: loop exit
PB: predicated region body
PF: predicated region fallthrough
CT: control target
= control target key end

     0   :  { %s1226_s18 = smov 0   ;;  %s1742_s0 = inlined_call_operand.vmem [shape: f32[128,128], index: 0, kind: input, shape index: {}]   ;;  %s1743_s1 = inlined_call_operand.vmem [shape: f32[128,512], index: 1, kind: input, shape index: {}]   ;;  %s1744_s2 = inlined_call_operand.vmem [shape: f32[1,512], index: 2, kind: input, shape index: {}]   ;;  %s1745_s3 = inlined_call_operand.vmem [shape: f32[512,4], index: 3, kind: input, shape index: {}]   ;;  %s1746_s4 = inlined_call_operand.vmem [shape: f32[1,4], index: 4, kind: input, shape index: {}]   ;;  %s1747_s5 = inlined_call_operand.vmem [shape: f32[128,4], index: 5, kind: output, shape index: {}]  }
   0x1 LB: > { %s926_s19 = sadd.s32 4294967295, %s1193_s18   ;;  %p930_p0 = scmp.ge.s32.totalorder %s1193_s18, 1  ;;  %s1193_s18 = sphi %s1226_s18, %s15_s18  }
   0x2   : > { %p188_p1 = scmp.lt.s32.totalorder %s1193_s18, 3 }
   0x4   : > { %p189_p2 = pnand %p930_p0, %p188_p1 }
   0x5   : > { %v237_v0 = vld [vmem:[%s1743_s1 + $0x8] sm:$0xff] (!%p189_p2)  ;;  %v239_v2 = vld [vmem:[%s1743_s1 + $0x18] sm:$0xff] (!%p189_p2)  ;;  %v236_v5 = vld [vmem:[%s1743_s1] sm:$0xff] (!%p189_p2)  ;;  %v1195_v7 = vmov (!%p189_p2), 0.0   ;;  %s1370_s14 = sshll.u32 (!%p189_p2), %s926_s19, 3  ;;  %vm861_vm0 = vcmask (!%p189_p2), 31744  }
   0x6   : > { %192 = sbr.rel (%p189_p2) target bundleno = 507 (0x1fb), region = 40  ;;  %v241_v1 = vld [vmem:[%s1743_s1 + $0x28] sm:$0xff] (!%p189_p2)  ;;  %v243_v4 = vld [vmem:[%s1743_s1 + $0x38] sm:$0xff] (!%p189_p2)  ;;  %v240_v6 = vld [vmem:[%s1743_s1 + $0x20] sm:$0xff] (!%p189_p2)  ;;  %386 = vmatprep.mubr.f32.mxu0 (!%p189_p2), %v1195_v7  ;;  %499 = vmatprep.mubr.f32.mxu1 (!%p189_p2), %v1195_v7  ;;  %p217_p3 = scmp.lt.s32.totalorder (!%p189_p2), %s1370_s14, 15 }
   0x7   : > { %v1050_v3 = vpack.c.bf16 (!%p189_p2), %v241_v1, %v237_v0  ;;  %v1082_v8 = vpack.c.bf16 (!%p189_p2), %v243_v4, %v239_v2  ;;  %v1052_v9 = vpack.c.bf16 (!%p189_p2), %v240_v6, %v236_v5  ;;  %v238_v10 = vld [vmem:[%s1743_s1 + $0x10] sm:$0xff] (!%p189_p2)  ;;  %v245_v12 = vld [vmem:[%s1743_s1 + $0x48] sm:$0xff] (!%p189_p2)  ;;  %v247_v15 = vld [vmem:[%s1743_s1 + $0x58] sm:$0xff] (!%p189_p2) }
   0x8   : > { %v242_v11 = vld [vmem:[%s1743_s1 + $0x30] sm:$0xff] (!%p189_p2)  ;;  %v249_v14 = vld [vmem:[%s1743_s1 + $0x68] sm:$0xff] (!%p189_p2)  ;;  %v251_v16 = vld [vmem:[%s1743_s1 + $0x78] sm:$0xff] (!%p189_p2) }
   0x9   : > { %1051 = vmatprep.subr.bf16.mxu0 (!%p189_p2), %v1050_v3  ;;  %v1084_v13 = vpack.c.bf16 (!%p189_p2), %v242_v11, %v238_v10  ;;  %1083 = vmatprep.subr.bf16.mxu1 (!%p189_p2), %v1082_v8  ;;  %v1054_v17 = vpack.c.bf16 (!%p189_p2), %v249_v14, %v245_v12  ;;  %v1086_v18 = vpack.c.bf16 (!%p189_p2), %v251_v16, %v247_v15  ;;  %v244_v19 = vld [vmem:[%s1743_s1 + $0x40] sm:$0xff] (!%p189_p2)  ;;  %v246_v21 = vld [vmem:[%s1743_s1 + $0x50] sm:$0xff] (!%p189_p2)  ;;  %v253_v24 = vld [vmem:[%s1743_s1 + $0x88] sm:$0xff] (!%p189_p2) }
   0xa   : > { %1053 = vmatpush1.bf16.msra.mxu0 (!%p189_p2), %v1052_v9  ;;  %v248_v20 = vld [vmem:[%s1743_s1 + $0x60] sm:$0xff] (!%p189_p2)  ;;  %v250_v23 = vld [vmem:[%s1743_s1 + $0x70] sm:$0xff] (!%p189_p2)  ;;  %v257_v25 = vld [vmem:[%s1743_s1 + $0xa8] sm:$0xff] (!%p189_p2) }
   0xb   : > { %1085 = vmatpush1.bf16.msra.mxu1 (!%p189_p2), %v1084_v13  ;;  %v1056_v22 = vpack.c.bf16 (!%p189_p2), %v248_v20, %v244_v19  ;;  %1055 = vmatprep.subr.bf16.mxu0 (!%p189_p2), %v1054_v17  ;;  %v1088_v26 = vpack.c.bf16 (!%p189_p2), %v250_v23, %v246_v21  ;;  %v1058_v27 = vpack.c.bf16 (!%p189_p2), %v257_v25, %v253_v24  ;;  %v255_v28 = vld [vmem:[%s1743_s1 + $0x98] sm:$0xff] (!%p189_p2)  ;;  %v252_v30 = vld [vmem:[%s1743_s1 + $0x80] sm:$0xff] (!%p189_p2)  ;;  %v254_v33 = vld [vmem:[%s1743_s1 + $0x90] sm:$0xff] (!%p189_p2) }
   0xc   : > { %1087 = vmatprep.subr.bf16.mxu1 (!%p189_p2), %v1086_v18  ;;  %v259_v29 = vld [vmem:[%s1743_s1 + $0xb8] sm:$0xff] (!%p189_p2)  ;;  %v256_v32 = vld [vmem:[%s1743_s1 + $0xa0] sm:$0xff] (!%p189_p2)  ;;  %v258_v34 = vld [vmem:[%s1743_s1 + $0xb0] sm:$0xff] (!%p189_p2) }
   0xd   : > { %v1090_v31 = vpack.c.bf16 %v259_v29, %v255_v28  ;;  %v1060_v35 = vpack.c.bf16 %v256_v32, %v252_v30  ;;  %v261_v36 = vld [vmem:[%s1743_s1 + $0xc8] sm:$0xff]  ;;  %v263_v38 = vld [vmem:[%s1743_s1 + $0xd8] sm:$0xff]  ;;  %v1092_v39 = vpack.c.bf16 %v258_v34, %v254_v33  ;;  %v260_v42 = vld [vmem:[%s1743_s1 + $0xc0] sm:$0xff]  ;;  %s1749_s14 = smov (!%p217_p3, %s1370_s14), 15 }
   0xe   : > { %1057 = vmatpush1.bf16.msra.mxu0 %v1056_v22  ;;  %v265_v37 = vld [vmem:[%s1743_s1 + $0xe8] sm:$0xff]  ;;  %v267_v41 = vld [vmem:[%s1743_s1 + $0xf8] sm:$0xff]  ;;  %v264_v43 = vld [vmem:[%s1743_s1 + $0xe0] sm:$0xff]  ;;  %s932_s8 = sshll.u32 %s1749_s14, 3 }
   0xf   : > { %1089 = vmatpush1.bf16.msra.mxu1 %v1088_v26  ;;  %1059 = vmatprep.subr.bf16.mxu0 %v1058_v27  ;;  %v1062_v40 = vpack.c.bf16 %v265_v37, %v261_v36  ;;  %v1094_v44 = vpack.c.bf16 %v267_v41, %v263_v38  ;;  %v262_v45 = vld [vmem:[%s1743_s1 + $0xd0] sm:$0xff]  ;;  %v269_v47 = vld [vmem:[%s1743_s1 + $0x108] sm:$0xff]  ;;  %v271_v49 = vld [vmem:[%s1743_s1 + $0x118] sm:$0xff]  ;;  %v1064_v51 = vpack.c.bf16 %v264_v43, %v260_v42  ;;  %s1456_s22 = scalar_lea.vmem %s1742_s0, %s932_s8  ;;  %s1714_s21 = scalar_lea.vmem %s1747_s5, %s932_s8 }
  0x10   : > { %1091 = vmatprep.subr.bf16.mxu1 %v1090_v31  ;;  %v266_v46 = vld [vmem:[%s1743_s1 + $0xf0] sm:$0xff]  ;;  %v273_v48 = vld [vmem:[%s1743_s1 + $0x128] sm:$0xff]  ;;  %v275_v50 = vld [vmem:[%s1743_s1 + $0x138] sm:$0xff] }
  0x11   : > { %v1096_v52 = vpack.c.bf16 %v266_v46, %v262_v45  ;;  %v1066_v53 = vpack.c.bf16 %v273_v48, %v269_v47  ;;  %v268_v54 = vld [vmem:[%s1743_s1 + $0x100] sm:$0xff]  ;;  %v270_v56 = vld [vmem:[%s1743_s1 + $0x110] sm:$0xff]  ;;  %v1098_v57 = vpack.c.bf16 %v275_v50, %v271_v49  ;;  %v277_v59 = vld [vmem:[%s1743_s1 + $0x148] sm:$0xff] }
  0x12   : > { %1061 = vmatpush1.bf16.msra.mxu0 %v1060_v35  ;;  %v272_v55 = vld [vmem:[%s1743_s1 + $0x120] sm:$0xff]  ;;  %v274_v58 = vld [vmem:[%s1743_s1 + $0x130] sm:$0xff]  ;;  %v281_v60 = vld [vmem:[%s1743_s1 + $0x168] sm:$0xff] }
  0x13   : > { %1093 = vmatpush1.bf16.msra.mxu1 %v1092_v39  ;;  %1063 = vmatprep.subr.bf16.mxu0 %v1062_v40  ;;  %v279_v61 = vld [vmem:[%s1743_s1 + $0x158] sm:$0xff]  ;;  %v1068_v63 = vpack.c.bf16 %v272_v55, %v268_v54  ;;  %v1100_v0 = vpack.c.bf16 %v274_v58, %v270_v56  ;;  %v1070_v1 = vpack.c.bf16 %v281_v60, %v277_v59  ;;  %v276_v2 = vld [vmem:[%s1743_s1 + $0x140] sm:$0xff]  ;;  %v278_v4 = vld [vmem:[%s1743_s1 + $0x150] sm:$0xff] }
  0x14   : > { %1095 = vmatprep.subr.bf16.mxu1 %v1094_v44  ;;  %v283_v62 = vld [vmem:[%s1743_s1 + $0x178] sm:$0xff]  ;;  %v280_v3 = vld [vmem:[%s1743_s1 + $0x160] sm:$0xff]  ;;  %v282_v6 = vld [vmem:[%s1743_s1 + $0x170] sm:$0xff] }
  0x15   : > { %v1102_v5 = vpack.c.bf16 %v283_v62, %v279_v61  ;;  %v285_v8 = vld [vmem:[%s1743_s1 + $0x188] sm:$0xff]  ;;  %v287_v10 = vld [vmem:[%s1743_s1 + $0x198] sm:$0xff]  ;;  %v1072_v12 = vpack.c.bf16 %v280_v3, %v276_v2  ;;  %v1104_v13 = vpack.c.bf16 %v282_v6, %v278_v4  ;;  %v284_v15 = vld [vmem:[%s1743_s1 + $0x180] sm:$0xff] }
  0x16   : > { %1065 = vmatpush1.bf16.msra.mxu0 %v1064_v51  ;;  %v289_v9 = vld [vmem:[%s1743_s1 + $0x1a8] sm:$0xff]  ;;  %v291_v11 = vld [vmem:[%s1743_s1 + $0x1b8] sm:$0xff]  ;;  %v288_v16 = vld [vmem:[%s1743_s1 + $0x1a0] sm:$0xff] }
  0x17   : > { %1097 = vmatpush1.bf16.msra.mxu1 %v1096_v52  ;;  %1067 = vmatprep.subr.bf16.mxu0 %v1066_v53  ;;  %v1074_v14 = vpack.c.bf16 %v289_v9, %v285_v8  ;;  %v286_v17 = vld [vmem:[%s1743_s1 + $0x190] sm:$0xff]  ;;  %v1106_v18 = vpack.c.bf16 %v291_v11, %v287_v10  ;;  %v293_v20 = vld [vmem:[%s1743_s1 + $0x1c8] sm:$0xff]  ;;  %v295_v22 = vld [vmem:[%s1743_s1 + $0x1d8] sm:$0xff]  ;;  %v1076_v24 = vpack.c.bf16 %v288_v16, %v284_v15 }
  0x18   : > { %1099 = vmatprep.subr.bf16.mxu1 %v1098_v57  ;;  %v290_v19 = vld [vmem:[%s1743_s1 + $0x1b0] sm:$0xff]  ;;  %v297_v21 = vld [vmem:[%s1743_s1 + $0x1e8] sm:$0xff]  ;;  %v299_v23 = vld [vmem:[%s1743_s1 + $0x1f8] sm:$0xff] }
  0x19   : > { %v1108_v25 = vpack.c.bf16 %v290_v19, %v286_v17  ;;  %v1078_v26 = vpack.c.bf16 %v297_v21, %v293_v20  ;;  %v292_v27 = vld [vmem:[%s1743_s1 + $0x1c0] sm:$0xff]  ;;  %v294_v29 = vld [vmem:[%s1743_s1 + $0x1d0] sm:$0xff]  ;;  %v1110_v30 = vpack.c.bf16 %v299_v23, %v295_v22  ;;  %v597_v33 = vld [vmem:[%s1745_s3 + $0x88] sm:$0xff] }
  0x1a   : > { %1069 = vmatpush1.bf16.msra.mxu0 %v1068_v63  ;;  %v296_v28 = vld [vmem:[%s1743_s1 + $0x1e0] sm:$0xff]  ;;  %v298_v31 = vld [vmem:[%s1743_s1 + $0x1f0] sm:$0xff]  ;;  %v629_v35 = vld [vmem:[%s1745_s3 + $0x188] sm:$0xff] }
  0x1b   : > { %1101 = vmatpush1.bf16.msra.mxu1 %v1100_v0  ;;  %1071 = vmatprep.subr.bf16.mxu0 %v1070_v1  ;;  %v596_v32 = vld [vmem:[%s1745_s3 + $0x80] sm:$0xff]  ;;  %v1080_v36 = vpack.c.bf16 %v296_v28, %v292_v27  ;;  %v1112_v37 = vpack.c.bf16 %v298_v31, %v294_v29  ;;  %v581_v40 = vld [vmem:[%s1745_s3 + $0x8] sm:$0xff]  ;;  %v598_v44 = vld [vmem:[%s1745_s3 + $0x90] sm:$0xff] }
  0x1c   : > { %1103 = vmatprep.subr.bf16.mxu1 %v1102_v5  ;;  %v628_v34 = vld [vmem:[%s1745_s3 + $0x180] sm:$0xff]  ;;  %v1114_v38 = vpack.c.bf16 %v597_v33, %v596_v32  ;;  %v613_v43 = vld [vmem:[%s1745_s3 + $0x108] sm:$0xff]  ;;  %v599_v45 = vld [vmem:[%s1745_s3 + $0x98] sm:$0xff] }
  0x1d   : > { %v580_v39 = vld [vmem:[%s1745_s3] sm:$0xff]  ;;  %v1146_v41 = vpack.c.bf16 %v629_v35, %v628_v34  ;;  %v630_v47 = vld [vmem:[%s1745_s3 + $0x190] sm:$0xff]  ;;  %v631_v48 = vld [vmem:[%s1745_s3 + $0x198] sm:$0xff]  ;;  %v1118_v51 = vpack.c.bf16 %v599_v45, %v598_v44 }
  0x1e   : > { %1073 = vmatpush1.bf16.msra.mxu0 %v1072_v12  ;;  %v612_v42 = vld [vmem:[%s1745_s3 + $0x100] sm:$0xff]  ;;  %v1116_v49 = vpack.c.bf16 %v581_v40, %v580_v39  ;;  %v582_v52 = vld [vmem:[%s1745_s3 + $0x10] sm:$0xff]  ;;  %v583_v53 = vld [vmem:[%s1745_s3 + $0x18] sm:$0xff]  ;;  %v1150_v55 = vpack.c.bf16 %v631_v48, %v630_v47 }
  0x1f   : > { %1105 = vmatpush1.bf16.msra.mxu1 %v1104_v13  ;;  %1075 = vmatprep.subr.bf16.mxu0 %v1074_v14  ;;  %v228_v46 = vld [vmem:[%s1456_s22] sm:$0xff]  ;;  %v1148_v50 = vpack.c.bf16 %v613_v43, %v612_v42  ;;  %v614_v54 = vld [vmem:[%s1745_s3 + $0x110] sm:$0xff]  ;;  %v615_v56 = vld [vmem:[%s1745_s3 + $0x118] sm:$0xff]  ;;  %v1120_v62 = vpack.c.bf16 %v583_v53, %v582_v52 }
  0x20   : > { %1107 = vmatprep.subr.bf16.mxu1 %v1106_v18  ;;  %v600_v57 = vld [vmem:[%s1745_s3 + $0xa0] sm:$0xff]  ;;  %v601_v58 = vld [vmem:[%s1745_s3 + $0xa8] sm:$0xff]  ;;  %v1152_v63 = vpack.c.bf16 %v615_v56, %v614_v54  ;;  %v602_v6 = vld [vmem:[%s1745_s3 + $0xb0] sm:$0xff] }
  0x21   : > { %v229_v59 = vld [vmem:[%s1456_s22 + $0x8] sm:$0xff]  ;;  %v632_v60 = vld [vmem:[%s1745_s3 + $0x1a0] sm:$0xff]  ;;  %v1122_v0 = vpack.c.bf16 %v601_v58, %v600_v57  ;;  %v603_v8 = vld [vmem:[%s1745_s3 + $0xb8] sm:$0xff] }
  0x22   : > { %1077 = vmatpush1.bf16.msra.mxu0 %v1076_v24  ;;  %v633_v61 = vld [vmem:[%s1745_s3 + $0x1a8] sm:$0xff]  ;;  %v584_v1 = vld [vmem:[%s1745_s3 + $0x20] sm:$0xff]  ;;  %v230_v9 = vld [vmem:[%s1456_s22 + $0x10] sm:$0xff]  ;;  %v1126_v14 = vpack.c.bf16 %v603_v8, %v602_v6 }
  0x23   : > { %1109 = vmatpush1.bf16.msra.mxu1 %v1108_v25  ;;  %1079 = vmatprep.subr.bf16.mxu0 %v1078_v26  ;;  %v585_v2 = vld [vmem:[%s1745_s3 + $0x28] sm:$0xff]  ;;  %v616_v3 = vld [vmem:[%s1745_s3 + $0x120] sm:$0xff]  ;;  %v1154_v4 = vpack.c.bf16 %v633_v61, %v632_v60  ;;  %v634_v10 = vld [vmem:[%s1745_s3 + $0x1b0] sm:$0xff] }
  0x24   : > { %1111 = vmatprep.subr.bf16.mxu1 %v1110_v30  ;;  %v617_v5 = vld [vmem:[%s1745_s3 + $0x128] sm:$0xff]  ;;  %v635_v11 = vld [vmem:[%s1745_s3 + $0x1b8] sm:$0xff]  ;;  %v1124_v12 = vpack.c.bf16 %v585_v2, %v584_v1  ;;  %v586_v15 = vld [vmem:[%s1745_s3 + $0x30] sm:$0xff] }
  0x25   : > { %v1156_v13 = vpack.c.bf16 %v617_v5, %v616_v3  ;;  %v587_v16 = vld [vmem:[%s1745_s3 + $0x38] sm:$0xff]  ;;  %v618_v17 = vld [vmem:[%s1745_s3 + $0x130] sm:$0xff]  ;;  %v1158_v18 = vpack.c.bf16 %v635_v11, %v634_v10  ;;  %v604_v20 = vld [vmem:[%s1745_s3 + $0xc0] sm:$0xff]  ;;  %v302_v11 = vlaneseq }
  0x26   : > { %1081 = vmatpush1.bf16.msra.mxu0 %v1080_v36  ;;  %v619_v19 = vld [vmem:[%s1745_s3 + $0x138] sm:$0xff]  ;;  %v605_v21 = vld [vmem:[%s1745_s3 + $0xc8] sm:$0xff]  ;;  %v636_v23 = vld [vmem:[%s1745_s3 + $0x1c0] sm:$0xff]  ;;  %v1128_v25 = vpack.c.bf16 %v587_v16, %v586_v15 }
  0x27   : > { %1113 = vmatpush1.bf16.msra.mxu1 %v1112_v37  ;;  %1115 = vmatprep.subr.bf16.mxu0 %v1114_v38  ;;  %v231_v22 = vld [vmem:[%s1456_s22 + $0x18] sm:$0xff]  ;;  %v637_v24 = vld [vmem:[%s1745_s3 + $0x1c8] sm:$0xff]  ;;  %v1160_v26 = vpack.c.bf16 %v619_v19, %v618_v17  ;;  %v1130_v27 = vpack.c.bf16 %v605_v21, %v604_v20  ;;  %v588_v28 = vld [vmem:[%s1745_s3 + $0x40] sm:$0xff] }
  0x28   : > { %1147 = vmatprep.subr.bf16.mxu1 %v1146_v41  ;;  %v589_v29 = vld [vmem:[%s1745_s3 + $0x48] sm:$0xff]  ;;  %v620_v30 = vld [vmem:[%s1745_s3 + $0x140] sm:$0xff]  ;;  %v1162_v31 = vpack.c.bf16 %v637_v24, %v636_v23  ;;  %v606_v33 = vld [vmem:[%s1745_s3 + $0xd0] sm:$0xff] }
  0x29   : > { %387 = vmatmul.mubr.f32.vlgmr.msra.gmra.mrb[0].mxu0 %v228_v46  ;;  %v621_v32 = vld [vmem:[%s1745_s3 + $0x148] sm:$0xff]  ;;  %v607_v34 = vld [vmem:[%s1745_s3 + $0xd8] sm:$0xff]  ;;  %v232_v35 = vld [vmem:[%s1456_s22 + $0x20] sm:$0xff]  ;;  %v1132_v38 = vpack.c.bf16 %v589_v29, %v588_v28 }
  0x2a   : > { %500 = vmatmul.mubr.f32.vlgmr.msra.gmra.mrb[0].mxu1 %v228_v46  ;;  %392 = vmatprep.mubr.f32.mxu0 %v1195_v7  ;;  %v638_v36 = vld [vmem:[%s1745_s3 + $0x1d0] sm:$0xff]  ;;  %v639_v37 = vld [vmem:[%s1745_s3 + $0x1d8] sm:$0xff]  ;;  %v1164_v39 = vpack.c.bf16 %v621_v32, %v620_v30  ;;  %v1134_v40 = vpack.c.bf16 %v607_v34, %v606_v33  ;;  %v608_v46 = vld [vmem:[%s1745_s3 + $0xe0] sm:$0xff] }
  0x2b   : > { %505 = vmatprep.mubr.f32.mxu1 %v1195_v7  ;;  %1117 = vmatpush3.bf16.msra.mxu0 %v1116_v49  ;;  %v590_v41 = vld [vmem:[%s1745_s3 + $0x50] sm:$0xff]  ;;  %v591_v42 = vld [vmem:[%s1745_s3 + $0x58] sm:$0xff]  ;;  %v1166_v44 = vpack.c.bf16 %v639_v37, %v638_v36  ;;  %v609_v47 = vld [vmem:[%s1745_s3 + $0xe8] sm:$0xff] }
  0x2c   : > { %1149 = vmatpush3.bf16.msra.mxu1 %v1148_v50  ;;  %1119 = vmatprep.subr.bf16.mxu0 %v1118_v51  ;;  %v622_v43 = vld [vmem:[%s1745_s3 + $0x150] sm:$0xff]  ;;  %v623_v45 = vld [vmem:[%s1745_s3 + $0x158] sm:$0xff]  ;;  %v233_v48 = vld [vmem:[%s1456_s22 + $0x28] sm:$0xff]  ;;  %v1136_v51 = vpack.c.bf16 %v591_v42, %v590_v41  ;;  %v1138_v53 = vpack.c.bf16 %v609_v47, %v608_v46 }
  0x2d   : > { %393 = vmatmul.mubr.f32.gmra.mrb[2].mxu0 %v229_v59  ;;  %1151 = vmatprep.subr.bf16.mxu1 %v1150_v55  ;;  %v640_v49 = vld [vmem:[%s1745_s3 + $0x1e0] sm:$0xff]  ;;  %v641_v50 = vld [vmem:[%s1745_s3 + $0x1e8] sm:$0xff]  ;;  %v1168_v52 = vpack.c.bf16 %v623_v45, %v622_v43  ;;  %v234_v57 = vld [vmem:[%s1456_s22 + $0x30] sm:$0xff] }
  0x2e   : > { %506 = vmatmul.mubr.f32.gmra.mrb[2].mxu1 %v229_v59  ;;  %398 = vmatprep.mubr.f32.mxu0 %v1195_v7  ;;  %v592_v54 = vld [vmem:[%s1745_s3 + $0x60] sm:$0xff]  ;;  %v593_v55 = vld [vmem:[%s1745_s3 + $0x68] sm:$0xff]  ;;  %v1170_v56 = vpack.c.bf16 %v641_v50, %v640_v49  ;;  %v235_v59 = vld [vmem:[%s1456_s22 + $0x38] sm:$0xff] }
  0x2f   : > { %511 = vmatprep.mubr.f32.mxu1 %v1195_v7  ;;  %1121 = vmatpush3.bf16.msra.mxu0 %v1120_v62  ;;  %v1140_v58 = vpack.c.bf16 %v593_v55, %v592_v54  ;;  %v624_v60 = vld [vmem:[%s1745_s3 + $0x160] sm:$0xff]  ;;  %v625_v61 = vld [vmem:[%s1745_s3 + $0x168] sm:$0xff]  ;;  %v594_v2 = vld [vmem:[%s1745_s3 + $0x70] sm:$0xff] }
  0x30   : > { %1153 = vmatpush3.bf16.msra.mxu1 %v1152_v63  ;;  %1123 = vmatprep.subr.bf16.mxu0 %v1122_v0  ;;  %v1172_v62 = vpack.c.bf16 %v625_v61, %v624_v60  ;;  %v610_v63 = vld [vmem:[%s1745_s3 + $0xf0] sm:$0xff]  ;;  %v595_v3 = vld [vmem:[%s1745_s3 + $0x78] sm:$0xff] }
  0x31   : > { %399 = vmatmul.mubr.f32.gmra.mrb[4].mxu0 %v230_v9  ;;  %1155 = vmatprep.subr.bf16.mxu1 %v1154_v4  ;;  %v642_v0 = vld [vmem:[%s1745_s3 + $0x1f0] sm:$0xff]  ;;  %v643_v4 = vld [vmem:[%s1745_s3 + $0x1f8] sm:$0xff]  ;;  %v1144_v5 = vpack.c.bf16 %v595_v3, %v594_v2 }
  0x32   : > { %512 = vmatmul.mubr.f32.gmra.mrb[4].mxu1 %v230_v9  ;;  %404 = vmatprep.mubr.f32.mxu0 %v1195_v7  ;;  %v1174_v6 = vpack.c.bf16 %v643_v4, %v642_v0  ;;  %v626_v8 = vld [vmem:[%s1745_s3 + $0x170] sm:$0xff]  ;;  %v627_v9 = vld [vmem:[%s1745_s3 + $0x178] sm:$0xff] }
  0x33   : > { %517 = vmatprep.mubr.f32.mxu1 %v1195_v7  ;;  %1125 = vmatpush3.bf16.msra.mxu0 %v1124_v12  ;;  %v1176_v10 = vpack.c.bf16 %v627_v9, %v626_v8  ;;  %v303_v12 = vshrl.u32 %v302_v11, 7 }
  0x34   : > { %1157 = vmatpush3.bf16.msra.mxu1 %v1156_v13  ;;  %1127 = vmatprep.subr.bf16.mxu0 %v1126_v14  ;;  %v300_v14 = vld [vmem:[%s1744_s2] sm:$0xf] }
  0x35   : > { %405 = vmatmul.mubr.f32.gmra.mrb[6].mxu0 %v231_v22  ;;  %1159 = vmatprep.subr.bf16.mxu1 %v1158_v18  ;;  %v304_v13 = vsub.s32 0, %v303_v12  ;;  %v312_v15 = vsub.s32 2, %v303_v12  ;;  %v308_v16 = vsub.s32 1, %v303_v12  ;;  %v316_v17 = vsub.s32 3, %v303_v12 }
  0x36   : > { %518 = vmatmul.mubr.f32.gmra.mrb[6].mxu1 %v231_v22  ;;  %410 = vmatprep.mubr.f32.mxu0 %v1195_v7 }
  0x37   : > { %523 = vmatprep.mubr.f32.mxu1 %v1195_v7  ;;  %1129 = vmatpush3.bf16.msra.mxu0 %v1128_v25  ;;  %v1663_v18 = vrot.slane %v300_v14, %v304_v13  ;;  %v1665_v19 = vrot.slane %v300_v14, %v312_v15  ;;  %v1667_v20 = vrot.slane %v300_v14, %v308_v16 }
  0x38   : > { %1161 = vmatpush3.bf16.msra.mxu1 %v1160_v26  ;;  %1131 = vmatprep.subr.bf16.mxu0 %v1130_v27  ;;  %v1669_v21 = vrot.slane %v300_v14, %v316_v17 }
  0x39   : > { %411 = vmatmul.mubr.f32.gmra.mrb[8].mxu0 %v232_v35  ;;  %1163 = vmatprep.subr.bf16.mxu1 %v1162_v31 }
  0x3a   : > { %524 = vmatmul.mubr.f32.gmra.mrb[8].mxu1 %v232_v35  ;;  %416 = vmatprep.mubr.f32.mxu0 %v1195_v7 }
  0x3b   : > { %529 = vmatprep.mubr.f32.mxu1 %v1195_v7  ;;  %1133 = vmatpush3.bf16.msra.mxu0 %v1132_v38 }
  0x3c   : > { %1165 = vmatpush3.bf16.msra.mxu1 %v1164_v39  ;;  %1135 = vmatprep.subr.bf16.mxu0 %v1134_v40 }
  0x3d   : > { %417 = vmatmul.mubr.f32.gmra.mrb[10].mxu0 %v233_v48  ;;  %1167 = vmatprep.subr.bf16.mxu1 %v1166_v44 }
  0x3e   : > { %530 = vmatmul.mubr.f32.gmra.mrb[10].mxu1 %v233_v48  ;;  %422 = vmatprep.mubr.f32.mxu0 %v1195_v7 }
  0x3f   : > { %535 = vmatprep.mubr.f32.mxu1 %v1195_v7  ;;  %1137 = vmatpush3.bf16.msra.mxu0 %v1136_v51 }
  0x40   : > { %1169 = vmatpush3.bf16.msra.mxu1 %v1168_v52  ;;  %1139 = vmatprep.subr.bf16.mxu0 %v1138_v53 }
  0x41   : > { %423 = vmatmul.mubr.f32.gmra.mrb[12].mxu0 %v234_v57  ;;  %1171 = vmatprep.subr.bf16.mxu1 %v1170_v56 }
  0x42   : > { %536 = vmatmul.mubr.f32.gmra.mrb[12].mxu1 %v234_v57  ;;  %428 = vmatprep.mubr.f32.mxu0 %v1195_v7 }
  0x43   : > { %541 = vmatprep.mubr.f32.mxu1 %v1195_v7  ;;  %1141 = vmatpush3.bf16.msra.mxu0 %v1140_v58  ;;  %v611_v7 = vld [vmem:[%s1745_s3 + $0xf8] sm:$0xff] }
  0x44   : > { %1173 = vmatpush3.bf16.msra.mxu1 %v1172_v62  ;;  %v1142_v1 = vpack.c.bf16 %v611_v7, %v610_v63 }
  0x45   : > { %429 = vmatmul.mubr.f32.gmra.mrb[14].mxu0 %v235_v59  ;;  %1175 = vmatprep.subr.bf16.mxu1 %v1174_v6 }
  0x46   : > { %542 = vmatmul.mubr.f32.gmra.mrb[14].mxu1 %v235_v59  ;;  %1143 = vmatprep.subr.bf16.mxu0 %v1142_v1 }
  0x47   : > { %1145 = vmatpush3.bf16.msra.mxu0 %v1144_v5 }
  0x48   : > { %1177 = vmatpush3.bf16.msra.mxu1 %v1176_v10 }
  0xfc   : > { %v388_v22 = vpop.f32.mrb[0].mxu0 }
  0xfd   : > { %v389_v23 = vadd.f32 %v388_v22, %v1663_v18  ;;  %v501_v24 = vpop.f32.mrb[0].mxu1  ;;  %v390_v25 = vpop.f32.mrb[1].mxu0 }
  0xfe   : > { %v502_v26 = vadd.f32 %v501_v24, %v1665_v19  ;;  %v391_v27 = vadd.f32 %v390_v25, %v1667_v20  ;;  %v503_v28 = vpop.f32.mrb[1].mxu1 }
  0xff   : > { %v504_v29 = vadd.f32 %v503_v28, %v1669_v21  ;;  %v548_v33 = vmax.f32 %v389_v23, 0.0 }
 0x100   : > { %v550_v30 = vmax.f32 %v502_v26, 0.0  ;;  %v549_v31 = vmax.f32 %v391_v27, 0.0  ;;  %v394_v32 = vpop.f32.mrb[2].mxu0 }
 0x101   : > { %v551_v34 = vmax.f32 %v504_v29, 0.0  ;;  %v395_v35 = vadd.f32 %v394_v32, %v1663_v18  ;;  %v507_v36 = vpop.f32.mrb[2].mxu1  ;;  %v396_v37 = vpop.f32.mrb[3].mxu0 }
 0x102   : > { %v508_v38 = vadd.f32 %v507_v36, %v1665_v19  ;;  %v397_v39 = vadd.f32 %v396_v37, %v1667_v20  ;;  %v509_v40 = vpop.f32.mrb[3].mxu1  ;;  %715 = vmatprep.mubr.f32.mxu0 %v549_v31 }
 0x103   : > { %v510_v41 = vadd.f32 %v509_v40, %v1669_v21  ;;  %820 = vmatprep.mubr.f32.mxu1 %v551_v34  ;;  %716 = vmatmul.mubr.f32.vlgmr.msra.gmra.mrb[16].mxu0 %v548_v33  ;;  %v552_v45 = vmax.f32 %v395_v35, 0.0 }
 0x104   : > { %v554_v42 = vmax.f32 %v508_v38, 0.0  ;;  %v553_v43 = vmax.f32 %v397_v39, 0.0  ;;  %821 = vmatmul.mubr.f32.vlgmr.msra.gmra.mrb[16].mxu1 %v550_v30  ;;  %v400_v44 = vpop.f32.mrb[4].mxu0 }
 0x105   : > { %v555_v46 = vmax.f32 %v510_v41, 0.0  ;;  %v401_v47 = vadd.f32 %v400_v44, %v1663_v18  ;;  %v513_v48 = vpop.f32.mrb[4].mxu1  ;;  %v402_v49 = vpop.f32.mrb[5].mxu0 }
 0x106   : > { %v514_v50 = vadd.f32 %v513_v48, %v1665_v19  ;;  %v403_v51 = vadd.f32 %v402_v49, %v1667_v20  ;;  %v515_v52 = vpop.f32.mrb[5].mxu1  ;;  %720 = vmatprep.mubr.f32.mxu0 %v553_v43 }
 0x107   : > { %v516_v53 = vadd.f32 %v515_v52, %v1669_v21  ;;  %825 = vmatprep.mubr.f32.mxu1 %v555_v46  ;;  %721 = vmatmul.mubr.f32.gmra.mrb[18].mxu0 %v552_v45  ;;  %v556_v57 = vmax.f32 %v401_v47, 0.0 }
 0x108   : > { %v558_v54 = vmax.f32 %v514_v50, 0.0  ;;  %v557_v55 = vmax.f32 %v403_v51, 0.0  ;;  %826 = vmatmul.mubr.f32.gmra.mrb[18].mxu1 %v554_v42  ;;  %v406_v56 = vpop.f32.mrb[6].mxu0 }
 0x109   : > { %v559_v58 = vmax.f32 %v516_v53, 0.0  ;;  %v407_v59 = vadd.f32 %v406_v56, %v1663_v18  ;;  %v519_v60 = vpop.f32.mrb[6].mxu1  ;;  %v408_v61 = vpop.f32.mrb[7].mxu0 }
 0x10a   : > { %v520_v62 = vadd.f32 %v519_v60, %v1665_v19  ;;  %v409_v63 = vadd.f32 %v408_v61, %v1667_v20  ;;  %v521_v7 = vpop.f32.mrb[7].mxu1  ;;  %725 = vmatprep.mubr.f32.mxu0 %v557_v55 }
 0x10b   : > { %v522_v0 = vadd.f32 %v521_v7, %v1669_v21  ;;  %830 = vmatprep.mubr.f32.mxu1 %v559_v58  ;;  %726 = vmatmul.mubr.f32.gmra.mrb[20].mxu0 %v556_v57  ;;  %v560_v4 = vmax.f32 %v407_v59, 0.0 }
 0x10c   : > { %v562_v1 = vmax.f32 %v520_v62, 0.0  ;;  %v561_v2 = vmax.f32 %v409_v63, 0.0  ;;  %831 = vmatmul.mubr.f32.gmra.mrb[20].mxu1 %v558_v54  ;;  %v412_v3 = vpop.f32.mrb[8].mxu0 }
 0x10d   : > { %v563_v5 = vmax.f32 %v522_v0, 0.0  ;;  %v413_v6 = vadd.f32 %v412_v3, %v1663_v18  ;;  %v525_v8 = vpop.f32.mrb[8].mxu1  ;;  %v414_v9 = vpop.f32.mrb[9].mxu0 }
 0x10e   : > { %v526_v10 = vadd.f32 %v525_v8, %v1665_v19  ;;  %v415_v11 = vadd.f32 %v414_v9, %v1667_v20  ;;  %v527_v12 = vpop.f32.mrb[9].mxu1  ;;  %730 = vmatprep.mubr.f32.mxu0 %v561_v2 }
 0x10f   : > { %v528_v13 = vadd.f32 %v527_v12, %v1669_v21  ;;  %835 = vmatprep.mubr.f32.mxu1 %v563_v5  ;;  %731 = vmatmul.mubr.f32.gmra.mrb[22].mxu0 %v560_v4  ;;  %v564_v17 = vmax.f32 %v413_v6, 0.0 }
 0x110   : > { %v566_v14 = vmax.f32 %v526_v10, 0.0  ;;  %v565_v15 = vmax.f32 %v415_v11, 0.0  ;;  %836 = vmatmul.mubr.f32.gmra.mrb[22].mxu1 %v562_v1  ;;  %v418_v16 = vpop.f32.mrb[10].mxu0 }
 0x111   : > { %v567_v22 = vmax.f32 %v528_v13, 0.0  ;;  %v419_v23 = vadd.f32 %v418_v16, %v1663_v18  ;;  %v531_v24 = vpop.f32.mrb[10].mxu1  ;;  %v420_v25 = vpop.f32.mrb[11].mxu0 }
 0x112   : > { %v532_v26 = vadd.f32 %v531_v24, %v1665_v19  ;;  %v421_v27 = vadd.f32 %v420_v25, %v1667_v20  ;;  %v533_v28 = vpop.f32.mrb[11].mxu1  ;;  %735 = vmatprep.mubr.f32.mxu0 %v565_v15 }
 0x113   : > { %v534_v29 = vadd.f32 %v533_v28, %v1669_v21  ;;  %840 = vmatprep.mubr.f32.mxu1 %v567_v22  ;;  %736 = vmatmul.mubr.f32.gmra.mrb[24].mxu0 %v564_v17  ;;  %v568_v33 = vmax.f32 %v419_v23, 0.0 }
 0x114   : > { %v570_v30 = vmax.f32 %v532_v26, 0.0  ;;  %v569_v31 = vmax.f32 %v421_v27, 0.0  ;;  %841 = vmatmul.mubr.f32.gmra.mrb[24].mxu1 %v566_v14  ;;  %v424_v32 = vpop.f32.mrb[12].mxu0 }
 0x115   : > { %v571_v34 = vmax.f32 %v534_v29, 0.0  ;;  %v425_v35 = vadd.f32 %v424_v32, %v1663_v18  ;;  %v537_v36 = vpop.f32.mrb[12].mxu1  ;;  %v426_v37 = vpop.f32.mrb[13].mxu0 }
 0x116   : > { %v538_v38 = vadd.f32 %v537_v36, %v1665_v19  ;;  %v427_v39 = vadd.f32 %v426_v37, %v1667_v20  ;;  %v539_v40 = vpop.f32.mrb[13].mxu1  ;;  %740 = vmatprep.mubr.f32.mxu0 %v569_v31 }
 0x117   : > { %v540_v41 = vadd.f32 %v539_v40, %v1669_v21  ;;  %845 = vmatprep.mubr.f32.mxu1 %v571_v34  ;;  %741 = vmatmul.mubr.f32.gmra.mrb[26].mxu0 %v568_v33  ;;  %v572_v45 = vmax.f32 %v425_v35, 0.0 }
 0x118   : > { %v574_v42 = vmax.f32 %v538_v38, 0.0  ;;  %v573_v43 = vmax.f32 %v427_v39, 0.0  ;;  %846 = vmatmul.mubr.f32.gmra.mrb[26].mxu1 %v570_v30  ;;  %v430_v44 = vpop.f32.mrb[14].mxu0 }
 0x119   : > { %v575_v46 = vmax.f32 %v540_v41, 0.0  ;;  %v431_v47 = vadd.f32 %v430_v44, %v1663_v18  ;;  %v543_v48 = vpop.f32.mrb[14].mxu1  ;;  %v432_v49 = vpop.f32.mrb[15].mxu0 }
 0x11a   : > { %v544_v50 = vadd.f32 %v543_v48, %v1665_v19  ;;  %v433_v51 = vadd.f32 %v432_v49, %v1667_v20  ;;  %v545_v52 = vpop.f32.mrb[15].mxu1  ;;  %745 = vmatprep.mubr.f32.mxu0 %v573_v43  ;;  %v1706_v20 = vld [vmem:[%s1746_s4] ss:$0 sm:$0xff] }
 0x11b   : > { %v546_v53 = vadd.f32 %v545_v52, %v1669_v21  ;;  %850 = vmatprep.mubr.f32.mxu1 %v575_v46  ;;  %746 = vmatmul.mubr.f32.gmra.mrb[28].mxu0 %v572_v45  ;;  %v576_v56 = vmax.f32 %v431_v47, 0.0 }
 0x11c   : > { %v578_v54 = vmax.f32 %v544_v50, 0.0  ;;  %v577_v55 = vmax.f32 %v433_v51, 0.0  ;;  %851 = vmatmul.mubr.f32.gmra.mrb[28].mxu1 %v574_v42 }
 0x11d   : > { %v579_v57 = vmax.f32 %v546_v53, 0.0 }
 0x11e   : > { %750 = vmatprep.mubr.f32.mxu0 %v577_v55 }
 0x11f   : > { %855 = vmatprep.mubr.f32.mxu1 %v579_v57  ;;  %751 = vmatmul.mubr.f32.gmra.mrb[30].mxu0 %v576_v56 }
 0x120   : > { %856 = vmatmul.mubr.f32.gmra.mrb[30].mxu1 %v578_v54 }
 0x1d6   : > { %v970_v18 = vpop.f32.mrb[16].mxu0 }
 0x1d7   : > { %v1026_v19 = vpop.f32.mrb[16].mxu1  ;;  %v971_v21 = vpop.f32.mrb[17].mxu0 }
 0x1d8   : > { %v972_v58 = vadd.f32 %v971_v21, %v970_v18  ;;  %v1027_v59 = vpop.f32.mrb[17].mxu1 }
 0x1d9   : > { %v1028_v60 = vadd.f32 %v1027_v59, %v1026_v19 }
 0x1da   : > { %v718_v61 = vadd.f32 %v972_v58, %v1706_v20  ;;  %v973_v62 = vpop.f32.mrb[18].mxu0 }
 0x1db   : > { %v1029_v63 = vpop.f32.mrb[18].mxu1  ;;  %v974_v7 = vpop.f32.mrb[19].mxu0 }
 0x1dc   : > { %v823_v0 = vadd.f32 %v1028_v60, %v718_v61  ;;  %v975_v1 = vadd.f32 %v974_v7, %v973_v62  ;;  %v1030_v2 = vpop.f32.mrb[19].mxu1 }
 0x1dd   : > { %v1031_v3 = vadd.f32 %v1030_v2, %v1029_v63 }
 0x1de   : > { %862 = vst.msk [vmem:[%s1714_s21] sm:$0xff] %vm861_vm0, %v823_v0  ;;  %v723_v4 = vadd.f32 %v975_v1, %v1706_v20  ;;  %v976_v5 = vpop.f32.mrb[20].mxu0 }
 0x1df   : > { %v1032_v6 = vpop.f32.mrb[20].mxu1  ;;  %v977_v8 = vpop.f32.mrb[21].mxu0 }
 0x1e0   : > { %v828_v9 = vadd.f32 %v1031_v3, %v723_v4  ;;  %v978_v10 = vadd.f32 %v977_v8, %v976_v5  ;;  %v1033_v11 = vpop.f32.mrb[21].mxu1 }
 0x1e1   : > { %v1034_v12 = vadd.f32 %v1033_v11, %v1032_v6 }
 0x1e2   : > { %863 = vst.msk [vmem:[%s1714_s21 + $0x8] sm:$0xff] %vm861_vm0, %v828_v9  ;;  %v728_v13 = vadd.f32 %v978_v10, %v1706_v20  ;;  %v979_v14 = vpop.f32.mrb[22].mxu0 }
 0x1e3   : > { %v1035_v15 = vpop.f32.mrb[22].mxu1  ;;  %v980_v16 = vpop.f32.mrb[23].mxu0 }
 0x1e4   : > { %v833_v17 = vadd.f32 %v1034_v12, %v728_v13  ;;  %v981_v22 = vadd.f32 %v980_v16, %v979_v14  ;;  %v1036_v23 = vpop.f32.mrb[23].mxu1 }
 0x1e5   : > { %v1037_v24 = vadd.f32 %v1036_v23, %v1035_v15 }
 0x1e6   : > { %864 = vst.msk [vmem:[%s1714_s21 + $0x10] sm:$0xff] %vm861_vm0, %v833_v17  ;;  %v733_v25 = vadd.f32 %v981_v22, %v1706_v20  ;;  %v982_v26 = vpop.f32.mrb[24].mxu0 }
 0x1e7   : > { %v1038_v27 = vpop.f32.mrb[24].mxu1  ;;  %v983_v28 = vpop.f32.mrb[25].mxu0 }
 0x1e8   : > { %v838_v29 = vadd.f32 %v1037_v24, %v733_v25  ;;  %v984_v30 = vadd.f32 %v983_v28, %v982_v26  ;;  %v1039_v31 = vpop.f32.mrb[25].mxu1 }
 0x1e9   : > { %v1040_v32 = vadd.f32 %v1039_v31, %v1038_v27 }
 0x1ea   : > { %865 = vst.msk [vmem:[%s1714_s21 + $0x18] sm:$0xff] %vm861_vm0, %v838_v29  ;;  %v738_v33 = vadd.f32 %v984_v30, %v1706_v20  ;;  %v985_v34 = vpop.f32.mrb[26].mxu0 }
 0x1eb   : > { %v1041_v35 = vpop.f32.mrb[26].mxu1  ;;  %v986_v36 = vpop.f32.mrb[27].mxu0 }
 0x1ec   : > { %v843_v37 = vadd.f32 %v1040_v32, %v738_v33  ;;  %v987_v38 = vadd.f32 %v986_v36, %v985_v34  ;;  %v1042_v39 = vpop.f32.mrb[27].mxu1 }
 0x1ed   : > { %v1043_v40 = vadd.f32 %v1042_v39, %v1041_v35 }
 0x1ee   : > { %866 = vst.msk [vmem:[%s1714_s21 + $0x20] sm:$0xff] %vm861_vm0, %v843_v37  ;;  %v743_v41 = vadd.f32 %v987_v38, %v1706_v20  ;;  %v988_v42 = vpop.f32.mrb[28].mxu0 }
 0x1ef   : > { %v1044_v43 = vpop.f32.mrb[28].mxu1  ;;  %v989_v44 = vpop.f32.mrb[29].mxu0 }
 0x1f0   : > { %v848_v45 = vadd.f32 %v1043_v40, %v743_v41  ;;  %v990_v46 = vadd.f32 %v989_v44, %v988_v42  ;;  %v1045_v47 = vpop.f32.mrb[29].mxu1 }
 0x1f1   : > { %v1046_v48 = vadd.f32 %v1045_v47, %v1044_v43 }
 0x1f2   : > { %867 = vst.msk [vmem:[%s1714_s21 + $0x28] sm:$0xff] %vm861_vm0, %v848_v45  ;;  %v748_v49 = vadd.f32 %v990_v46, %v1706_v20  ;;  %v991_v50 = vpop.f32.mrb[30].mxu0 }
 0x1f3   : > { %v1047_v51 = vpop.f32.mrb[30].mxu1  ;;  %v992_v52 = vpop.f32.mrb[31].mxu0 }
 0x1f4   : > { %v853_v53 = vadd.f32 %v1046_v48, %v748_v49  ;;  %v993_v54 = vadd.f32 %v992_v52, %v991_v50  ;;  %v1048_v55 = vpop.f32.mrb[31].mxu1 }
 0x1f5   : > { %v1049_v56 = vadd.f32 %v1048_v55, %v1047_v51 }
 0x1f6   : > { %868 = vst.msk [vmem:[%s1714_s21 + $0x30] sm:$0xff] %vm861_vm0, %v853_v53  ;;  %v753_v57 = vadd.f32 %v993_v54, %v1706_v20 }
 0x1f8   : > { %v858_v18 = vadd.f32 %v1049_v56, %v753_v57 }
 0x1fa   : > { %869 = vst.msk [vmem:[%s1714_s21 + $0x38] sm:$0xff] %vm861_vm0, %v858_v18 }
 0x1fb PF: > { %s15_s18 = sadd.s32 1, %s1193_s18  }
 0x1fc   : > { %p12_p4 = scmp.ge.s32.totalorder %s15_s18, 4  }
 0x1fe   :  { %14 = sbr.rel (!%p12_p4) target bundleno = 1 (0x1), region = 70 }

</bundles_post_ra>
